<compile_context>
chip_gen: v6e
topology: v6e:2x2x1
jax: 0.10.0
libtpu: 0.0.40
codegen_flags: <defaults>
</compile_context>

<pallas_src>
import functools

import jax
import jax.numpy as jnp
from jax.experimental import pallas as pl
from jax.experimental.pallas import tpu as pltpu

# ---- module hyper-parameters (defaults of VAE_GNN_prior.__init__) -----------
INPUT_DIM = 24
HIDDEN_DIM = 128
Z_DIM = 25
OUTPUT_DIM = 12
MAP_DIM = 512
NUM_MODES = 3
LANE = 128

GT_DIM = OUTPUT_DIM - 1                              # 11
ENC_DIMS = MAP_DIM + HIDDEN_DIM + GT_DIM             # 651
DEC_DIMS = Z_DIM + HIDDEN_DIM + MAP_DIM              # 665
ENC_IN = ENC_DIMS + GT_DIM                           # 662  (MLP_encoder in_dim)
ENC_HID = ENC_IN // 2                                # 331
DEC_IN = DEC_DIMS + Z_DIM                            # 690  (MLP_decoder in_dim)

# 128-lane aligned padded sizes used by the fused kernel
FEAT_PAD = LANE                                      # 24  -> 128
GT_PAD = LANE                                        # 11  -> 128
MAPSGT_PAD = MAP_DIM + GT_PAD                        # 640 fused [maps || gt] operand
ENC_HID_PAD = 3 * LANE                               # 331 -> 384
DEC_HID_PAD = 6 * LANE                               # 665 -> 768
LEAK = 0.2                                           # F.leaky_relu slope in MLP_Enc/MLP_Dec

_VMEM = functools.partial(pl.BlockSpec, memory_space=pltpu.MemorySpace.VMEM)


# -------------------------- fused Pallas kernel -------------------------------
def _vae_fused_kernel(
    feats_ref, mapsgt_ref, eps_ref,
    w_emb_ref, b_emb_ref,
    we_mapsgt_ref, we_hemb_ref, b_e0_ref,
    w_mulv_ref, b_mulv_ref,
    wd_maps_ref, wd_hemb_ref, wd_z_ref, b_d0_ref,
    w_d1_ref, b_d1_ref,
    mulv_out_ref, pred_out_ref, z_out_ref,
):
    f32 = jnp.float32
    bf16 = jnp.bfloat16
    n_pad = feats_ref.shape[0]

    feats = feats_ref[...]            # (n_pad, 128)  bf16, zero-padded past 24
    mapsgt = mapsgt_ref[...]          # (n_pad, 640)  bf16 = [maps(512) || gt pad 128]
    maps = mapsgt[:, :MAP_DIM]        # (n_pad, 512)  lane-aligned static slice
    eps = eps_ref[...]                # (3*n_pad, 128) f32, zeros past Z_DIM

    # ---- embedding_h ---------------------------------------------------------
    h_emb = jnp.dot(feats, w_emb_ref[...], preferred_element_type=f32) + b_emb_ref[...]
    h_emb_bf = h_emb.astype(bf16)

    # ---- encode: cat([maps, h_emb, gt]) -> GNN_enc (identity) -> cat([., gt]) --
    # TODO(synk): GAT_VAE 'GNN_enc' is not defined in the reference source;
    #             identity pass-through, so the cat is folded into per-segment
    #             dots: the two gt segments were pre-summed and fused into the
    #             maps operand on the host ([maps || gt] -> one (640,384) block).
    pre_e = (
        jnp.dot(mapsgt, we_mapsgt_ref[...], preferred_element_type=f32)
        + jnp.dot(h_emb_bf, we_hemb_ref[...], preferred_element_type=f32)
        + b_e0_ref[...]
    )
    h1 = jnp.where(pre_e > 0, pre_e, LEAK * pre_e).astype(bf16)   # leaky_relu(0.2)

    # packed mu || log_var head: one dot, one 256-lane (unmasked) store.
    mulv = jnp.dot(h1, w_mulv_ref[...], preferred_element_type=f32) + b_mulv_ref[...]
    mulv_out_ref[...] = mulv

    mu_slab = mulv[:, :LANE]          # mu at lanes [0, Z_DIM), exact zeros elsewhere
    lv_slab = mulv[:, LANE:]          # log_var at lanes [0, Z_DIM), zeros elsewhere

    # std = elu(0.5 * log_var) + 1 + 1e-5   (exp argument clamped to <= 0)
    half = 0.5 * lv_slab
    std = jnp.where(half > 0, half, jnp.exp(jnp.minimum(half, 0.0)) - 1.0) + 1.0 + 1e-5

    # ---- decoder, mode-invariant part (maps & h_emb segments + bias) ---------
    # TODO(synk): GAT_VAE 'GNN_decoder' is not defined in the reference source;
    #             identity pass-through, cat folded into per-segment dots and
    #             the two z segments pre-summed on the host.
    dec_shared = (
        jnp.dot(maps, wd_maps_ref[...], preferred_element_type=f32)
        + jnp.dot(h_emb_bf, wd_hemb_ref[...], preferred_element_type=f32)
        + b_d0_ref[...]
    )                                                       # (n_pad, 768) f32

    # ---- mode-batched reparameterize + decoder head ---------------------------
    # z = mu + std * eps for all 3 modes at once (padded lanes stay exactly 0
    # because mu/eps are zero there). Sublane concat of tile-aligned blocks is cheap.
    mu3 = jnp.concatenate([mu_slab] * NUM_MODES, axis=0)    # (3*n_pad, 128)
    std3 = jnp.concatenate([std] * NUM_MODES, axis=0)
    z_all = mu3 + std3 * eps                                # (3*n_pad, 128) f32

    pre_d = (
        jnp.dot(z_all.astype(bf16), wd_z_ref[...], preferred_element_type=f32)
        + jnp.concatenate([dec_shared] * NUM_MODES, axis=0)
    )                                                       # (3*n_pad, 768)
    h2 = jnp.where(pre_d > 0, pre_d, LEAK * pre_d).astype(bf16)   # leaky_relu(0.2)
    pred = jnp.dot(h2, w_d1_ref[...], preferred_element_type=f32) + b_d1_ref[...]

    pred_out_ref[...] = pred                                # one (3*n_pad, 128) store
    z_out_ref[...] = z_all[(NUM_MODES - 1) * n_pad:, :]     # last mode's sample


# -------------------------- parameter init & packing --------------------------
def init_params(key):
    """Raw parameters in semantic shapes (weights stored (in, out))."""
    ks = jax.random.split(key, 6)

    def lin(k, fan_in, fan_out):
        kw, kb = jax.random.split(k)
        scale = (2.0 / (fan_in + fan_out)) ** 0.5  # xavier-normal style
        w = scale * jax.random.normal(kw, (fan_in, fan_out), jnp.float32)
        b = 0.01 * jax.random.normal(kb, (fan_out,), jnp.float32)
        return w, b

    p = {}
    p["emb_w"], p["emb_b"] = lin(ks[0], INPUT_DIM, HIDDEN_DIM)      # embedding_h
    p["enc_w0"], p["enc_b0"] = lin(ks[1], ENC_IN, ENC_HID)          # MLP_Enc.linear
    p["enc_wmu"], p["enc_bmu"] = lin(ks[2], ENC_HID, Z_DIM)         # MLP_Enc.mu
    p["enc_wlv"], p["enc_blv"] = lin(ks[3], ENC_HID, Z_DIM)         # MLP_Enc.log_var
    p["dec_w0"], p["dec_b0"] = lin(ks[4], DEC_IN, DEC_DIMS)         # MLP_Dec.linear0
    p["dec_w1"], p["dec_b1"] = lin(ks[5], DEC_DIMS, OUTPUT_DIM)     # MLP_Dec.linear1
    return p


def pack_params(p):
    """Split / pad / fuse raw weights into the MXU-friendly layout the kernel expects."""
    bf16 = jnp.bfloat16
    f32 = jnp.float32

    def padc(w, cols):
        return jnp.pad(w, ((0, 0), (0, cols - w.shape[1])))

    q = {}
    # embedding_h (24, 128) -> (128, 128)
    q["w_emb"] = jnp.pad(p["emb_w"], ((0, FEAT_PAD - INPUT_DIM), (0, 0))).astype(bf16)
    q["b_emb"] = p["emb_b"].reshape(1, HIDDEN_DIM).astype(f32)

    # MLP_encoder.linear split by input segment of cat([maps, h_emb, gt, gt]);
    # the two gt segments see the same input -> sum their weight rows, then fuse
    # the gt block into the maps block (kernel input is [maps(512) || gt pad 128]).
    w0 = p["enc_w0"]                                             # (662, 331)
    w_gt = w0[ENC_DIMS - GT_DIM:ENC_DIMS] + w0[ENC_DIMS:ENC_IN]  # (11, 331)
    w_mapsgt = jnp.zeros((MAPSGT_PAD, ENC_HID_PAD), f32)
    w_mapsgt = w_mapsgt.at[:MAP_DIM, :ENC_HID].set(w0[:MAP_DIM])
    w_mapsgt = w_mapsgt.at[MAP_DIM:MAP_DIM + GT_DIM, :ENC_HID].set(w_gt)
    q["we_mapsgt"] = w_mapsgt.astype(bf16)                       # (640, 384)
    q["we_hemb"] = padc(w0[MAP_DIM:MAP_DIM + HIDDEN_DIM], ENC_HID_PAD).astype(bf16)  # (128, 384)
    q["b_e0"] = jnp.pad(p["enc_b0"], (0, ENC_HID_PAD - ENC_HID)).reshape(1, ENC_HID_PAD).astype(f32)

    # packed mu || log_var head: (384, 256), mu in lanes [0,25) of the first
    # 128-lane half, log_var in lanes [0,25) of the second half.
    w_mulv = jnp.zeros((ENC_HID_PAD, 2 * LANE), f32)
    w_mulv = w_mulv.at[:ENC_HID, :Z_DIM].set(p["enc_wmu"])
    w_mulv = w_mulv.at[:ENC_HID, LANE:LANE + Z_DIM].set(p["enc_wlv"])
    q["w_mulv"] = w_mulv.astype(bf16)
    b_mulv = jnp.zeros((1, 2 * LANE), f32)
    b_mulv = b_mulv.at[0, :Z_DIM].set(p["enc_bmu"])
    b_mulv = b_mulv.at[0, LANE:LANE + Z_DIM].set(p["enc_blv"])
    q["b_mulv"] = b_mulv

    # MLP_decoder.linear0 split by input segment of cat([maps, h_emb, z, z]);
    # the two z segments are summed (decoder GNN is identity, see kernel TODO).
    d0 = p["dec_w0"]                                             # (690, 665)
    q["wd_maps"] = padc(d0[:MAP_DIM], DEC_HID_PAD).astype(bf16)                       # (512, 768)
    q["wd_hemb"] = padc(d0[MAP_DIM:MAP_DIM + HIDDEN_DIM], DEC_HID_PAD).astype(bf16)   # (128, 768)
    w_z = d0[MAP_DIM + HIDDEN_DIM:DEC_DIMS] + d0[DEC_DIMS:DEC_IN]                     # (25, 665)
    wz_pad = jnp.zeros((LANE, DEC_HID_PAD), f32).at[:Z_DIM, :DEC_DIMS].set(w_z)
    q["wd_z"] = wz_pad.astype(bf16)                                                   # (128, 768)
    q["b_d0"] = jnp.pad(p["dec_b0"], (0, DEC_HID_PAD - DEC_DIMS)).reshape(1, DEC_HID_PAD).astype(f32)

    # MLP_decoder.linear1 padded to a 128-lane output slab.
    q["w_d1"] = jnp.pad(
        p["dec_w1"], ((0, DEC_HID_PAD - DEC_DIMS), (0, LANE - OUTPUT_DIM))).astype(bf16)
    q["b_d1"] = jnp.pad(p["dec_b1"], (0, LANE - OUTPUT_DIM)).reshape(1, LANE).astype(f32)
    return q


# -------------------------- input preparation (done once, outside jit) --------
def prepare_inputs(features, labels, maps_emb, eps):
    """Pad / cast / fuse activations into the kernel layout. Done once up-front
    so the jitted forward is just the pallas_call (no per-call glue ops)."""
    n = features.shape[0]
    n_pad = (n + 15) // 16 * 16                      # bf16 sublane pack (16, 128)
    feats = features.reshape(n, -1)                  # (N, input_dim)
    gt = labels.reshape(n, -1)                       # (N, output_dim - 1)

    feats_p = jnp.pad(feats, ((0, n_pad - n), (0, FEAT_PAD - feats.shape[1]))
                      ).astype(jnp.bfloat16)                              # (n_pad, 128)
    mapsgt = jnp.concatenate(
        [maps_emb, jnp.pad(gt, ((0, 0), (0, GT_PAD - gt.shape[1])))], axis=-1)
    mapsgt_p = jnp.pad(mapsgt, ((0, n_pad - n), (0, 0))).astype(jnp.bfloat16)  # (n_pad, 640)
    # eps zero-padded past Z_DIM keeps padded z lanes exactly 0 inside the kernel.
    eps_p = jnp.pad(eps.astype(jnp.float32),
                    ((0, 0), (0, n_pad - n), (0, LANE - Z_DIM)))
    eps_flat = eps_p.reshape(NUM_MODES * n_pad, LANE)                     # (3*n_pad, 128)
    return feats_p, mapsgt_p, eps_flat, n


# -------------------------- forward pass --------------------------------------
@functools.partial(jax.jit, static_argnames=("n",))
def vae_gnn_prior_forward(packed, feats_p, mapsgt_p, eps_p, *, n):
    n_pad = feats_p.shape[0]

    args = (feats_p, mapsgt_p, eps_p,
            packed["w_emb"], packed["b_emb"],
            packed["we_mapsgt"], packed["we_hemb"], packed["b_e0"],
            packed["w_mulv"], packed["b_mulv"],
            packed["wd_maps"], packed["wd_hemb"], packed["wd_z"], packed["b_d0"],
            packed["w_d1"], packed["b_d1"])

    flops = (
        2 * n_pad * (
            FEAT_PAD * HIDDEN_DIM
            + MAPSGT_PAD * ENC_HID_PAD
            + HIDDEN_DIM * ENC_HID_PAD
            + ENC_HID_PAD * 2 * LANE
            + MAP_DIM * DEC_HID_PAD
            + HIDDEN_DIM * DEC_HID_PAD)
        + 2 * NUM_MODES * n_pad * (LANE * DEC_HID_PAD + DEC_HID_PAD * LANE))
    out_bytes = (n_pad * 2 * LANE + NUM_MODES * n_pad * LANE + n_pad * LANE) * 4
    bytes_accessed = sum(int(a.size) * a.dtype.itemsize for a in args) + out_bytes
    cost = pl.CostEstimate(flops=flops, transcendentals=n_pad * LANE,
                           bytes_accessed=bytes_accessed)

    # TODO(synk): for large node counts, add a node-axis grid with
    #             dimension_semantics=("parallel",) (essential on v7x's 2 TCs),
    #             constant index_maps (lambda i: (0, 0)) on every weight so the
    #             ~2 MB of weights stay VMEM-resident across tiles, and node
    #             tiles of 128 (v5e) / 256 (v6e, v7x). At N=8 a single
    #             VMEM-resident program wins.
    mulv, pred_flat, z_slab = pl.pallas_call(
        _vae_fused_kernel,
        out_shape=(
            jax.ShapeDtypeStruct((n_pad, 2 * LANE), jnp.float32),          # mu||log_var
            jax.ShapeDtypeStruct((NUM_MODES * n_pad, LANE), jnp.float32),  # pred slab
            jax.ShapeDtypeStruct((n_pad, LANE), jnp.float32),              # z_sample slab
        ),
        in_specs=[_VMEM()] * len(args),
        out_specs=(_VMEM(), _VMEM(), _VMEM()),
        cost_estimate=cost,
        compiler_params=pltpu.CompilerParams(vmem_limit_bytes=16 * 1024 * 1024),
    )(*args)

    mu = mulv[:n, :Z_DIM]
    log_var = mulv[:n, LANE:LANE + Z_DIM]
    pred = pred_flat.reshape(NUM_MODES, n_pad, LANE)[:, :n, :OUTPUT_DIM]   # (3, N, 12)
    z_sample = z_slab[:n, :Z_DIM]                                          # last mode's sample
    mu_prior = log_var_prior = 0.1
    return pred[:, :, :-1], pred[:, :, -1], (mu, log_var, mu_prior, log_var_prior), z_sample


# -------------------------- demo ---------------------------------------------
if __name__ == "__main__":
    key = jax.random.PRNGKey(0)
    k_par, k_feat, k_lab, k_map, k_eps = jax.random.split(key, 5)

    N = 8  # number of graph nodes
    params = init_params(k_par)
    packed = pack_params(params)

    features = jax.random.normal(k_feat, (N, 12, 2), jnp.float32)        # flattens to (N, 24)
    labels = jax.random.normal(k_lab, (N, OUTPUT_DIM - 1), jnp.float32)  # gt -> (N, 11)
    maps_emb = jax.random.uniform(k_map, (N, MAP_DIM), jnp.float32)      # torch.rand(N, 512)
    eps = jax.random.normal(k_eps, (NUM_MODES, N, Z_DIM), jnp.float32)   # randn_like per mode

    feats_p, mapsgt_p, eps_flat, n_real = prepare_inputs(features, labels, maps_emb, eps)

    pred_xy, pred_last, dists, z_sample = vae_gnn_prior_forward(
        packed, feats_p, mapsgt_p, eps_flat, n=n_real)
    jax.block_until_ready((pred_xy, pred_last, dists[0], dists[1], z_sample))

    assert pred_xy.shape == (NUM_MODES, N, OUTPUT_DIM - 1)
    assert pred_last.shape == (NUM_MODES, N)
    assert dists[0].shape == (N, Z_DIM) and dists[1].shape == (N, Z_DIM)
    assert z_sample.shape == (N, Z_DIM)
    assert bool(jnp.all(jnp.isfinite(pred_xy)))
    assert bool(jnp.all(jnp.isfinite(z_sample)))
    print("KERNEL_OK")
</pallas_src>

<mosaic_0001>
module attributes {stable_mosaic.version = 11 : i64} {
  func.func @_vae_fused_kernel(%arg0: memref<16x128xbf16, #tpu.memory_space<vmem>>, %arg1: memref<16x640xbf16, #tpu.memory_space<vmem>>, %arg2: memref<48x128xf32, #tpu.memory_space<vmem>>, %arg3: memref<128x128xbf16, #tpu.memory_space<vmem>>, %arg4: memref<1x128xf32, #tpu.memory_space<vmem>>, %arg5: memref<640x384xbf16, #tpu.memory_space<vmem>>, %arg6: memref<128x384xbf16, #tpu.memory_space<vmem>>, %arg7: memref<1x384xf32, #tpu.memory_space<vmem>>, %arg8: memref<384x256xbf16, #tpu.memory_space<vmem>>, %arg9: memref<1x256xf32, #tpu.memory_space<vmem>>, %arg10: memref<512x768xbf16, #tpu.memory_space<vmem>>, %arg11: memref<128x768xbf16, #tpu.memory_space<vmem>>, %arg12: memref<128x768xbf16, #tpu.memory_space<vmem>>, %arg13: memref<1x768xf32, #tpu.memory_space<vmem>>, %arg14: memref<768x128xbf16, #tpu.memory_space<vmem>>, %arg15: memref<1x128xf32, #tpu.memory_space<vmem>>, %arg16: memref<16x256xf32, #tpu.memory_space<vmem>>, %arg17: memref<48x128xf32, #tpu.memory_space<vmem>>, %arg18: memref<16x128xf32, #tpu.memory_space<vmem>>) attributes {dimension_semantics = [], scalar_prefetch = 0 : i64, scratch_operands = 0 : i64, tpu.core_type = #tpu.core_type<tc>} {
    %c0 = arith.constant 0 : index
    %c0_0 = arith.constant 0 : index
    %0 = vector.load %arg0[%c0, %c0_0] : memref<16x128xbf16, #tpu.memory_space<vmem>>, vector<16x128xbf16>
    %c0_1 = arith.constant 0 : index
    %c0_2 = arith.constant 0 : index
    %1 = vector.load %arg1[%c0_1, %c0_2] : memref<16x640xbf16, #tpu.memory_space<vmem>>, vector<16x640xbf16>
    %2 = vector.extract_strided_slice %1 {offsets = [0, 0], sizes = [16, 512], strides = [1, 1]} : vector<16x640xbf16> to vector<16x512xbf16>
    %c0_3 = arith.constant 0 : index
    %c0_4 = arith.constant 0 : index
    %3 = vector.load %arg2[%c0_3, %c0_4] : memref<48x128xf32, #tpu.memory_space<vmem>>, vector<48x128xf32>
    %c0_5 = arith.constant 0 : index
    %c0_6 = arith.constant 0 : index
    %4 = vector.load %arg3[%c0_5, %c0_6] : memref<128x128xbf16, #tpu.memory_space<vmem>>, vector<128x128xbf16>
    %cst = arith.constant dense<0.000000e+00> : vector<16x128xf32>
    %5 = tpu.matmul %0, %4, %cst {dimension_numbers = #tpu.dot_dimension_numbers<[1], [0], [0], [1], [0, 0, 1, 1], [], []>} : vector<16x128xbf16>, vector<128x128xbf16>, vector<16x128xf32> -> vector<16x128xf32>
    %c0_7 = arith.constant 0 : index
    %c0_8 = arith.constant 0 : index
    %6 = vector.load %arg4[%c0_7, %c0_8] : memref<1x128xf32, #tpu.memory_space<vmem>>, vector<1x128xf32>
    %7 = vector.broadcast %6 : vector<1x128xf32> to vector<16x128xf32>
    %8 = arith.addf %5, %7 : vector<16x128xf32>
    %9 = arith.truncf %8 : vector<16x128xf32> to vector<16x128xbf16>
    %c0_9 = arith.constant 0 : index
    %c0_10 = arith.constant 0 : index
    %10 = vector.load %arg5[%c0_9, %c0_10] : memref<640x384xbf16, #tpu.memory_space<vmem>>, vector<640x384xbf16>
    %cst_11 = arith.constant dense<0.000000e+00> : vector<16x384xf32>
    %11 = tpu.matmul %1, %10, %cst_11 {dimension_numbers = #tpu.dot_dimension_numbers<[1], [0], [0], [1], [0, 0, 1, 1], [], []>} : vector<16x640xbf16>, vector<640x384xbf16>, vector<16x384xf32> -> vector<16x384xf32>
    %c0_12 = arith.constant 0 : index
    %c0_13 = arith.constant 0 : index
    %12 = vector.load %arg6[%c0_12, %c0_13] : memref<128x384xbf16, #tpu.memory_space<vmem>>, vector<128x384xbf16>
    %cst_14 = arith.constant dense<0.000000e+00> : vector<16x384xf32>
    %13 = tpu.matmul %9, %12, %cst_14 {dimension_numbers = #tpu.dot_dimension_numbers<[1], [0], [0], [1], [0, 0, 1, 1], [], []>} : vector<16x128xbf16>, vector<128x384xbf16>, vector<16x384xf32> -> vector<16x384xf32>
    %14 = arith.addf %11, %13 : vector<16x384xf32>
    %c0_15 = arith.constant 0 : index
    %c0_16 = arith.constant 0 : index
    %15 = vector.load %arg7[%c0_15, %c0_16] : memref<1x384xf32, #tpu.memory_space<vmem>>, vector<1x384xf32>
    %16 = vector.broadcast %15 : vector<1x384xf32> to vector<16x384xf32>
    %17 = arith.addf %14, %16 : vector<16x384xf32>
    %cst_17 = arith.constant 0.000000e+00 : f32
    %18 = vector.broadcast %cst_17 : f32 to vector<16x384xf32>
    %19 = arith.cmpf ogt, %17, %18 : vector<16x384xf32>
    %cst_18 = arith.constant 2.000000e-01 : f32
    %20 = vector.broadcast %cst_18 : f32 to vector<16x384xf32>
    %21 = arith.mulf %20, %17 : vector<16x384xf32>
    %22 = arith.select %19, %17, %21 : vector<16x384xi1>, vector<16x384xf32>
    %23 = arith.truncf %22 : vector<16x384xf32> to vector<16x384xbf16>
    %c0_19 = arith.constant 0 : index
    %c0_20 = arith.constant 0 : index
    %24 = vector.load %arg8[%c0_19, %c0_20] : memref<384x256xbf16, #tpu.memory_space<vmem>>, vector<384x256xbf16>
    %cst_21 = arith.constant dense<0.000000e+00> : vector<16x256xf32>
    %25 = tpu.matmul %23, %24, %cst_21 {dimension_numbers = #tpu.dot_dimension_numbers<[1], [0], [0], [1], [0, 0, 1, 1], [], []>} : vector<16x384xbf16>, vector<384x256xbf16>, vector<16x256xf32> -> vector<16x256xf32>
    %c0_22 = arith.constant 0 : index
    %c0_23 = arith.constant 0 : index
    %26 = vector.load %arg9[%c0_22, %c0_23] : memref<1x256xf32, #tpu.memory_space<vmem>>, vector<1x256xf32>
    %27 = vector.broadcast %26 : vector<1x256xf32> to vector<16x256xf32>
    %28 = arith.addf %25, %27 : vector<16x256xf32>
    %c0_24 = arith.constant 0 : index
    %c0_25 = arith.constant 0 : index
    %29 = vector.load %arg16[%c0_24, %c0_25] : memref<16x256xf32, #tpu.memory_space<vmem>>, vector<16x256xf32>
    tpu.vector_store %arg16[%c0_24, %c0_25], %28 {strides = array<i32>} : memref<16x256xf32, #tpu.memory_space<vmem>>, vector<16x256xf32>,
    %30 = vector.extract_strided_slice %28 {offsets = [0, 0], sizes = [16, 128], strides = [1, 1]} : vector<16x256xf32> to vector<16x128xf32>
    %31 = vector.extract_strided_slice %28 {offsets = [0, 128], sizes = [16, 128], strides = [1, 1]} : vector<16x256xf32> to vector<16x128xf32>
    %cst_26 = arith.constant 5.000000e-01 : f32
    %32 = vector.broadcast %cst_26 : f32 to vector<16x128xf32>
    %33 = arith.mulf %32, %31 : vector<16x128xf32>
    %cst_27 = arith.constant 0.000000e+00 : f32
    %34 = vector.broadcast %cst_27 : f32 to vector<16x128xf32>
    %35 = arith.cmpf ogt, %33, %34 : vector<16x128xf32>
    %cst_28 = arith.constant 0.000000e+00 : f32
    %36 = vector.broadcast %cst_28 : f32 to vector<16x128xf32>
    %37 = arith.minimumf %33, %36 : vector<16x128xf32>
    %38 = math.exp %37 : vector<16x128xf32>
    %cst_29 = arith.constant 1.000000e+00 : f32
    %39 = vector.broadcast %cst_29 : f32 to vector<16x128xf32>
    %40 = arith.subf %38, %39 : vector<16x128xf32>
    %41 = arith.select %35, %33, %40 : vector<16x128xi1>, vector<16x128xf32>
    %cst_30 = arith.constant 1.000000e+00 : f32
    %42 = vector.broadcast %cst_30 : f32 to vector<16x128xf32>
    %43 = arith.addf %41, %42 : vector<16x128xf32>
    %cst_31 = arith.constant 9.99999974E-6 : f32
    %44 = vector.broadcast %cst_31 : f32 to vector<16x128xf32>
    %45 = arith.addf %43, %44 : vector<16x128xf32>
    %c0_32 = arith.constant 0 : index
    %c0_33 = arith.constant 0 : index
    %46 = vector.load %arg10[%c0_32, %c0_33] : memref<512x768xbf16, #tpu.memory_space<vmem>>, vector<512x768xbf16>
    %cst_34 = arith.constant dense<0.000000e+00> : vector<16x768xf32>
    %47 = tpu.matmul %2, %46, %cst_34 {dimension_numbers = #tpu.dot_dimension_numbers<[1], [0], [0], [1], [0, 0, 1, 1], [], []>} : vector<16x512xbf16>, vector<512x768xbf16>, vector<16x768xf32> -> vector<16x768xf32>
    %c0_35 = arith.constant 0 : index
    %c0_36 = arith.constant 0 : index
    %48 = vector.load %arg11[%c0_35, %c0_36] : memref<128x768xbf16, #tpu.memory_space<vmem>>, vector<128x768xbf16>
    %cst_37 = arith.constant dense<0.000000e+00> : vector<16x768xf32>
    %49 = tpu.matmul %9, %48, %cst_37 {dimension_numbers = #tpu.dot_dimension_numbers<[1], [0], [0], [1], [0, 0, 1, 1], [], []>} : vector<16x128xbf16>, vector<128x768xbf16>, vector<16x768xf32> -> vector<16x768xf32>
    %50 = arith.addf %47, %49 : vector<16x768xf32>
    %c0_38 = arith.constant 0 : index
    %c0_39 = arith.constant 0 : index
    %51 = vector.load %arg13[%c0_38, %c0_39] : memref<1x768xf32, #tpu.memory_space<vmem>>, vector<1x768xf32>
    %52 = vector.broadcast %51 : vector<1x768xf32> to vector<16x768xf32>
    %53 = arith.addf %50, %52 : vector<16x768xf32>
    %54 = tpu.concatenate %30, %30, %30 in 0 : vector<16x128xf32>, vector<16x128xf32>, vector<16x128xf32> -> vector<48x128xf32>
    %55 = tpu.concatenate %45, %45, %45 in 0 : vector<16x128xf32>, vector<16x128xf32>, vector<16x128xf32> -> vector<48x128xf32>
    %56 = arith.mulf %55, %3 : vector<48x128xf32>
    %57 = arith.addf %54, %56 : vector<48x128xf32>
    %58 = arith.truncf %57 : vector<48x128xf32> to vector<48x128xbf16>
    %c0_40 = arith.constant 0 : index
    %c0_41 = arith.constant 0 : index
    %59 = vector.load %arg12[%c0_40, %c0_41] : memref<128x768xbf16, #tpu.memory_space<vmem>>, vector<128x768xbf16>
    %cst_42 = arith.constant dense<0.000000e+00> : vector<48x768xf32>
    %60 = tpu.matmul %58, %59, %cst_42 {dimension_numbers = #tpu.dot_dimension_numbers<[1], [0], [0], [1], [0, 0, 1, 1], [], []>} : vector<48x128xbf16>, vector<128x768xbf16>, vector<48x768xf32> -> vector<48x768xf32>
    %61 = tpu.concatenate %53, %53, %53 in 0 : vector<16x768xf32>, vector<16x768xf32>, vector<16x768xf32> -> vector<48x768xf32>
    %62 = arith.addf %60, %61 : vector<48x768xf32>
    %cst_43 = arith.constant 0.000000e+00 : f32
    %63 = vector.broadcast %cst_43 : f32 to vector<48x768xf32>
    %64 = arith.cmpf ogt, %62, %63 : vector<48x768xf32>
    %cst_44 = arith.constant 2.000000e-01 : f32
    %65 = vector.broadcast %cst_44 : f32 to vector<48x768xf32>
    %66 = arith.mulf %65, %62 : vector<48x768xf32>
    %67 = arith.select %64, %62, %66 : vector<48x768xi1>, vector<48x768xf32>
    %68 = arith.truncf %67 : vector<48x768xf32> to vector<48x768xbf16>
    %c0_45 = arith.constant 0 : index
    %c0_46 = arith.constant 0 : index
    %69 = vector.load %arg14[%c0_45, %c0_46] : memref<768x128xbf16, #tpu.memory_space<vmem>>, vector<768x128xbf16>
    %cst_47 = arith.constant dense<0.000000e+00> : vector<48x128xf32>
    %70 = tpu.matmul %68, %69, %cst_47 {dimension_numbers = #tpu.dot_dimension_numbers<[1], [0], [0], [1], [0, 0, 1, 1], [], []>} : vector<48x768xbf16>, vector<768x128xbf16>, vector<48x128xf32> -> vector<48x128xf32>
    %c0_48 = arith.constant 0 : index
    %c0_49 = arith.constant 0 : index
    %71 = vector.load %arg15[%c0_48, %c0_49] : memref<1x128xf32, #tpu.memory_space<vmem>>, vector<1x128xf32>
    %72 = vector.broadcast %71 : vector<1x128xf32> to vector<48x128xf32>
    %73 = arith.addf %70, %72 : vector<48x128xf32>
    %c0_50 = arith.constant 0 : index
    %c0_51 = arith.constant 0 : index
    %74 = vector.load %arg17[%c0_50, %c0_51] : memref<48x128xf32, #tpu.memory_space<vmem>>, vector<48x128xf32>
    tpu.vector_store %arg17[%c0_50, %c0_51], %73 {strides = array<i32>} : memref<48x128xf32, #tpu.memory_space<vmem>>, vector<48x128xf32>,
    %75 = vector.extract_strided_slice %57 {offsets = [32, 0], sizes = [16, 128], strides = [1, 1]} : vector<48x128xf32> to vector<16x128xf32>
    %c0_52 = arith.constant 0 : index
    %c0_53 = arith.constant 0 : index
    %76 = vector.load %arg18[%c0_52, %c0_53] : memref<16x128xf32, #tpu.memory_space<vmem>>, vector<16x128xf32>
    tpu.vector_store %arg18[%c0_52, %c0_53], %75 {strides = array<i32>} : memref<16x128xf32, #tpu.memory_space<vmem>>, vector<16x128xf32>,
    return
  }
}

</mosaic_0001>

<bundles_post_ra>
// kernel: vae_gnn_prior_forward.1
= control target key start
LH: loop header
LB: loop body
LE: loop exit
PB: predicated region body
PF: predicated region fallthrough
CT: control target
= control target key end

     0   :  { %s7590_s0 = inlined_call_operand.vmem [shape: bf16[16,128], index: 0, kind: input, shape index: {}]   ;;  %s7591_s1 = inlined_call_operand.hbm [shape: bf16[16,640], index: 1, kind: input, shape index: {}]   ;;  %s7592_s2 = inlined_call_operand.hbm [shape: f32[48,128], index: 2, kind: input, shape index: {}]   ;;  %s7593_s3 = inlined_call_operand.hbm [shape: bf16[128,128], index: 3, kind: input, shape index: {}]   ;;  %s7594_s4 = inlined_call_operand.vmem [shape: f32[1,128], index: 4, kind: input, shape index: {}]   ;;  %s7595_s5 = inlined_call_operand.hbm [shape: bf16[640,384], index: 5, kind: input, shape index: {}]   ;;  %s7596_s6 = inlined_call_operand.hbm [shape: bf16[128,384], index: 6, kind: input, shape index: {}]   ;;  %s7597_s7 = inlined_call_operand.vmem [shape: f32[1,384], index: 7, kind: input, shape index: {}]   ;;  %s7598_s8 = inlined_call_operand.hbm [shape: bf16[384,256], index: 8, kind: input, shape index: {}]   ;;  %s7599_s9 = inlined_call_operand.vmem [shape: f32[1,256], index: 9, kind: input, shape index: {}]   ;;  %s7600_s10 = inlined_call_operand.hbm [shape: bf16[512,768], index: 10, kind: input, shape index: {}]   ;;  %s7601_s11 = inlined_call_operand.hbm [shape: bf16[128,768], index: 11, kind: input, shape index: {}]   ;;  %s7602_s12 = inlined_call_operand.hbm [shape: bf16[128,768], index: 12, kind: input, shape index: {}]   ;;  %s7603_s13 = inlined_call_operand.hbm [shape: f32[1,768], index: 13, kind: input, shape index: {}]   ;;  %s7604_s14 = inlined_call_operand.hbm [shape: bf16[768,128], index: 14, kind: input, shape index: {}]   ;;  %s7605_s15 = inlined_call_operand.hbm [shape: f32[1,128], index: 15, kind: input, shape index: {}]   ;;  %s7606_s16 = inlined_call_operand.vmem [shape: f32[16,256], index: 16, kind: output, shape index: {0}]   ;;  %s7607_s17 = inlined_call_operand.vmem [shape: f32[48,128], index: 17, kind: output, shape index: {1}]   ;;  %s7608_s18 = inlined_call_operand.vmem [shape: f32[16,128], index: 18, kind: output, shape index: {2}]  }
   0x1   :  { %7609 = sst [smem:[#allocation28_spill]] %s7590_s0 }
   0x2   :  { %7610 = sst [smem:[#allocation29_spill]] %s7591_s1 }
   0x3   :  { %7611 = sst [smem:[#allocation30_spill]] %s7592_s2 }
   0x4   :  { %24 = vsyncpa [#allocation3], 0 }
   0x5   :  { %25 = vsyncpa [#allocation5], 0 }
   0x6   :  { %26 = vsyncpa [#allocation8], 0 }
   0x7   :  { %27 = vsyncpa [#allocation11], 0 }
   0x8   :  { %28 = vsyncpa [#allocation14], 0 }
   0x9   :  { %29 = vsyncpa [#allocation17], 0 }
   0xa   :  { %30 = vsyncpa [#allocation20], 0  ;;  %s7043_s27 = smov [#allocation4]  }
   0xb   :  { %s50_s28 = sshll.u32 %s7043_s27, 4  ;;  %s51_s28 = int_to_ptr.vmem [resolvable:$true] %s50_s28 }
   0xc   :  { %s6797_s29 = scalar_lea.vmem %s51_s28, 768  ;;  %p6802_p1 = scmp.lt.s32.totalorder %s51_s28, %s51_s28 }
   0xd   :  { %p6798_p0 = scmp.ne.s32.totalorder %s51_s28, %s6797_s29  ;;  %p6803_p2 = scmp.lt.s32.totalorder %s6797_s29, %s6797_s29 }
   0xf   :  { %p6804_p3 = por %p6803_p2, %p6802_p1 }
  0x11   :  { %p6805_p4 = pnand %p6804_p3, %p6798_p0 }
  0x13   :  { %6808 = shalt.err (!%p6805_p4)
}
  0x14   :  { %s7044_s30 = smov 128   ;;  %s7045_s0 = smov 8  }
  0x15   :  { %s7612_s20 = sld [smem:[#allocation30_spill]]  ;;  %s7046_s21 = smov [#allocation7]  }
  0x16   :  { %s76_s22 = sshll.u32 %s7046_s21, 4  ;;  %s77_s22 = int_to_ptr.vmem [resolvable:$true] %s76_s22 }
  0x17   :  { %s6817_s2 = scalar_lea.vmem %s77_s22, 15360  ;;  %p6822_p6 = scmp.lt.s32.totalorder %s77_s22, %s77_s22 }
  0x18   :  { %p6818_p5 = scmp.ne.s32.totalorder %s77_s22, %s6817_s2  ;;  %p6823_p7 = scmp.lt.s32.totalorder %s6817_s2, %s6817_s2 }
  0x1a   :  { %p6824_p8 = por %p6823_p7, %p6822_p6 }
  0x1b   :  { %56 = dma.hbm_to_vmem [thread:$0]  %s7612_s20, 768, %s51_s28, [#allocation5], %s7044_s30, %s7044_s30, %s7045_s0  }
  0x1c   :  { %p6825_p9 = pnand %p6824_p8, %p6818_p5 }
  0x1e   :  { %6828 = shalt.err (!%p6825_p9)
}
  0x1f   :  { %s7047_s23 = smov 192   ;;  %s7048_s24 = smov 12  }
  0x20   :  { %82 = dma.hbm_to_vmem [thread:$0]  %s7595_s5, 15360, %s77_s22, [#allocation8], %s7047_s23, %s7047_s23, %s7048_s24  }
  0x21   :  { %s7049_s27 = smov [#allocation10]  }
  0x22   :  { %s102_s28 = sshll.u32 %s7049_s27, 4  ;;  %s103_s28 = int_to_ptr.vmem [resolvable:$true] %s102_s28 }
  0x23   :  { %s6837_s29 = scalar_lea.vmem %s103_s28, 6144  ;;  %p6842_p11 = scmp.lt.s32.totalorder %s103_s28, %s103_s28 }
  0x24   :  { %p6838_p10 = scmp.ne.s32.totalorder %s103_s28, %s6837_s29  ;;  %p6843_p12 = scmp.lt.s32.totalorder %s6837_s29, %s6837_s29 }
  0x26   :  { %p6844_p13 = por %p6843_p12, %p6842_p11 }
  0x28   :  { %p6845_p0 = pnand %p6844_p13, %p6838_p10 }
  0x2a   :  { %6848 = shalt.err (!%p6845_p0)
}
  0x2b   :  { %108 = dma.hbm_to_vmem [thread:$0]  %s7598_s8, 6144, %s103_s28, [#allocation11], %s7044_s30, %s7044_s30, %s7045_s0  }
  0x2c   :  { %s7050_s20 = smov [#allocation13]   ;;  %s7051_s2 = smov [#allocation16]  }
  0x2d   :  { %s128_s21 = sshll.u32 %s7050_s20, 4  ;;  %s153_s25 = sshll.u32 %s7051_s2, 4  ;;  %s129_s21 = int_to_ptr.vmem [resolvable:$true] %s128_s21  ;;  %s154_s25 = int_to_ptr.vmem [resolvable:$true] %s153_s25 }
  0x2e   :  { %s6857_s5 = scalar_lea.vmem %s129_s21, 6144  ;;  %p6862_p2 = scmp.lt.s32.totalorder %s129_s21, %s129_s21 }
  0x2f   :  { %p6858_p1 = scmp.ne.s32.totalorder %s129_s21, %s6857_s5  ;;  %p6863_p3 = scmp.lt.s32.totalorder %s6857_s5, %s6857_s5 }
  0x31   :  { %p6864_p4 = por %p6863_p3, %p6862_p2 }
  0x33   :  { %p6865_p5 = pnand %p6864_p4, %p6858_p1 }
  0x35   :  { %6868 = shalt.err (!%p6865_p5)
}
  0x36   :  { %s7052_s22 = smov 384   ;;  %s7053_s26 = smov 24  }
  0x37   :  { %134 = dma.hbm_to_vmem [thread:$0]  %s7601_s11, 6144, %s129_s21, [#allocation14], %s7052_s22, %s7052_s22, %s7053_s26  }
  0x38   :  { %s6877_s8 = scalar_lea.vmem %s154_s25, 96  ;;  %p6882_p7 = scmp.lt.s32.totalorder %s154_s25, %s154_s25 }
  0x39   :  { %p6878_p6 = scmp.ne.s32.totalorder %s154_s25, %s6877_s8  ;;  %p6883_p8 = scmp.lt.s32.totalorder %s6877_s8, %s6877_s8 }
  0x3b   :  { %p6884_p9 = por %p6883_p8, %p6882_p7 }
  0x3d   :  { %p6885_p10 = pnand %p6884_p9, %p6878_p6 }
  0x3f   :  { %6888 = shalt.err (!%p6885_p10)
}
  0x40   :  { %156 = dma.hbm_to_vmem [thread:$0]  %s7603_s13, 96, %s154_s25, [#allocation17]  }
  0x41   :  { %s7054_s28 = smov [#allocation2]  }
  0x42   :  { %s38_s19 = sshll.u32 %s7054_s28, 4  ;;  %s39_s19 = int_to_ptr.vmem [resolvable:$true] %s38_s19 }
  0x43   :  { %s6897_s1 = scalar_lea.vmem %s39_s19, 640  ;;  %p6902_p12 = scmp.lt.s32.totalorder %s39_s19, %s39_s19 }
  0x44   :  { %p6898_p11 = scmp.ne.s32.totalorder %s39_s19, %s6897_s1  ;;  %p6903_p13 = scmp.lt.s32.totalorder %s6897_s1, %s6897_s1 }
  0x46   :  { %p6904_p0 = por %p6903_p13, %p6902_p12 }
  0x48   :  { %p6905_p1 = pnand %p6904_p0, %p6898_p11 }
  0x4a   :  { %6908 = shalt.err (!%p6905_p1)
}
  0x4b   :  { %s7055_s11 = smov 320   ;;  %s7056_s20 = smov 20  }
  0x4c   :  { %s7613_s5 = sld [smem:[#allocation29_spill]]  ;;  %s7057_s27 = smov [#allocation6]  }
  0x4d   :  { %s62_s29 = sshll.u32 %s7057_s27, 4  ;;  %s63_s29 = int_to_ptr.vmem [resolvable:$true] %s62_s29 }
  0x4e   :  { %s6917_s13 = scalar_lea.vmem %s63_s29, 1024  ;;  %p6922_p3 = scmp.lt.s32.totalorder %s63_s29, %s63_s29 }
  0x4f   :  { %p6918_p2 = scmp.ne.s32.totalorder %s63_s29, %s6917_s13  ;;  %p6923_p4 = scmp.lt.s32.totalorder %s6917_s13, %s6917_s13 }
  0x51   :  { %p6924_p5 = por %p6923_p4, %p6922_p3 }
  0x52   :  { %44 = dma.hbm_to_vmem [thread:$0]  %s7613_s5, 640, %s39_s19, [#allocation3], %s7055_s11, %s7055_s11, %s7056_s20  }
  0x53   :  { %p6925_p6 = pnand %p6924_p5, %p6918_p2 }
  0x55   :  { %6928 = shalt.err (!%p6925_p6)
}
  0x56   :  { %s7058_s25 = smov 64   ;;  %s7059_s8 = smov 4  }
  0x57   :  { %68 = dma.hbm_to_vmem [thread:$0]  %s7593_s3, 1024, %s63_s29, [#allocation5], %s7058_s25, %s7058_s25, %s7059_s8  }
  0x58   :  { %s7060_s28 = smov [#allocation9]   ;;  %s7061_s1 = smov [#allocation12]  }
  0x59   :  { %s88_s19 = sshll.u32 %s7060_s28, 4  ;;  %s116_s11 = sshll.u32 %s7061_s1, 4  ;;  %s89_s19 = int_to_ptr.vmem [resolvable:$true] %s88_s19  ;;  %s117_s11 = int_to_ptr.vmem [resolvable:$true] %s116_s11 }
  0x5a   :  { %s6937_s20 = scalar_lea.vmem %s89_s19, 3072  ;;  %p6942_p8 = scmp.lt.s32.totalorder %s89_s19, %s89_s19 }
  0x5b   :  { %p6938_p7 = scmp.ne.s32.totalorder %s89_s19, %s6937_s20  ;;  %p6943_p9 = scmp.lt.s32.totalorder %s6937_s20, %s6937_s20 }
  0x5d   :  { %p6944_p10 = por %p6943_p9, %p6942_p8 }
  0x5f   :  { %p6945_p11 = pnand %p6944_p10, %p6938_p7 }
  0x61   :  { %6948 = shalt.err (!%p6945_p11)
}
  0x62   :  { %94 = dma.hbm_to_vmem [thread:$0]  %s7596_s6, 3072, %s89_s19, [#allocation8], %s7047_s23, %s7047_s23, %s7048_s24  }
  0x63   :  { %s6957_s3 = scalar_lea.vmem %s117_s11, 24576  ;;  %p6962_p13 = scmp.lt.s32.totalorder %s117_s11, %s117_s11 }
  0x64   :  { %p6958_p12 = scmp.ne.s32.totalorder %s117_s11, %s6957_s3  ;;  %p6963_p0 = scmp.lt.s32.totalorder %s6957_s3, %s6957_s3 }
  0x66   :  { %p6964_p1 = por %p6963_p0, %p6962_p13 }
  0x68   :  { %p6965_p2 = pnand %p6964_p1, %p6958_p12 }
  0x6a   :  { %6968 = shalt.err (!%p6965_p2)
}
  0x6b   :  { %122 = dma.hbm_to_vmem [thread:$0]  %s7600_s10, 24576, %s117_s11, [#allocation11], %s7052_s22, %s7052_s22, %s7053_s26  }
  0x6c   :  { %s7062_s29 = smov [#allocation15]   ;;  %s7063_s30 = smov [#allocation18]  }
  0x6d   :  { %s140_s13 = sshll.u32 %s7062_s29, 4  ;;  %s162_s6 = sshll.u32 %s7063_s30, 4  ;;  %s141_s13 = int_to_ptr.vmem [resolvable:$true] %s140_s13  ;;  %s163_s6 = int_to_ptr.vmem [resolvable:$true] %s162_s6 }
  0x6e   :  { %s6977_s23 = scalar_lea.vmem %s141_s13, 6144  ;;  %p6982_p4 = scmp.lt.s32.totalorder %s141_s13, %s141_s13 }
  0x6f   :  { %p6978_p3 = scmp.ne.s32.totalorder %s141_s13, %s6977_s23  ;;  %p6983_p5 = scmp.lt.s32.totalorder %s6977_s23, %s6977_s23 }
  0x71   :  { %p6984_p6 = por %p6983_p5, %p6982_p4 }
  0x73   :  { %p6985_p7 = pnand %p6984_p6, %p6978_p3 }
  0x75   :  { %6988 = shalt.err (!%p6985_p7)
}
  0x76   :  { %146 = dma.hbm_to_vmem [thread:$0]  %s7602_s12, 6144, %s141_s13, [#allocation14], %s7052_s22, %s7052_s22, %s7053_s26  }
  0x77   :  { %s6997_s10 = scalar_lea.vmem %s163_s6, 6144  ;;  %p7002_p9 = scmp.lt.s32.totalorder %s163_s6, %s163_s6 }
  0x78   :  { %p6998_p8 = scmp.ne.s32.totalorder %s163_s6, %s6997_s10  ;;  %p7003_p10 = scmp.lt.s32.totalorder %s6997_s10, %s6997_s10 }
  0x7a   :  { %p7004_p11 = por %p7003_p10, %p7002_p9 }
  0x7c   :  { %p7005_p12 = pnand %p7004_p11, %p6998_p8 }
  0x7e   :  { %7008 = shalt.err (!%p7005_p12)
}
  0x7f   :  { %168 = dma.hbm_to_vmem [thread:$0]  %s7604_s14, 6144, %s163_s6, [#allocation17], %s7058_s25, %s7058_s25, %s7059_s8  }
  0x80   :  { %s7064_s1 = smov [#allocation19]  }
  0x81   :  { %s175_s11 = sshll.u32 %s7064_s1, 4  ;;  %s176_s11 = int_to_ptr.vmem [resolvable:$true] %s175_s11 }
  0x82   :  { %s7017_s20 = scalar_lea.vmem %s176_s11, 16  ;;  %s7021_s12 = scalar_lea.vmem %s176_s11, 32 }
  0x83   :  { %p7018_p13 = scmp.ne.s32.totalorder %s176_s11, %s7017_s20  ;;  %p7022_p0 = scmp.lt.s32.totalorder %s176_s11, %s176_s11 }
  0x84   :  { %p7023_p1 = scmp.lt.s32.totalorder %s7021_s12, %s7017_s20 }
  0x86   :  { %p7024_p2 = por %p7023_p1, %p7022_p0 }
  0x88   :  { %p7025_p3 = pnand %p7024_p2, %p7018_p13 }
  0x8a   :  { %7028 = shalt.err (!%p7025_p3)
}
  0x8b   :  { %178 = dma.hbm_to_vmem [thread:$0]  %s7605_s15, 16, %s176_s11, [#allocation20]  }
  0x8c   :  { %7029 = dma.done.wait [#allocation3], 640  }
  0x8d   :  { %7030 = vsyncadd [#allocation3], 4294966656 }
  0x8e   :  { %7031 = dma.done.wait [#allocation5], 1792  }
  0x8f   :  { %7032 = vsyncadd [#allocation5], 4294965504 }
  0x90   :  { %7033 = dma.done.wait [#allocation8], 18432  }
  0x91   :  { %7034 = vsyncadd [#allocation8], 4294948864 }
  0x92   :  { %7035 = dma.done.wait [#allocation11], 30720  }
  0x93   :  { %7036 = vsyncadd [#allocation11], 4294936576 }
  0x94   :  { %7037 = dma.done.wait [#allocation14], 12288  }
  0x95   :  { %7038 = vsyncadd [#allocation14], 4294955008 }
  0x96   :  { %7039 = dma.done.wait [#allocation17], 6240  }
  0x97   :  { %7040 = vsyncadd [#allocation17], 4294961056 }
  0x98   :  { %7041 = dma.done.wait [#allocation20], 16  }
  0x99   :  { %7042 = vsyncadd [#allocation20], 4294967280  ;;  %v7065_v0 = vmov 0.0   ;;  %vm7066_vm0 = vmmov 0   ;;  %v6021_v1 = vld [vmem:[#allocation6 + $0x38] sm:$0xff]   ;;  %v6022_v2 = vld [vmem:[#allocation6 + $0x30] sm:$0xff]  }
  0x9a   :  { %5920 = vmatprep.subr.bf16.mxu0 %v7065_v0  ;;  %5936 = vmatprep.mubr.msk.bf16.mxu0 %vm7066_vm0, %v7065_v0  ;;  %v6023_v3 = vld [vmem:[#allocation6 + $0x28] sm:$0xff]   ;;  %v6024_v4 = vld [vmem:[#allocation6 + $0x20] sm:$0xff]   ;;  %v6036_v8 = vld [vmem:[#allocation9 + $0x90] ss:$12 sps:$4 sm:$0xff]   ;;  %s7614_s25 = sld [smem:[#allocation28_spill]]  ;;  %v7067_v36 = vmov 0  }
  0x9b   :  { %5921 = vmatpush3.bf16.msra.mxu0 %v6021_v1  ;;  %v6030_v5 = vld [vmem:[#allocation9 + $0xac] ss:$12 sps:$4 sm:$0xff]   ;;  %v6032_v6 = vld [vmem:[#allocation9 + $0xa8] ss:$12 sps:$4 sm:$0xff]   ;;  %v6042_v12 = vld [vmem:[#allocation9 + $0x64] ss:$12 sps:$4 sm:$0xff]   ;;  %701 = vmatprep.mubr.bf16.mxu1 %v7067_v36 }
  0x9c   :  { %5922 = vmatprep.subr.bf16.mxu0 %v7065_v0  ;;  %669 = vmatprep.subr.bf16.mxu1 %v6030_v5  ;;  %v6034_v7 = vld [vmem:[#allocation9 + $0x94] ss:$12 sps:$4 sm:$0xff]   ;;  %v6025_v9 = vld [vmem:[#allocation6 + $0x18] sm:$0xff]   ;;  %v6027_v15 = vld [vmem:[#allocation6 + $0x8] sm:$0xff]  }
  0x9d   :  { %670 = vmatpush1.bf16.msra.mxu1 %v6032_v6  ;;  %v6038_v10 = vld [vmem:[#allocation9 + $0x7c] ss:$12 sps:$4 sm:$0xff]   ;;  %v6040_v11 = vld [vmem:[#allocation9 + $0x78] ss:$12 sps:$4 sm:$0xff]   ;;  %v6026_v13 = vld [vmem:[#allocation6 + $0x10] sm:$0xff]  }
  0x9e   :  { %671 = vmatprep.subr.bf16.mxu1 %v6034_v7  ;;  %v6044_v14 = vld [vmem:[#allocation9 + $0x60] ss:$12 sps:$4 sm:$0xff]   ;;  %v6048_v17 = vld [vmem:[#allocation9 + $0x48] ss:$12 sps:$4 sm:$0xff]   ;;  %v6052_v20 = vld [vmem:[#allocation9 + $0x30] ss:$12 sps:$4 sm:$0xff]  }
  0x9f   :  { %5923 = vmatpush3.bf16.msra.mxu0 %v6022_v2  ;;  %v6046_v16 = vld [vmem:[#allocation9 + $0x4c] ss:$12 sps:$4 sm:$0xff]   ;;  %v6050_v18 = vld [vmem:[#allocation9 + $0x34] ss:$12 sps:$4 sm:$0xff]   ;;  %v6033_v22 = vld [vmem:[#allocation9 + $0xb0] ss:$12 sps:$4 sm:$0xff]  }
  0xa0   :  { %5924 = vmatprep.subr.bf16.mxu0 %v7065_v0  ;;  %v6028_v19 = vld [vmem:[#allocation6] sm:$0xff]   ;;  %v6029_v21 = vld [vmem:[%s7614_s25] sm:$0xff]   ;;  %v6049_v26 = vld [vmem:[#allocation9 + $0x50] ss:$12 sps:$4 sm:$0xff]  }
  0xa1   :  { %672 = vmatpush1.bf16.msra.mxu1 %v6036_v8  ;;  %v6037_v23 = vld [vmem:[#allocation9 + $0x98] ss:$12 sps:$4 sm:$0xff]   ;;  %v6041_v24 = vld [vmem:[#allocation9 + $0x80] ss:$12 sps:$4 sm:$0xff]   ;;  %v6045_v25 = vld [vmem:[#allocation9 + $0x68] ss:$12 sps:$4 sm:$0xff]  }
  0xa2   :  { %673 = vmatprep.subr.bf16.mxu1 %v6038_v10  ;;  %v6053_v27 = vld [vmem:[#allocation9 + $0x38] ss:$12 sps:$4 sm:$0xff]   ;;  %v6054_v28 = vld [vmem:[#allocation9 + $0x1c] ss:$12 sps:$4 sm:$0xff]   ;;  %v6057_v30 = vld [vmem:[#allocation9 + $0x20] ss:$12 sps:$4 sm:$0xff]  }
  0xa3   :  { %5925 = vmatpush3.bf16.msra.mxu0 %v6023_v3  ;;  %v6056_v29 = vld [vmem:[#allocation9 + $0x18] ss:$12 sps:$4 sm:$0xff]   ;;  %v6060_v32 = vld [vmem:[#allocation9] ss:$12 sps:$4 sm:$0xff]   ;;  %v6061_v33 = vld [vmem:[#allocation9 + $0x8] ss:$12 sps:$4 sm:$0xff]  }
  0xa4   :  { %5926 = vmatprep.subr.bf16.mxu0 %v7065_v0  ;;  %v6058_v31 = vld [vmem:[#allocation9 + $0x4] ss:$12 sps:$4 sm:$0xff]   ;;  %v6064_v34 = vld [vmem:[#allocation7 + $0xac] ss:$12 sps:$4 sm:$0xff]   ;;  %v5201_v38 = vld [vmem:[%s7594_s4] ss:$0 sm:$0xff] }
  0xa5   :  { %674 = vmatpush1.bf16.msra.mxu1 %v6040_v11  ;;  %v6067_v35 = vld [vmem:[#allocation7 + $0x22c] ss:$12 sps:$4 sm:$0xff]   ;;  %v6062_v41 = vld [vmem:[#allocation7 + $0xa8] ss:$12 sps:$4 sm:$0xff]   ;;  %v6068_v51 = vld [vmem:[#allocation7 + $0x90] ss:$12 sps:$4 sm:$0xff]  }
  0xa6   :  { %675 = vmatprep.subr.bf16.mxu1 %v6042_v12  ;;  %v6065_v42 = vld [vmem:[#allocation7 + $0x228] ss:$12 sps:$4 sm:$0xff]   ;;  %v7247_v48 = vld [vmem:[#allocation2 + $0x4] ss:$20 sps:$4 sm:$0xff]   ;;  %v6071_v52 = vld [vmem:[#allocation7 + $0x210] ss:$12 sps:$4 sm:$0xff]  }
  0xa7   :  { %5927 = vmatpush3.bf16.msra.mxu0 %v6024_v4  ;;  %v6070_v45 = vld [vmem:[#allocation7 + $0x94] ss:$12 sps:$4 sm:$0xff]   ;;  %v6076_v53 = vld [vmem:[#allocation7 + $0x7c] ss:$12 sps:$4 sm:$0xff]   ;;  %v6074_v55 = vld [vmem:[#allocation7 + $0x78] ss:$12 sps:$4 sm:$0xff]  }
  0xa8   :  { %5928 = vmatprep.subr.bf16.mxu0 %v7065_v0  ;;  %v6073_v46 = vld [vmem:[#allocation7 + $0x214] ss:$12 sps:$4 sm:$0xff]   ;;  %v6079_v54 = vld [vmem:[#allocation7 + $0x1fc] ss:$12 sps:$4 sm:$0xff]   ;;  %v6077_v56 = vld [vmem:[#allocation7 + $0x1f8] ss:$12 sps:$4 sm:$0xff]  }
  0xa9   :  { %676 = vmatpush1.bf16.msra.mxu1 %v6044_v14  ;;  %v7249_v49 = vld [vmem:[#allocation2 + $0xc] ss:$20 sps:$4 sm:$0xff]   ;;  %v6082_v57 = vld [vmem:[#allocation7 + $0x64] ss:$12 sps:$4 sm:$0xff]   ;;  %v6080_v59 = vld [vmem:[#allocation7 + $0x60] ss:$12 sps:$4 sm:$0xff]  }
  0xaa   :  { %677 = vmatprep.subr.bf16.mxu1 %v6046_v16  ;;  %v6085_v58 = vld [vmem:[#allocation7 + $0x1e4] ss:$12 sps:$4 sm:$0xff]   ;;  %v6083_v60 = vld [vmem:[#allocation7 + $0x1e0] ss:$12 sps:$4 sm:$0xff]   ;;  %v6086_v63 = vld [vmem:[#allocation7 + $0x48] ss:$12 sps:$4 sm:$0xff]  }
  0xab   :  { %5929 = vmatpush3.bf16.msra.mxu0 %v6025_v9  ;;  %v6088_v61 = vld [vmem:[#allocation7 + $0x4c] ss:$12 sps:$4 sm:$0xff]   ;;  %v6089_v1 = vld [vmem:[#allocation7 + $0x1c8] ss:$12 sps:$4 sm:$0xff]   ;;  %v6092_v4 = vld [vmem:[#allocation7 + $0x30] ss:$12 sps:$4 sm:$0xff]  }
  0xac   :  { %5930 = vmatprep.subr.bf16.mxu0 %v7065_v0  ;;  %v6091_v62 = vld [vmem:[#allocation7 + $0x1cc] ss:$12 sps:$4 sm:$0xff]   ;;  %v6094_v2 = vld [vmem:[#allocation7 + $0x34] ss:$12 sps:$4 sm:$0xff]   ;;  %v6095_v5 = vld [vmem:[#allocation7 + $0x1b0] ss:$12 sps:$4 sm:$0xff]  }
  0xad   :  { %678 = vmatpush1.bf16.msra.mxu1 %v6048_v17  ;;  %v6097_v3 = vld [vmem:[#allocation7 + $0x1b4] ss:$12 sps:$4 sm:$0xff]   ;;  %v6100_v6 = vld [vmem:[#allocation7 + $0x1c] ss:$12 sps:$4 sm:$0xff]   ;;  %v6098_v8 = vld [vmem:[#allocation7 + $0x18] ss:$12 sps:$4 sm:$0xff]  }
  0xae   :  { %679 = vmatprep.subr.bf16.mxu1 %v6050_v18  ;;  %v6103_v7 = vld [vmem:[#allocation7 + $0x19c] ss:$12 sps:$4 sm:$0xff]   ;;  %v6101_v9 = vld [vmem:[#allocation7 + $0x198] ss:$12 sps:$4 sm:$0xff]   ;;  %v6104_v12 = vld [vmem:[#allocation7] ss:$12 sps:$4 sm:$0xff]  }
  0xaf   :  { %5931 = vmatpush3.bf16.msra.mxu0 %v6026_v13  ;;  %v6106_v10 = vld [vmem:[#allocation7 + $0x4] ss:$12 sps:$4 sm:$0xff]   ;;  %v6107_v13 = vld [vmem:[#allocation7 + $0x180] ss:$12 sps:$4 sm:$0xff]   ;;  %v6110_v16 = vld [vmem:[#allocation7 + $0x168] ss:$12 sps:$4 sm:$0xff]  }
  0xb0   :  { %5932 = vmatprep.subr.bf16.mxu0 %v7065_v0  ;;  %v6109_v11 = vld [vmem:[#allocation7 + $0x184] ss:$12 sps:$4 sm:$0xff]   ;;  %v6112_v14 = vld [vmem:[#allocation7 + $0x16c] ss:$12 sps:$4 sm:$0xff]   ;;  %v6113_v17 = vld [vmem:[#allocation7 + $0x2e8] ss:$12 sps:$4 sm:$0xff]  }
  0xb1   :  { %680 = vmatpush1.bf16.msra.mxu1 %v6052_v20  ;;  %v6118_v18 = vld [vmem:[#allocation7 + $0x154] ss:$12 sps:$4 sm:$0xff]   ;;  %v6116_v20 = vld [vmem:[#allocation7 + $0x150] ss:$12 sps:$4 sm:$0xff]  }
  0xb2   :  { %681 = vmatprep.subr.bf16.mxu1 %v6054_v28  ;;  %v6128_v28 = vld [vmem:[#allocation7 + $0x120] ss:$12 sps:$4 sm:$0xff]  }
  0xb3   :  { %5933 = vmatpush3.bf16.msra.mxu0 %v6027_v15  ;;  %v6115_v15 = vld [vmem:[#allocation7 + $0x2ec] ss:$12 sps:$4 sm:$0xff]  }
  0xb4   :  { %5934 = vmatprep.subr.bf16.mxu0 %v7065_v0 }
  0xb5   :  { %682 = vmatpush1.bf16.msra.mxu1 %v6056_v29  ;;  %v6131_v29 = vld [vmem:[#allocation7 + $0x2a0] ss:$12 sps:$4 sm:$0xff]  }
  0xb6   :  { %683 = vmatprep.subr.bf16.mxu1 %v6058_v31  ;;  %v6139_v31 = vld [vmem:[#allocation7 + $0x28c] ss:$12 sps:$4 sm:$0xff]  }
  0xb7   :  { %5935 = vmatpush3.bf16.msra.mxu0 %v6028_v19  ;;  %v6121_v19 = vld [vmem:[#allocation7 + $0x2d4] ss:$12 sps:$4 sm:$0xff]  }
  0xb8   :  { %5940 = vmatprep.subr.bf16.mxu0 %v7065_v0 }
  0xb9   :  { %684 = vmatpush1.bf16.msra.mxu1 %v6060_v32  ;;  %v6134_v32 = vld [vmem:[#allocation7 + $0x108] ss:$12 sps:$4 sm:$0xff]  }
  0xba   :  { %5937 = vmatmul.mubr.bf16.vlgmr.msra.gmra.mxu0 %v6029_v21  ;;  %1419 = vmatprep.subr.bf16.mxu1 %v6064_v34  ;;  %v6119_v21 = vld [vmem:[#allocation7 + $0x2d0] ss:$12 sps:$4 sm:$0xff]   ;;  %v6142_v34 = vld [vmem:[#allocation7 + $0xf4] ss:$12 sps:$4 sm:$0xff]  }
  0xbb   :  { %5941 = vmatpush3.bf16.msra.mxu0 %v6033_v22  ;;  %5956 = vmatprep.mubr.msk.bf16.mxu0 %vm7066_vm0, %v7065_v0  ;;  %v6124_v22 = vld [vmem:[#allocation7 + $0x13c] ss:$12 sps:$4 sm:$0xff]  }
  0xbc   :  { %5942 = vmatprep.subr.bf16.mxu0 %v7065_v0 }
  0xbf   :  { %5943 = vmatpush3.bf16.msra.mxu0 %v6037_v23  ;;  %v6127_v23 = vld [vmem:[#allocation7 + $0x2bc] ss:$12 sps:$4 sm:$0xff]  }
  0xc0   :  { %5944 = vmatprep.subr.bf16.mxu0 %v7065_v0 }
  0xc3   :  { %5945 = vmatpush3.bf16.msra.mxu0 %v6041_v24  ;;  %v6122_v24 = vld [vmem:[#allocation7 + $0x138] ss:$12 sps:$4 sm:$0xff]  }
  0xc4   :  { %5946 = vmatprep.subr.bf16.mxu0 %v7065_v0 }
  0xc7   :  { %5947 = vmatpush3.bf16.msra.mxu0 %v6045_v25  ;;  %v6125_v25 = vld [vmem:[#allocation7 + $0x2b8] ss:$12 sps:$4 sm:$0xff]  }
  0xc8   :  { %5948 = vmatprep.subr.bf16.mxu0 %v7065_v0 }
  0xcb   :  { %5949 = vmatpush3.bf16.msra.mxu0 %v6049_v26  ;;  %v6130_v26 = vld [vmem:[#allocation7 + $0x124] ss:$12 sps:$4 sm:$0xff]  }
  0xcc   :  { %5950 = vmatprep.subr.bf16.mxu0 %v7065_v0 }
  0xcf   :  { %5951 = vmatpush3.bf16.msra.mxu0 %v6053_v27  ;;  %v6133_v27 = vld [vmem:[#allocation7 + $0x2a4] ss:$12 sps:$4 sm:$0xff]  }
  0xd0   :  { %5952 = vmatprep.subr.bf16.mxu0 %v7065_v0 }
  0xd3   :  { %5953 = vmatpush3.bf16.msra.mxu0 %v6057_v30  ;;  %v6136_v30 = vld [vmem:[#allocation7 + $0x10c] ss:$12 sps:$4 sm:$0xff]  }
  0xd4   :  { %5954 = vmatprep.subr.bf16.mxu0 %v7065_v0 }
  0xd7   :  { %5955 = vmatpush3.bf16.msra.mxu0 %v6061_v33  ;;  %v6137_v33 = vld [vmem:[#allocation7 + $0x288] ss:$12 sps:$4 sm:$0xff]  }
  0xd8   :  { %1462 = vmatprep.subr.bf16.mxu0 %v6067_v35  ;;  %v6145_v35 = vld [vmem:[#allocation7 + $0x274] ss:$12 sps:$4 sm:$0xff]  }
 0x17a   :  { %v341_v37 = vpop.f32.mrf.mxu0 }
 0x17b   :  { %v342_v43 = vadd.f32 %v5201_v38, %v341_v37  ;;  %v6140_v37 = vld [vmem:[#allocation7 + $0xf0] ss:$12 sps:$4 sm:$0xff]  }
 0x17c   :  { %v5938_v39 = vpop.f32.mrf.mxu0 }
 0x17d   :  { %v6148_v39 = vld [vmem:[#allocation7 + $0xdc] ss:$12 sps:$4 sm:$0xff]  }
 0x17e   :  { %v344_v40 = vpop.f32.mrf.mxu0 }
 0x17f   :  { %v345_v44 = vadd.f32 %v5201_v38, %v344_v40  ;;  %v6143_v38 = vld [vmem:[#allocation7 + $0x270] ss:$12 sps:$4 sm:$0xff]  }
 0x180   :  { %v5939_v47 = vpop.f32.mrf.mxu0  ;;  %v6151_v40 = vld [vmem:[#allocation7 + $0x25c] ss:$12 sps:$4 sm:$0xff]  }
 0x181   :  { %v7251_v50 = vpack.c.bf16 %v345_v44, %v342_v43  ;;  %v6154_v43 = vld [vmem:[#allocation7 + $0xc4] ss:$12 sps:$4 sm:$0xff]   ;;  %v6165_v47 = vld [vmem:[#allocation7 + $0x3ac] ss:$12 sps:$4 sm:$0xff]  }
 0x182   :  { %v6157_v44 = vld [vmem:[#allocation7 + $0x244] ss:$12 sps:$4 sm:$0xff]  }
 0x183   :  { %702 = vmatmul.mubr.bf16.vlgmr.msra.gmra.mxu1 %v7251_v50  ;;  %5957 = vmatmul.mubr.bf16.vlgmr.msra.gmra.mxu0 %v7251_v50 }
 0x184   :  { %1420 = vmatpush1.bf16.msra.mxu1 %v6062_v41  ;;  %1463 = vmatpush1.bf16.msra.mxu0 %v6065_v42  ;;  %v6146_v41 = vld [vmem:[#allocation7 + $0xd8] ss:$12 sps:$4 sm:$0xff]  }
 0x185   :  { %1421 = vmatprep.subr.bf16.mxu1 %v6070_v45  ;;  %1464 = vmatprep.subr.bf16.mxu0 %v6073_v46  ;;  %v6149_v42 = vld [vmem:[#allocation7 + $0x258] ss:$12 sps:$4 sm:$0xff]   ;;  %v6152_v45 = vld [vmem:[#allocation7 + $0xc0] ss:$12 sps:$4 sm:$0xff]  }
 0x186   :  { %1451 = vmatprep.mubr.bf16.mxu1 %v7247_v48  ;;  %1494 = vmatprep.mubr.bf16.mxu0 %v7249_v49  ;;  %v6155_v46 = vld [vmem:[#allocation7 + $0x240] ss:$12 sps:$4 sm:$0xff]  }
 0x188   :  { %1422 = vmatpush1.bf16.msra.mxu1 %v6068_v51  ;;  %1465 = vmatpush1.bf16.msra.mxu0 %v6071_v52  ;;  %v6166_v51 = vld [vmem:[#allocation7 + $0x170] ss:$12 sps:$4 sm:$0xff]  }
 0x189   :  { %1423 = vmatprep.subr.bf16.mxu1 %v6076_v53  ;;  %1466 = vmatprep.subr.bf16.mxu0 %v6079_v54  ;;  %v7257_v52 = vld [vmem:[#allocation2] ss:$20 sps:$4 sm:$0xff]   ;;  %v7259_v53 = vld [vmem:[#allocation2 + $0x8] ss:$20 sps:$4 sm:$0xff]  }
 0x18a   :  { %v6163_v54 = vld [vmem:[#allocation7 + $0x3a8] ss:$12 sps:$4 sm:$0xff]  }
 0x18c   :  { %1424 = vmatpush1.bf16.msra.mxu1 %v6074_v55  ;;  %1467 = vmatpush1.bf16.msra.mxu0 %v6077_v56  ;;  %v6168_v55 = vld [vmem:[#allocation7 + $0xb0] ss:$12 sps:$4 sm:$0xff]   ;;  %v6171_v56 = vld [vmem:[#allocation7 + $0x394] ss:$12 sps:$4 sm:$0xff]  }
 0x18d   :  { %1425 = vmatprep.subr.bf16.mxu1 %v6082_v57  ;;  %1468 = vmatprep.subr.bf16.mxu0 %v6085_v58  ;;  %v6172_v57 = vld [vmem:[#allocation7 + $0x158] ss:$12 sps:$4 sm:$0xff]   ;;  %v6169_v58 = vld [vmem:[#allocation7 + $0x390] ss:$12 sps:$4 sm:$0xff]  }
 0x190   :  { %1426 = vmatpush1.bf16.msra.mxu1 %v6080_v59  ;;  %1469 = vmatpush1.bf16.msra.mxu0 %v6083_v60  ;;  %v6173_v59 = vld [vmem:[#allocation7 + $0x98] ss:$12 sps:$4 sm:$0xff]   ;;  %v6176_v60 = vld [vmem:[#allocation7 + $0x37c] ss:$12 sps:$4 sm:$0xff]  }
 0x191   :  { %1427 = vmatprep.subr.bf16.mxu1 %v6088_v61  ;;  %1470 = vmatprep.subr.bf16.mxu0 %v6091_v62  ;;  %v6177_v61 = vld [vmem:[#allocation7 + $0x140] ss:$12 sps:$4 sm:$0xff]   ;;  %v6174_v62 = vld [vmem:[#allocation7 + $0x378] ss:$12 sps:$4 sm:$0xff]  }
 0x194   :  { %1428 = vmatpush1.bf16.msra.mxu1 %v6086_v63  ;;  %1471 = vmatpush1.bf16.msra.mxu0 %v6089_v1  ;;  %v6178_v63 = vld [vmem:[#allocation7 + $0x80] ss:$12 sps:$4 sm:$0xff]   ;;  %v6181_v1 = vld [vmem:[#allocation7 + $0x364] ss:$12 sps:$4 sm:$0xff]  }
 0x195   :  { %1429 = vmatprep.subr.bf16.mxu1 %v6094_v2  ;;  %1472 = vmatprep.subr.bf16.mxu0 %v6097_v3  ;;  %v6182_v2 = vld [vmem:[#allocation7 + $0x128] ss:$12 sps:$4 sm:$0xff]   ;;  %v6179_v3 = vld [vmem:[#allocation7 + $0x360] ss:$12 sps:$4 sm:$0xff]  }
 0x198   :  { %1430 = vmatpush1.bf16.msra.mxu1 %v6092_v4  ;;  %1473 = vmatpush1.bf16.msra.mxu0 %v6095_v5  ;;  %v6183_v4 = vld [vmem:[#allocation7 + $0x68] ss:$12 sps:$4 sm:$0xff]   ;;  %v6186_v5 = vld [vmem:[#allocation7 + $0x34c] ss:$12 sps:$4 sm:$0xff]  }
 0x199   :  { %1431 = vmatprep.subr.bf16.mxu1 %v6100_v6  ;;  %1474 = vmatprep.subr.bf16.mxu0 %v6103_v7  ;;  %v6187_v6 = vld [vmem:[#allocation7 + $0x110] ss:$12 sps:$4 sm:$0xff]   ;;  %v6184_v7 = vld [vmem:[#allocation7 + $0x348] ss:$12 sps:$4 sm:$0xff]  }
 0x19c   :  { %1432 = vmatpush1.bf16.msra.mxu1 %v6098_v8  ;;  %1475 = vmatpush1.bf16.msra.mxu0 %v6101_v9  ;;  %v6191_v8 = vld [vmem:[#allocation7 + $0x334] ss:$12 sps:$4 sm:$0xff]   ;;  %v6192_v9 = vld [vmem:[#allocation7 + $0xf8] ss:$12 sps:$4 sm:$0xff]  }
 0x19d   :  { %1433 = vmatprep.subr.bf16.mxu1 %v6106_v10  ;;  %1476 = vmatprep.subr.bf16.mxu0 %v6109_v11  ;;  %v6189_v10 = vld [vmem:[#allocation7 + $0x330] ss:$12 sps:$4 sm:$0xff]   ;;  %v6193_v11 = vld [vmem:[#allocation7 + $0x38] ss:$12 sps:$4 sm:$0xff]  }
 0x1a0   :  { %1434 = vmatpush1.bf16.msra.mxu1 %v6104_v12  ;;  %1477 = vmatpush1.bf16.msra.mxu0 %v6107_v13  ;;  %v6196_v12 = vld [vmem:[#allocation7 + $0x31c] ss:$12 sps:$4 sm:$0xff]   ;;  %v6197_v13 = vld [vmem:[#allocation7 + $0xe0] ss:$12 sps:$4 sm:$0xff]  }
 0x1a1   :  { %1435 = vmatprep.subr.bf16.mxu1 %v6112_v14  ;;  %1478 = vmatprep.subr.bf16.mxu0 %v6115_v15  ;;  %v6194_v14 = vld [vmem:[#allocation7 + $0x318] ss:$12 sps:$4 sm:$0xff]   ;;  %v6198_v15 = vld [vmem:[#allocation7 + $0x20] ss:$12 sps:$4 sm:$0xff]  }
 0x1a4   :  { %1436 = vmatpush2.bf16.msra.mxu1 %v6110_v16  ;;  %1479 = vmatpush2.bf16.msra.mxu0 %v6113_v17  ;;  %v6201_v16 = vld [vmem:[#allocation7 + $0x304] ss:$12 sps:$4 sm:$0xff]   ;;  %v6202_v17 = vld [vmem:[#allocation7 + $0xc8] ss:$12 sps:$4 sm:$0xff]  }
 0x1a5   :  { %1437 = vmatprep.subr.bf16.mxu1 %v6118_v18  ;;  %1480 = vmatprep.subr.bf16.mxu0 %v6121_v19  ;;  %v6199_v18 = vld [vmem:[#allocation7 + $0x300] ss:$12 sps:$4 sm:$0xff]   ;;  %v6203_v19 = vld [vmem:[#allocation7 + $0x8] ss:$12 sps:$4 sm:$0xff]  }
 0x1a8   :  { %1438 = vmatpush2.bf16.msra.mxu1 %v6116_v20  ;;  %1481 = vmatpush2.bf16.msra.mxu0 %v6119_v21  ;;  %v6205_v20 = vld [vmem:[#allocation7 + $0x2f0] ss:$12 sps:$4 sm:$0xff]   ;;  %v7265_v21 = vld [vmem:[#allocation2 + $0x10] ss:$20 sps:$4 sm:$0xff]  }
 0x1a9   :  { %1439 = vmatprep.subr.bf16.mxu1 %v6124_v22  ;;  %1482 = vmatprep.subr.bf16.mxu0 %v6127_v23  ;;  %v6206_v22 = vld [vmem:[#allocation7 + $0x230] ss:$12 sps:$4 sm:$0xff]  }
 0x1aa   :  { %v6207_v23 = vld [vmem:[#allocation7 + $0x3b0] ss:$12 sps:$4 sm:$0xff]  }
 0x1ac   :  { %1440 = vmatpush2.bf16.msra.mxu1 %v6122_v24  ;;  %1483 = vmatpush2.bf16.msra.mxu0 %v6125_v25  ;;  %v6208_v24 = vld [vmem:[#allocation7 + $0x2d8] ss:$12 sps:$4 sm:$0xff]  }
 0x1ad   :  { %1441 = vmatprep.subr.bf16.mxu1 %v6130_v26  ;;  %1484 = vmatprep.subr.bf16.mxu0 %v6133_v27  ;;  %v6209_v25 = vld [vmem:[#allocation7 + $0x218] ss:$12 sps:$4 sm:$0xff]   ;;  %v6211_v27 = vld [vmem:[#allocation7 + $0x2c0] ss:$12 sps:$4 sm:$0xff]  }
 0x1ae   :  { %v6210_v26 = vld [vmem:[#allocation7 + $0x398] ss:$12 sps:$4 sm:$0xff]  }
 0x1b0   :  { %1442 = vmatpush2.bf16.msra.mxu1 %v6128_v28  ;;  %1485 = vmatpush2.bf16.msra.mxu0 %v6131_v29  ;;  %v6212_v28 = vld [vmem:[#allocation7 + $0x200] ss:$12 sps:$4 sm:$0xff]  }
 0x1b1   :  { %1443 = vmatprep.subr.bf16.mxu1 %v6136_v30  ;;  %1486 = vmatprep.subr.bf16.mxu0 %v6139_v31  ;;  %v6213_v29 = vld [vmem:[#allocation7 + $0x380] ss:$12 sps:$4 sm:$0xff]   ;;  %v6214_v30 = vld [vmem:[#allocation7 + $0x2a8] ss:$12 sps:$4 sm:$0xff]  }
 0x1b2   :  { %v6215_v31 = vld [vmem:[#allocation7 + $0x1e8] ss:$12 sps:$4 sm:$0xff]  }
 0x1b4   :  { %1444 = vmatpush2.bf16.msra.mxu1 %v6134_v32  ;;  %1487 = vmatpush2.bf16.msra.mxu0 %v6137_v33  ;;  %v6216_v32 = vld [vmem:[#allocation7 + $0x368] ss:$12 sps:$4 sm:$0xff]   ;;  %v6217_v33 = vld [vmem:[#allocation7 + $0x290] ss:$12 sps:$4 sm:$0xff]  }
 0x1b5   :  { %1445 = vmatprep.subr.bf16.mxu1 %v6142_v34  ;;  %1488 = vmatprep.subr.bf16.mxu0 %v6145_v35  ;;  %v6219_v34 = vld [vmem:[#allocation7 + $0x350] ss:$12 sps:$4 sm:$0xff]   ;;  %v6220_v35 = vld [vmem:[#allocation7 + $0x278] ss:$12 sps:$4 sm:$0xff]  }
 0x1b8   :  { %1446 = vmatpush2.bf16.msra.mxu1 %v6140_v37  ;;  %1489 = vmatpush2.bf16.msra.mxu0 %v6143_v38  ;;  %v6221_v37 = vld [vmem:[#allocation7 + $0x1b8] ss:$12 sps:$4 sm:$0xff]  }
 0x1b9   :  { %1447 = vmatprep.subr.bf16.mxu1 %v6148_v39  ;;  %1490 = vmatprep.subr.bf16.mxu0 %v6151_v40  ;;  %v6222_v38 = vld [vmem:[#allocation7 + $0x338] ss:$12 sps:$4 sm:$0xff]   ;;  %v6223_v39 = vld [vmem:[#allocation7 + $0x260] ss:$12 sps:$4 sm:$0xff]  }
 0x1ba   :  { %v6224_v40 = vld [vmem:[#allocation7 + $0x1a0] ss:$12 sps:$4 sm:$0xff]  }
 0x1bc   :  { %1448 = vmatpush2.bf16.msra.mxu1 %v6146_v41  ;;  %1491 = vmatpush2.bf16.msra.mxu0 %v6149_v42  ;;  %v6225_v41 = vld [vmem:[#allocation7 + $0x320] ss:$12 sps:$4 sm:$0xff]   ;;  %v6226_v42 = vld [vmem:[#allocation7 + $0x248] ss:$12 sps:$4 sm:$0xff]  }
 0x1bd   :  { %1449 = vmatprep.subr.bf16.mxu1 %v6154_v43  ;;  %1492 = vmatprep.subr.bf16.mxu0 %v6157_v44  ;;  %v6227_v43 = vld [vmem:[#allocation7 + $0x188] ss:$12 sps:$4 sm:$0xff]  }
 0x1be   :  { %v6228_v44 = vld [vmem:[#allocation7 + $0x308] ss:$12 sps:$4 sm:$0xff]  }
 0x1c0   :  { %1450 = vmatpush2.bf16.msra.mxu1 %v6152_v45  ;;  %1493 = vmatpush2.bf16.msra.mxu0 %v6155_v46  ;;  %v6231_v45 = vld [vmem:[#allocation10 + $0x74] ss:$8 sps:$4 sm:$0xff]   ;;  %v6229_v46 = vld [vmem:[#allocation10 + $0x70] ss:$8 sps:$4 sm:$0xff]  }
 0x1c1   :  { %1505 = vmatprep.subr.bf16.mxu1 %v6165_v47  ;;  %5765 = vmatprep.subr.bf16.mxu0 %v6166_v51  ;;  %v6234_v47 = vld [vmem:[#allocation10 + $0x64] ss:$8 sps:$4 sm:$0xff]   ;;  %v6232_v51 = vld [vmem:[#allocation10 + $0x60] ss:$8 sps:$4 sm:$0xff]  }
 0x1c3   :  { %1452 = vmatmul.mubr.bf16.vlgmr.msra.gmra.mxu1 %v7257_v52  ;;  %1495 = vmatmul.mubr.bf16.vlgmr.msra.gmra.mxu0 %v7259_v53 }
 0x1c4   :  { %1506 = vmatpush1.bf16.msra.mxu1 %v6163_v54  ;;  %5766 = vmatpush3.bf16.msra.mxu0 %v6168_v55  ;;  %v6237_v54 = vld [vmem:[#allocation10 + $0x54] ss:$8 sps:$4 sm:$0xff]   ;;  %v6235_v55 = vld [vmem:[#allocation10 + $0x50] ss:$8 sps:$4 sm:$0xff]  }
 0x1c5   :  { %1507 = vmatprep.subr.bf16.mxu1 %v6171_v56  ;;  %5767 = vmatprep.subr.bf16.mxu0 %v6172_v57  ;;  %v6238_v56 = vld [vmem:[#allocation10 + $0x40] ss:$8 sps:$4 sm:$0xff]   ;;  %v6243_v57 = vld [vmem:[#allocation10 + $0x34] ss:$8 sps:$4 sm:$0xff]  }
 0x1c6   :  { %1537 = vmatprep.mubr.bf16.mxu1 %v7067_v36  ;;  %1580 = vmatprep.mubr.bf16.mxu0 %v7247_v48  ;;  %v6188_v48 = vld [vmem:[#allocation7 + $0x50] ss:$12 sps:$4 sm:$0xff]  }
 0x1c8   :  { %1508 = vmatpush1.bf16.msra.mxu1 %v6169_v58  ;;  %5768 = vmatpush3.bf16.msra.mxu0 %v6173_v59  ;;  %v6241_v58 = vld [vmem:[#allocation10 + $0x30] ss:$8 sps:$4 sm:$0xff]   ;;  %v6244_v59 = vld [vmem:[#allocation10 + $0x20] ss:$8 sps:$4 sm:$0xff]  }
 0x1c9   :  { %1509 = vmatprep.subr.bf16.mxu1 %v6176_v60  ;;  %5769 = vmatprep.subr.bf16.mxu0 %v6177_v61  ;;  %v6249_v60 = vld [vmem:[#allocation10 + $0x14] ss:$8 sps:$4 sm:$0xff]   ;;  %v6247_v61 = vld [vmem:[#allocation10 + $0x10] ss:$8 sps:$4 sm:$0xff]  }
 0x1cc   :  { %1510 = vmatpush1.bf16.msra.mxu1 %v6174_v62  ;;  %5770 = vmatpush3.bf16.msra.mxu0 %v6178_v63  ;;  %v6252_v62 = vld [vmem:[#allocation10 + $0x4] ss:$8 sps:$4 sm:$0xff]   ;;  %v6250_v63 = vld [vmem:[#allocation10] ss:$8 sps:$4 sm:$0xff]  }
 0x1cd   :  { %1511 = vmatprep.subr.bf16.mxu1 %v6181_v1  ;;  %5771 = vmatprep.subr.bf16.mxu0 %v6182_v2  ;;  %v6255_v1 = vld [vmem:[#allocation10 + $0xf4] ss:$8 sps:$4 sm:$0xff]   ;;  %v6253_v2 = vld [vmem:[#allocation10 + $0xf0] ss:$8 sps:$4 sm:$0xff]  }
 0x1d0   :  { %1512 = vmatpush1.bf16.msra.mxu1 %v6179_v3  ;;  %5772 = vmatpush3.bf16.msra.mxu0 %v6183_v4  ;;  %v6258_v3 = vld [vmem:[#allocation10 + $0xe4] ss:$8 sps:$4 sm:$0xff]   ;;  %v6256_v4 = vld [vmem:[#allocation10 + $0xe0] ss:$8 sps:$4 sm:$0xff]  }
 0x1d1   :  { %1513 = vmatprep.subr.bf16.mxu1 %v6186_v5  ;;  %5773 = vmatprep.subr.bf16.mxu0 %v6187_v6  ;;  %v6261_v5 = vld [vmem:[#allocation10 + $0xd4] ss:$8 sps:$4 sm:$0xff]   ;;  %v6259_v6 = vld [vmem:[#allocation10 + $0xd0] ss:$8 sps:$4 sm:$0xff]  }
 0x1d4   :  { %1514 = vmatpush1.bf16.msra.mxu1 %v6184_v7  ;;  %5774 = vmatpush3.bf16.msra.mxu0 %v6188_v48  ;;  %v6264_v7 = vld [vmem:[#allocation10 + $0xc4] ss:$8 sps:$4 sm:$0xff]   ;;  %v6262_v48 = vld [vmem:[#allocation10 + $0xc0] ss:$8 sps:$4 sm:$0xff]  }
 0x1d5   :  { %1515 = vmatprep.subr.bf16.mxu1 %v6191_v8  ;;  %5775 = vmatprep.subr.bf16.mxu0 %v6192_v9  ;;  %v6267_v8 = vld [vmem:[#allocation10 + $0xb4] ss:$8 sps:$4 sm:$0xff]   ;;  %v6265_v9 = vld [vmem:[#allocation10 + $0xb0] ss:$8 sps:$4 sm:$0xff]  }
 0x1d8   :  { %1516 = vmatpush1.bf16.msra.mxu1 %v6189_v10  ;;  %5776 = vmatpush3.bf16.msra.mxu0 %v6193_v11  ;;  %v6270_v10 = vld [vmem:[#allocation10 + $0xa4] ss:$8 sps:$4 sm:$0xff]   ;;  %v6268_v11 = vld [vmem:[#allocation10 + $0xa0] ss:$8 sps:$4 sm:$0xff]  }
 0x1d9   :  { %1517 = vmatprep.subr.bf16.mxu1 %v6196_v12  ;;  %5777 = vmatprep.subr.bf16.mxu0 %v6197_v13  ;;  %v6273_v12 = vld [vmem:[#allocation10 + $0x94] ss:$8 sps:$4 sm:$0xff]   ;;  %v6280_v13 = vld [vmem:[#allocation10 + $0x170] ss:$8 sps:$4 sm:$0xff]  }
 0x1dc   :  { %1518 = vmatpush1.bf16.msra.mxu1 %v6194_v14  ;;  %5778 = vmatpush3.bf16.msra.mxu0 %v6198_v15  ;;  %v6282_v14 = vld [vmem:[#allocation10 + $0x174] ss:$8 sps:$4 sm:$0xff]   ;;  %v6271_v15 = vld [vmem:[#allocation10 + $0x90] ss:$8 sps:$4 sm:$0xff]  }
 0x1dd   :  { %1519 = vmatprep.subr.bf16.mxu1 %v6201_v16  ;;  %5779 = vmatprep.subr.bf16.mxu0 %v6202_v17  ;;  %v6276_v16 = vld [vmem:[#allocation10 + $0x84] ss:$8 sps:$4 sm:$0xff]   ;;  %v6286_v17 = vld [vmem:[#allocation10 + $0x160] ss:$8 sps:$4 sm:$0xff]  }
 0x1e0   :  { %1520 = vmatpush1.bf16.msra.mxu1 %v6199_v18  ;;  %5780 = vmatpush3.bf16.msra.mxu0 %v6203_v19  ;;  %v6288_v18 = vld [vmem:[#allocation10 + $0x164] ss:$8 sps:$4 sm:$0xff]   ;;  %v6274_v19 = vld [vmem:[#allocation10 + $0x80] ss:$8 sps:$4 sm:$0xff]  }
 0x1e1   :  { %5787 = vmatprep.subr.bf16.mxu1 %v6205_v20  ;;  %5960 = vmatprep.subr.bf16.mxu0 %v7065_v0  ;;  %v6279_v20 = vld [vmem:[#allocation13 + $0x15c] ss:$24 sps:$4 sm:$0xff]  }
 0x1e3   :  { %1538 = vmatmul.mubr.bf16.vlgmr.msra.gmra.mxu1 %v7265_v21  ;;  %1581 = vmatmul.mubr.bf16.vlgmr.msra.gmra.mxu0 %v7257_v52 }
 0x1e4   :  { %5788 = vmatpush3.bf16.msra.mxu1 %v6206_v22  ;;  %5961 = vmatpush3.bf16.msra.mxu0 %v6207_v23  ;;  %v6294_v22 = vld [vmem:[#allocation10 + $0x154] ss:$8 sps:$4 sm:$0xff]   ;;  %v6298_v23 = vld [vmem:[#allocation10 + $0x140] ss:$8 sps:$4 sm:$0xff]  }
 0x1e5   :  { %5789 = vmatprep.subr.bf16.mxu1 %v6208_v24  ;;  %5962 = vmatprep.subr.bf16.mxu0 %v7065_v0  ;;  %v6300_v24 = vld [vmem:[#allocation10 + $0x144] ss:$8 sps:$4 sm:$0xff]  }
 0x1e6   :  { %1621 = vmatprep.mubr.bf16.mxu1 %v7249_v49  ;;  %5976 = vmatprep.mubr.msk.bf16.mxu0 %vm7066_vm0, %v7065_v0  ;;  %v6218_v49 = vld [vmem:[#allocation7 + $0x1d0] ss:$12 sps:$4 sm:$0xff]  }
 0x1e8   :  { %5790 = vmatpush3.bf16.msra.mxu1 %v6209_v25  ;;  %5963 = vmatpush3.bf16.msra.mxu0 %v6210_v26 }
 0x1e9   :  { %5791 = vmatprep.subr.bf16.mxu1 %v6211_v27  ;;  %5964 = vmatprep.subr.bf16.mxu0 %v7065_v0  ;;  %v6306_v27 = vld [vmem:[#allocation10 + $0x134] ss:$8 sps:$4 sm:$0xff]  }
 0x1ec   :  { %5792 = vmatpush3.bf16.msra.mxu1 %v6212_v28  ;;  %5965 = vmatpush3.bf16.msra.mxu0 %v6213_v29  ;;  %v6304_v28 = vld [vmem:[#allocation10 + $0x130] ss:$8 sps:$4 sm:$0xff]  }
 0x1ed   :  { %5793 = vmatprep.subr.bf16.mxu1 %v6214_v30  ;;  %5966 = vmatprep.subr.bf16.mxu0 %v7065_v0 }
 0x1f0   :  { %5794 = vmatpush3.bf16.msra.mxu1 %v6215_v31  ;;  %5967 = vmatpush3.bf16.msra.mxu0 %v6216_v32  ;;  %v6312_v31 = vld [vmem:[#allocation10 + $0x124] ss:$8 sps:$4 sm:$0xff]   ;;  %v6310_v32 = vld [vmem:[#allocation10 + $0x120] ss:$8 sps:$4 sm:$0xff]  }
 0x1f1   :  { %5795 = vmatprep.subr.bf16.mxu1 %v6217_v33  ;;  %5968 = vmatprep.subr.bf16.mxu0 %v7065_v0  ;;  %v6318_v33 = vld [vmem:[#allocation10 + $0x114] ss:$8 sps:$4 sm:$0xff]  }
 0x1f4   :  { %5796 = vmatpush3.bf16.msra.mxu1 %v6218_v49  ;;  %5969 = vmatpush3.bf16.msra.mxu0 %v6219_v34  ;;  %v6316_v49 = vld [vmem:[#allocation10 + $0x110] ss:$8 sps:$4 sm:$0xff]   ;;  %v6324_v34 = vld [vmem:[#allocation10 + $0x104] ss:$8 sps:$4 sm:$0xff]  }
 0x1f5   :  { %5797 = vmatprep.subr.bf16.mxu1 %v6220_v35  ;;  %5970 = vmatprep.subr.bf16.mxu0 %v7065_v0  ;;  %v6322_v35 = vld [vmem:[#allocation10 + $0x100] ss:$8 sps:$4 sm:$0xff]  }
 0x1f8   :  { %5798 = vmatpush3.bf16.msra.mxu1 %v6221_v37  ;;  %5971 = vmatpush3.bf16.msra.mxu0 %v6222_v38  ;;  %v6330_v37 = vld [vmem:[#allocation13 + $0x154] ss:$24 sps:$4 sm:$0xff]  }
 0x1f9   :  { %5799 = vmatprep.subr.bf16.mxu1 %v6223_v39  ;;  %5972 = vmatprep.subr.bf16.mxu0 %v7065_v0 }
 0x1fc   :  { %5800 = vmatpush3.bf16.msra.mxu1 %v6224_v40  ;;  %5973 = vmatpush3.bf16.msra.mxu0 %v6225_v41 }
 0x1fd   :  { %5801 = vmatprep.subr.bf16.mxu1 %v6226_v42  ;;  %5974 = vmatprep.subr.bf16.mxu0 %v7065_v0  ;;  %v6240_v0 = vld [vmem:[#allocation10 + $0x44] ss:$8 sps:$4 sm:$0xff]  }
 0x200   :  { %5802 = vmatpush3.bf16.msra.mxu1 %v6227_v43  ;;  %5975 = vmatpush3.bf16.msra.mxu0 %v6228_v44 }
 0x201   :  { %2015 = vmatprep.subr.bf16.mxu1 %v6231_v45  ;;  %2058 = vmatprep.subr.bf16.mxu0 %v6282_v14  ;;  %v1673_v45 = vlaneseq }
 0x203   :  { %1622 = vmatmul.mubr.bf16.vlgmr.msra.gmra.mxu1 %v7259_v53  ;;  %5977 = vmatmul.mubr.bf16.vlgmr.msra.gmra.mxu0 %v7265_v21  ;;  %v6246_v53 = vld [vmem:[#allocation10 + $0x24] ss:$8 sps:$4 sm:$0xff]   ;;  %v6292_v21 = vld [vmem:[#allocation10 + $0x150] ss:$8 sps:$4 sm:$0xff]  }
 0x204   :  { %2016 = vmatpush1.bf16.msra.mxu1 %v6229_v46  ;;  %2090 = vmatprep.mubr.bf16.mxu0 %v7067_v36 }
 0x205   :  { %2017 = vmatprep.subr.bf16.mxu1 %v6234_v47  ;;  %2059 = vmatpush1.bf16.msra.mxu0 %v6280_v13 }
 0x206   :  { %2060 = vmatprep.subr.bf16.mxu0 %v6288_v18 }
 0x208   :  { %2018 = vmatpush1.bf16.msra.mxu1 %v6232_v51  ;;  %v7287_v51 = vshrl.u32 %v1673_v45, 7 }
 0x209   :  { %2019 = vmatprep.subr.bf16.mxu1 %v6237_v54  ;;  %2061 = vmatpush1.bf16.msra.mxu0 %v6286_v17 }
 0x20a   :  { %2062 = vmatprep.subr.bf16.mxu0 %v6294_v22  ;;  %v1683_v45 = vsub.s32 2, %v7287_v51 }
 0x20c   :  { %2020 = vmatpush1.bf16.msra.mxu1 %v6235_v55 }
 0x20d   :  { %2021 = vmatprep.subr.bf16.mxu1 %v6240_v0  ;;  %2063 = vmatpush1.bf16.msra.mxu0 %v6292_v21  ;;  %v7290_v0 = vsub.s32 1, %v7287_v51 }
 0x20e   :  { %2064 = vmatprep.subr.bf16.mxu0 %v6300_v24 }
 0x210   :  { %2022 = vmatpush1.bf16.msra.mxu1 %v6238_v56 }
 0x211   :  { %2023 = vmatprep.subr.bf16.mxu1 %v6243_v57  ;;  %2065 = vmatpush1.bf16.msra.mxu0 %v6298_v23 }
 0x212   :  { %2066 = vmatprep.subr.bf16.mxu0 %v6306_v27 }
 0x214   :  { %2024 = vmatpush1.bf16.msra.mxu1 %v6241_v58  ;;  %v7293_v58 = vsub.s32 0, %v7287_v51 }
 0x215   :  { %2025 = vmatprep.subr.bf16.mxu1 %v6246_v53  ;;  %2067 = vmatpush1.bf16.msra.mxu0 %v6304_v28  ;;  %v7298_v53 = vld [vmem:[%s7597_s7] sm:$0x7]  ;;  %v6285_v28 = vld [vmem:[#allocation13 + $0x12c] ss:$24 sps:$4 sm:$0xff]  }
 0x216   :  { %2068 = vmatprep.subr.bf16.mxu0 %v6312_v31  ;;  %v6283_v31 = vld [vmem:[#allocation13 + $0x128] ss:$24 sps:$4 sm:$0xff]  }
 0x218   :  { %2026 = vmatpush1.bf16.msra.mxu1 %v6244_v59 }
 0x219   :  { %2027 = vmatprep.subr.bf16.mxu1 %v6249_v60  ;;  %2069 = vmatpush1.bf16.msra.mxu0 %v6310_v32  ;;  %v6291_v32 = vld [vmem:[#allocation13 + $0xfc] ss:$24 sps:$4 sm:$0xff]  }
 0x21a   :  { %2070 = vmatprep.subr.bf16.mxu0 %v6318_v33 }
 0x21c   :  { %2028 = vmatpush1.bf16.msra.mxu1 %v6247_v61 }
 0x21d   :  { %2029 = vmatprep.subr.bf16.mxu1 %v6252_v62  ;;  %2071 = vmatpush1.bf16.msra.mxu0 %v6316_v49  ;;  %v6289_v49 = vld [vmem:[#allocation13 + $0xf8] ss:$24 sps:$4 sm:$0xff]  }
 0x21e   :  { %2072 = vmatprep.subr.bf16.mxu0 %v6324_v34  ;;  %v6297_v34 = vld [vmem:[#allocation13 + $0xcc] ss:$24 sps:$4 sm:$0xff]  }
 0x220   :  { %2030 = vmatpush1.bf16.msra.mxu1 %v6250_v63 }
 0x221   :  { %2031 = vmatprep.subr.bf16.mxu1 %v6255_v1  ;;  %2073 = vmatpush1.bf16.msra.mxu0 %v6322_v35  ;;  %v1680_v1 = vrot.slane %v7298_v53, %v7290_v0 }
 0x222   :  { %2603 = vmatprep.subr.bf16.mxu0 %v6330_v37  ;;  %v6295_v37 = vld [vmem:[#allocation13 + $0xc8] ss:$24 sps:$4 sm:$0xff]  }
 0x224   :  { %2032 = vmatpush2.bf16.msra.mxu1 %v6253_v2 }
 0x225   :  { %2033 = vmatprep.subr.bf16.mxu1 %v6258_v3 }
 0x228   :  { %2034 = vmatpush2.bf16.msra.mxu1 %v6256_v4  ;;  %v1676_v4 = vrot.slane %v7298_v53, %v7293_v58 }
 0x229   :  { %2035 = vmatprep.subr.bf16.mxu1 %v6261_v5 }
 0x22c   :  { %2036 = vmatpush2.bf16.msra.mxu1 %v6259_v6 }
 0x22d   :  { %2037 = vmatprep.subr.bf16.mxu1 %v6264_v7 }
 0x230   :  { %2038 = vmatpush2.bf16.msra.mxu1 %v6262_v48 }
 0x231   :  { %2039 = vmatprep.subr.bf16.mxu1 %v6267_v8 }
 0x234   :  { %2040 = vmatpush2.bf16.msra.mxu1 %v6265_v9 }
 0x235   :  { %2041 = vmatprep.subr.bf16.mxu1 %v6270_v10 }
 0x238   :  { %2042 = vmatpush2.bf16.msra.mxu1 %v6268_v11 }
 0x239   :  { %2043 = vmatprep.subr.bf16.mxu1 %v6273_v12 }
 0x23c   :  { %2044 = vmatpush2.bf16.msra.mxu1 %v6271_v15 }
 0x23d   :  { %2045 = vmatprep.subr.bf16.mxu1 %v6276_v16 }
 0x240   :  { %2046 = vmatpush2.bf16.msra.mxu1 %v6274_v19 }
 0x241   :  { %2646 = vmatprep.subr.bf16.mxu1 %v6279_v20 }
 0x243   :  { %v7283_v25 = vpop.f32.mrf.mxu0  ;;  %v703_v38 = vpop.f32.mrf.mxu1 }
 0x245   :  { %v5958_v26 = vpop.f32.mrf.mxu0  ;;  %v705_v39 = vpop.f32.mrf.mxu1 }
 0x246   :  { %v6277_v26 = vld [vmem:[#allocation13 + $0x158] ss:$24 sps:$4 sm:$0xff]  }
 0x247   :  { %v7285_v29 = vpop.f32.mrf.mxu0  ;;  %v707_v40 = vpop.f32.mrf.mxu1 }
 0x249   :  { %v5959_v30 = vpop.f32.mrf.mxu0  ;;  %v709_v41 = vpop.f32.mrf.mxu1 }
 0x283   :  { %v1453_v42 = vpop.f32.mrf.mxu1  ;;  %v1496_v43 = vpop.f32.mrf.mxu0 }
 0x284   :  { %v1454_v54 = vadd.f32 %v1453_v42, %v703_v38  ;;  %v6303_v38 = vld [vmem:[#allocation13 + $0x9c] ss:$24 sps:$4 sm:$0xff]   ;;  %v6309_v42 = vld [vmem:[#allocation13 + $0x6c] ss:$24 sps:$4 sm:$0xff]  }
 0x285   :  { %v1455_v44 = vpop.f32.mrf.mxu1  ;;  %v1498_v46 = vpop.f32.mrf.mxu0 }
 0x286   :  { %v1456_v55 = vadd.f32 %v1455_v44, %v705_v39  ;;  %v1497_v59 = vadd.f32 %v1496_v43, %v1454_v54  ;;  %v6307_v54 = vld [vmem:[#allocation13 + $0x68] ss:$24 sps:$4 sm:$0xff]  }
 0x287   :  { %v1457_v47 = vpop.f32.mrf.mxu1  ;;  %v1500_v56 = vpop.f32.mrf.mxu0 }
 0x288   :  { %v1458_v60 = vadd.f32 %v1457_v47, %v707_v40  ;;  %v1499_v62 = vadd.f32 %v1498_v46, %v1456_v55  ;;  %v6301_v40 = vld [vmem:[#allocation13 + $0x98] ss:$24 sps:$4 sm:$0xff]  }
 0x289   :  { %v1459_v57 = vpop.f32.mrf.mxu1  ;;  %v1502_v2 = vpop.f32.mrf.mxu0 }
 0x28a   :  { %v1460_v63 = vadd.f32 %v1459_v57, %v709_v41  ;;  %v1501_v7 = vadd.f32 %v1500_v56, %v1458_v60 }
 0x28c   :  { %v1503_v8 = vadd.f32 %v1502_v2, %v1460_v63  ;;  %v1684_v63 = vrot.slane %v7298_v53, %v1683_v45  ;;  %v6325_v53 = vld [vmem:[#allocation12 + $0x150] ss:$24 sps:$4 sm:$0xff]  }
 0x2a3   :  { %v1539_v61 = vpop.f32.mrf.mxu1  ;;  %v5781_v30 = vpop.f32.mrf.mxu0 }
 0x2a4   :  { %v1540_v3 = vadd.f32 %v1539_v61, %v1497_v59  ;;  %v6315_v59 = vld [vmem:[#allocation13 + $0x3c] ss:$24 sps:$4 sm:$0xff]  }
 0x2a5   :  { %v1541_v5 = vpop.f32.mrf.mxu1  ;;  %v5782_v33 = vpop.f32.mrf.mxu0 }
 0x2a6   :  { %v1542_v6 = vadd.f32 %v1541_v5, %v1499_v62  ;;  %v1688_v10 = vadd.f32 %v1676_v4, %v1540_v3  ;;  %v5783_v41 = vadd.f32 %v5782_v33, %v5781_v30  ;;  %v6313_v3 = vld [vmem:[#allocation13 + $0x38] ss:$24 sps:$4 sm:$0xff]   ;;  %v6348_v30 = vld [vmem:[#allocation13 + $0xc4] ss:$24 sps:$4 sm:$0xff]  }
 0x2a7   :  { %v1543_v48 = vpop.f32.mrf.mxu1  ;;  %v5784_v35 = vpop.f32.mrf.mxu0  ;;  %v6349_v33 = vld [vmem:[#allocation12 + $0x90] ss:$24 sps:$4 sm:$0xff]  }
 0x2a8   :  { %v1689_v9 = vadd.f32 %v1680_v1, %v1542_v6  ;;  %v1544_v11 = vadd.f32 %v1543_v48, %v1501_v7  ;;  %v1700_v17 = vmul.f32 0.2, %v1688_v10  ;;  %vm1694_vm3 = vcmp.gt.f32.partialorder %v1688_v10, 0.0 }
 0x2a9   :  { %v1545_v12 = vpop.f32.mrf.mxu1  ;;  %v5785_v39 = vpop.f32.mrf.mxu0  ;;  %v1583_v55 = vadd.f32 %v5783_v41, %v7283_v25  ;;  %v6321_v25 = vld [vmem:[#allocation13 + $0xc] ss:$24 sps:$4 sm:$0xff]   ;;  %v6361_v41 = vld [vmem:[#allocation12 + $0x30] ss:$24 sps:$4 sm:$0xff]  }
 0x2aa   :  { %v1546_v13 = vadd.f32 %v1545_v12, %v1503_v8  ;;  %v1691_v14 = vadd.f32 %v1676_v4, %v1544_v11  ;;  %v1701_v15 = vmul.f32 0.2, %v1689_v9  ;;  %vm1695_vm1 = vcmp.gt.f32.partialorder %v1689_v9, 0.0  ;;  %v6319_v8 = vld [vmem:[#allocation13 + $0x8] ss:$24 sps:$4 sm:$0xff]  }
 0x2ab   :  { %v1706_v23 = vsel %vm1694_vm3, %v1688_v10, %v1700_v17  ;;  %v5786_v56 = vadd.f32 %v5785_v39, %v5784_v35  ;;  %v6327_v10 = vld [vmem:[#allocation12 + $0x154] ss:$24 sps:$4 sm:$0xff]   ;;  %v6352_v35 = vld [vmem:[#allocation13 + $0x90] ss:$24 sps:$4 sm:$0xff]  }
 0x2ac   :  { %v1692_v16 = vadd.f32 %v1680_v1, %v1546_v13  ;;  %vm1697_vm2 = vcmp.gt.f32.partialorder %v1691_v14, 0.0  ;;  %v1703_v18 = vmul.f32 0.2, %v1691_v14  ;;  %v1707_v21 = vsel %vm1695_vm1, %v1689_v9, %v1701_v15  ;;  %v6363_v39 = vld [vmem:[#allocation12 + $0x34] ss:$24 sps:$4 sm:$0xff]  }
 0x2ad   :  { %v1586_v4 = vadd.f32 %v5786_v56, %v7285_v29  ;;  %v6333_v29 = vld [vmem:[#allocation12 + $0x124] ss:$24 sps:$4 sm:$0xff]   ;;  %v6373_v56 = vld [vmem:[#allocation12 + $0x2d0] ss:$24 sps:$4 sm:$0xff]  }
 0x2ae   :  { %vm1698_vm4 = vcmp.gt.f32.partialorder %v1692_v16, 0.0  ;;  %v1704_v19 = vmul.f32 0.2, %v1692_v16  ;;  %v1709_v20 = vsel %vm1697_vm2, %v1691_v14, %v1703_v18  ;;  %v6328_v14 = vld [vmem:[#allocation13 + $0x150] ss:$24 sps:$4 sm:$0xff]  }
 0x2af   :  { %v1712_v27 = vpack.c.bf16 %v1709_v20, %v1706_v23  ;;  %v6331_v18 = vld [vmem:[#allocation12 + $0x120] ss:$24 sps:$4 sm:$0xff]   ;;  %v6337_v23 = vld [vmem:[#allocation12 + $0xf0] ss:$24 sps:$4 sm:$0xff]  }
 0x2b0   :  { %v1710_v22 = vsel %vm1698_vm4, %v1692_v16, %v1704_v19  ;;  %v6336_v19 = vld [vmem:[#allocation13 + $0x124] ss:$24 sps:$4 sm:$0xff]   ;;  %v7312_v20 = vld [vmem:[#allocation2 + $0x4] ss:$20 sps:$4 sm:$0xff]  }
 0x2b1   :  { %v1713_v24 = vpack.c.bf16 %v1710_v22, %v1707_v21  ;;  %v6339_v21 = vld [vmem:[#allocation12 + $0xf4] ss:$24 sps:$4 sm:$0xff]   ;;  %v6334_v22 = vld [vmem:[#allocation13 + $0x120] ss:$24 sps:$4 sm:$0xff]  }
 0x2b3   :  { %2047 = vmatprep.mubr.bf16.mxu1 %v1713_v24  ;;  %v6342_v24 = vld [vmem:[#allocation13 + $0xf4] ss:$24 sps:$4 sm:$0xff]  }
 0x2b4   :  { %2048 = vmatmul.mubr.bf16.vlgmr.msra.gmra.mxu1 %v1712_v27  ;;  %v6340_v27 = vld [vmem:[#allocation13 + $0xf0] ss:$24 sps:$4 sm:$0xff]  }
 0x2b5   :  { %2647 = vmatpush1.bf16.msra.mxu1 %v6277_v26  ;;  %2678 = vmatprep.mubr.bf16.mxu1 %v7067_v36  ;;  %v6345_v26 = vld [vmem:[#allocation12 + $0xc4] ss:$24 sps:$4 sm:$0xff]  }
 0x2b6   :  { %2648 = vmatprep.subr.bf16.mxu1 %v6285_v28  ;;  %v6343_v28 = vld [vmem:[#allocation12 + $0xc0] ss:$24 sps:$4 sm:$0xff]  }
 0x2b9   :  { %2649 = vmatpush1.bf16.msra.mxu1 %v6283_v31  ;;  %v6351_v31 = vld [vmem:[#allocation12 + $0x94] ss:$24 sps:$4 sm:$0xff]  }
 0x2ba   :  { %2650 = vmatprep.subr.bf16.mxu1 %v6291_v32  ;;  %v6346_v32 = vld [vmem:[#allocation13 + $0xc0] ss:$24 sps:$4 sm:$0xff]  }
 0x2bd   :  { %2651 = vmatpush1.bf16.msra.mxu1 %v6289_v49  ;;  %v6354_v49 = vld [vmem:[#allocation13 + $0x94] ss:$24 sps:$4 sm:$0xff]  }
 0x2be   :  { %2652 = vmatprep.subr.bf16.mxu1 %v6297_v34  ;;  %v6357_v34 = vld [vmem:[#allocation12 + $0x64] ss:$24 sps:$4 sm:$0xff]  }
 0x2c1   :  { %2653 = vmatpush1.bf16.msra.mxu1 %v6295_v37  ;;  %v6355_v37 = vld [vmem:[#allocation12 + $0x60] ss:$24 sps:$4 sm:$0xff]  }
 0x2c2   :  { %2654 = vmatprep.subr.bf16.mxu1 %v6303_v38  ;;  %v6360_v38 = vld [vmem:[#allocation13 + $0x64] ss:$24 sps:$4 sm:$0xff]  }
 0x2c3   :  { %v5803_v43 = vpop.f32.mrf.mxu1  ;;  %v1664_v44 = vpop.f32.mrf.mxu0 }
 0x2c5   :  { %2655 = vmatpush1.bf16.msra.mxu1 %v6301_v40  ;;  %v5804_v46 = vpop.f32.mrf.mxu1  ;;  %v5978_v47 = vpop.f32.mrf.mxu0  ;;  %v6358_v40 = vld [vmem:[#allocation13 + $0x60] ss:$24 sps:$4 sm:$0xff]  }
 0x2c6   :  { %v5805_v57 = vadd.f32 %v5804_v46, %v5803_v43  ;;  %2656 = vmatprep.subr.bf16.mxu1 %v6309_v42  ;;  %v6366_v42 = vld [vmem:[#allocation13 + $0x34] ss:$24 sps:$4 sm:$0xff]   ;;  %v6369_v43 = vld [vmem:[#allocation12 + $0x4] ss:$24 sps:$4 sm:$0xff]   ;;  %v6367_v46 = vld [vmem:[#allocation12] ss:$24 sps:$4 sm:$0xff]  }
 0x2c7   :  { %v5806_v60 = vpop.f32.mrf.mxu1  ;;  %v1667_v61 = vpop.f32.mrf.mxu0  ;;  %v6372_v47 = vld [vmem:[#allocation13 + $0x4] ss:$24 sps:$4 sm:$0xff]  }
 0x2c8   :  { %v1624_v62 = vadd.f32 %v5805_v57, %v1583_v55  ;;  %v6370_v55 = vld [vmem:[#allocation13] ss:$24 sps:$4 sm:$0xff]   ;;  %v6378_v57 = vld [vmem:[#allocation13 + $0x164] ss:$24 sps:$4 sm:$0xff]  }
 0x2c9   :  { %2657 = vmatpush1.bf16.msra.mxu1 %v6307_v54  ;;  %v5807_v1 = vpop.f32.mrf.mxu1  ;;  %v5979_v2 = vpop.f32.mrf.mxu0  ;;  %v6375_v54 = vld [vmem:[#allocation12 + $0x2d4] ss:$24 sps:$4 sm:$0xff]  }
 0x2ca   :  { %v1665_v5 = vadd.f32 %v1664_v44, %v1624_v62  ;;  %v5808_v6 = vadd.f32 %v5807_v1, %v5806_v60  ;;  %2658 = vmatprep.subr.bf16.mxu1 %v6315_v59  ;;  %v6364_v44 = vld [vmem:[#allocation13 + $0x30] ss:$24 sps:$4 sm:$0xff]   ;;  %v6381_v59 = vld [vmem:[#allocation12 + $0x2a4] ss:$24 sps:$4 sm:$0xff]   ;;  %v6376_v60 = vld [vmem:[#allocation13 + $0x160] ss:$24 sps:$4 sm:$0xff]  }
 0x2cb   :  { %v6384_v62 = vld [vmem:[#allocation13 + $0x134] ss:$24 sps:$4 sm:$0xff]   ;;  %v6382_v1 = vld [vmem:[#allocation13 + $0x130] ss:$24 sps:$4 sm:$0xff]  }
 0x2cc   :  { %v1690_v7 = vadd.f32 %v1684_v63, %v1665_v5  ;;  %v1627_v48 = vadd.f32 %v5808_v6, %v1586_v4  ;;  %v6385_v2 = vld [vmem:[#allocation12 + $0x270] ss:$24 sps:$4 sm:$0xff]   ;;  %v6393_v4 = vld [vmem:[#allocation12 + $0x244] ss:$24 sps:$4 sm:$0xff]   ;;  %v6388_v5 = vld [vmem:[#allocation13 + $0x100] ss:$24 sps:$4 sm:$0xff]  }
 0x2cd   :  { %2659 = vmatpush1.bf16.msra.mxu1 %v6313_v3  ;;  %v6390_v3 = vld [vmem:[#allocation13 + $0x104] ss:$24 sps:$4 sm:$0xff]   ;;  %v6391_v6 = vld [vmem:[#allocation12 + $0x240] ss:$24 sps:$4 sm:$0xff]  }
 0x2ce   :  { %v1668_v9 = vadd.f32 %v1667_v61, %v1627_v48  ;;  %2660 = vmatprep.subr.bf16.mxu1 %v6321_v25  ;;  %v1702_v11 = vmul.f32 0.2, %v1690_v7  ;;  %vm1696_vm5 = vcmp.gt.f32.partialorder %v1690_v7, 0.0  ;;  %v6379_v61 = vld [vmem:[#allocation12 + $0x2a0] ss:$24 sps:$4 sm:$0xff]  }
 0x2cf   :  { %v6396_v25 = vld [vmem:[#allocation13 + $0xd4] ss:$24 sps:$4 sm:$0xff]   ;;  %v6394_v48 = vld [vmem:[#allocation13 + $0xd0] ss:$24 sps:$4 sm:$0xff]  }
 0x2d0   :  { %v1693_v12 = vadd.f32 %v1684_v63, %v1668_v9  ;;  %v1708_v15 = vsel %vm1696_vm5, %v1690_v7, %v1702_v11  ;;  %v6387_v63 = vld [vmem:[#allocation12 + $0x274] ss:$24 sps:$4 sm:$0xff]   ;;  %v6402_v9 = vld [vmem:[#allocation13 + $0xa4] ss:$24 sps:$4 sm:$0xff]   ;;  %v6400_v11 = vld [vmem:[#allocation13 + $0xa0] ss:$24 sps:$4 sm:$0xff]  }
 0x2d1   :  { %2661 = vmatpush1.bf16.msra.mxu1 %v6319_v8  ;;  %v6399_v7 = vld [vmem:[#allocation12 + $0x214] ss:$24 sps:$4 sm:$0xff]   ;;  %v6397_v8 = vld [vmem:[#allocation12 + $0x210] ss:$24 sps:$4 sm:$0xff]  }
 0x2d2   :  { %v1705_v13 = vmul.f32 0.2, %v1693_v12  ;;  %3692 = vmatprep.subr.bf16.mxu1 %v6327_v10  ;;  %vm1699_vm6 = vcmp.gt.f32.partialorder %v1693_v12, 0.0  ;;  %v6405_v10 = vld [vmem:[#allocation12 + $0x1e4] ss:$24 sps:$4 sm:$0xff]  }
 0x2d4   :  { %2679 = vmatmul.mubr.bf16.vlgmr.msra.gmra.mxu1 %v7251_v50  ;;  %v1711_v16 = vsel %vm1699_vm6, %v1693_v12, %v1705_v13  ;;  %v6403_v12 = vld [vmem:[#allocation12 + $0x1e0] ss:$24 sps:$4 sm:$0xff]   ;;  %v6411_v13 = vld [vmem:[#allocation12 + $0x1b4] ss:$24 sps:$4 sm:$0xff]  }
 0x2d5   :  { %3693 = vmatpush1.bf16.msra.mxu1 %v6325_v53  ;;  %v1714_v17 = vpack.c.bf16 %v1711_v16, %v1708_v15  ;;  %3724 = vmatprep.mubr.bf16.mxu1 %v7312_v20  ;;  %v6408_v53 = vld [vmem:[#allocation13 + $0x74] ss:$24 sps:$4 sm:$0xff]   ;;  %v6414_v15 = vld [vmem:[#allocation13 + $0x44] ss:$24 sps:$4 sm:$0xff]  }
 0x2d6   :  { %3694 = vmatprep.subr.bf16.mxu1 %v6333_v29  ;;  %v6406_v29 = vld [vmem:[#allocation13 + $0x70] ss:$24 sps:$4 sm:$0xff]   ;;  %v6417_v16 = vld [vmem:[#allocation12 + $0x184] ss:$24 sps:$4 sm:$0xff]  }
 0x2d7   :  { %2091 = vmatmul.mubr.bf16.vlgmr.msra.gmra.mxu0 %v1714_v17  ;;  %v6412_v17 = vld [vmem:[#allocation13 + $0x40] ss:$24 sps:$4 sm:$0xff]  }
 0x2d8   :  { %2604 = vmatpush1.bf16.msra.mxu0 %v6328_v14  ;;  %2635 = vmatprep.mubr.bf16.mxu0 %v7067_v36  ;;  %v6409_v14 = vld [vmem:[#allocation12 + $0x1b0] ss:$24 sps:$4 sm:$0xff]  }
 0x2d9   :  { %3695 = vmatpush1.bf16.msra.mxu1 %v6331_v18  ;;  %2605 = vmatprep.subr.bf16.mxu0 %v6336_v19  ;;  %v6415_v18 = vld [vmem:[#allocation12 + $0x180] ss:$24 sps:$4 sm:$0xff]   ;;  %v6420_v19 = vld [vmem:[#allocation13 + $0x14] ss:$24 sps:$4 sm:$0xff]  }
 0x2da   :  { %3696 = vmatprep.subr.bf16.mxu1 %v6339_v21  ;;  %v6423_v21 = vld [vmem:[#allocation12 + $0x15c] ss:$24 sps:$4 sm:$0xff]  }
 0x2dc   :  { %2606 = vmatpush1.bf16.msra.mxu0 %v6334_v22  ;;  %v6418_v22 = vld [vmem:[#allocation13 + $0x10] ss:$24 sps:$4 sm:$0xff]  }
 0x2dd   :  { %3697 = vmatpush1.bf16.msra.mxu1 %v6337_v23  ;;  %2607 = vmatprep.subr.bf16.mxu0 %v6342_v24  ;;  %v6421_v23 = vld [vmem:[#allocation12 + $0x158] ss:$24 sps:$4 sm:$0xff]   ;;  %v6426_v24 = vld [vmem:[#allocation12 + $0x454] ss:$24 sps:$4 sm:$0xff]  }
 0x2de   :  { %3698 = vmatprep.subr.bf16.mxu1 %v6345_v26  ;;  %v6429_v26 = vld [vmem:[#allocation12 + $0x12c] ss:$24 sps:$4 sm:$0xff]  }
 0x2e0   :  { %2608 = vmatpush1.bf16.msra.mxu0 %v6340_v27  ;;  %v6424_v27 = vld [vmem:[#allocation12 + $0x450] ss:$24 sps:$4 sm:$0xff]  }
 0x2e1   :  { %3699 = vmatpush1.bf16.msra.mxu1 %v6343_v28  ;;  %2609 = vmatprep.subr.bf16.mxu0 %v6348_v30  ;;  %v6427_v28 = vld [vmem:[#allocation12 + $0x128] ss:$24 sps:$4 sm:$0xff]   ;;  %v6432_v30 = vld [vmem:[#allocation12 + $0x424] ss:$24 sps:$4 sm:$0xff]  }
 0x2e2   :  { %3700 = vmatprep.subr.bf16.mxu1 %v6351_v31  ;;  %v6435_v31 = vld [vmem:[#allocation12 + $0xfc] ss:$24 sps:$4 sm:$0xff]  }
 0x2e4   :  { %2610 = vmatpush1.bf16.msra.mxu0 %v6346_v32  ;;  %v6430_v32 = vld [vmem:[#allocation12 + $0x420] ss:$24 sps:$4 sm:$0xff]  }
 0x2e5   :  { %3701 = vmatpush1.bf16.msra.mxu1 %v6349_v33  ;;  %2611 = vmatprep.subr.bf16.mxu0 %v6354_v49  ;;  %v7321_v33 = vld [vmem:[#allocation2 + $0xc] ss:$20 sps:$4 sm:$0xff]  }
 0x2e6   :  { %3702 = vmatprep.subr.bf16.mxu1 %v6357_v34  ;;  %v6438_v49 = vld [vmem:[#allocation12 + $0x3f4] ss:$24 sps:$4 sm:$0xff]  }
 0x2e7   :  { %v6441_v34 = vld [vmem:[#allocation12 + $0xcc] ss:$24 sps:$4 sm:$0xff]  }
 0x2e8   :  { %2612 = vmatpush1.bf16.msra.mxu0 %v6352_v35  ;;  %v6436_v35 = vld [vmem:[#allocation12 + $0x3f0] ss:$24 sps:$4 sm:$0xff]  }
 0x2e9   :  { %3703 = vmatpush1.bf16.msra.mxu1 %v6355_v37  ;;  %2613 = vmatprep.subr.bf16.mxu0 %v6360_v38  ;;  %v6439_v37 = vld [vmem:[#allocation12 + $0xc8] ss:$24 sps:$4 sm:$0xff]   ;;  %v6444_v38 = vld [vmem:[#allocation12 + $0x3c4] ss:$24 sps:$4 sm:$0xff]  }
 0x2ea   :  { %3704 = vmatprep.subr.bf16.mxu1 %v6363_v39  ;;  %v6442_v39 = vld [vmem:[#allocation12 + $0x3c0] ss:$24 sps:$4 sm:$0xff]  }
 0x2ec   :  { %2614 = vmatpush1.bf16.msra.mxu0 %v6358_v40  ;;  %v6445_v40 = vld [vmem:[#allocation12 + $0x98] ss:$24 sps:$4 sm:$0xff]  }
 0x2ed   :  { %3705 = vmatpush1.bf16.msra.mxu1 %v6361_v41  ;;  %2615 = vmatprep.subr.bf16.mxu0 %v6366_v42  ;;  %v6450_v41 = vld [vmem:[#allocation12 + $0x394] ss:$24 sps:$4 sm:$0xff]  }
 0x2ee   :  { %3706 = vmatprep.subr.bf16.mxu1 %v6369_v43  ;;  %v6453_v42 = vld [vmem:[#allocation12 + $0x6c] ss:$24 sps:$4 sm:$0xff]   ;;  %v6448_v43 = vld [vmem:[#allocation12 + $0x390] ss:$24 sps:$4 sm:$0xff]  }
 0x2f0   :  { %2616 = vmatpush1.bf16.msra.mxu0 %v6364_v44  ;;  %v6451_v44 = vld [vmem:[#allocation12 + $0x68] ss:$24 sps:$4 sm:$0xff]  }
 0x2f1   :  { %3707 = vmatpush1.bf16.msra.mxu1 %v6367_v46  ;;  %2617 = vmatprep.subr.bf16.mxu0 %v6372_v47  ;;  %v6456_v46 = vld [vmem:[#allocation12 + $0x364] ss:$24 sps:$4 sm:$0xff]  }
 0x2f2   :  { %3708 = vmatprep.subr.bf16.mxu1 %v6375_v54  ;;  %v6459_v47 = vld [vmem:[#allocation12 + $0x3c] ss:$24 sps:$4 sm:$0xff]   ;;  %v6454_v54 = vld [vmem:[#allocation12 + $0x360] ss:$24 sps:$4 sm:$0xff]  }
 0x2f4   :  { %2618 = vmatpush1.bf16.msra.mxu0 %v6370_v55  ;;  %v6457_v55 = vld [vmem:[#allocation12 + $0x38] ss:$24 sps:$4 sm:$0xff]  }
 0x2f5   :  { %3709 = vmatpush2.bf16.msra.mxu1 %v6373_v56  ;;  %2689 = vmatprep.subr.bf16.mxu0 %v6378_v57  ;;  %v6462_v56 = vld [vmem:[#allocation12 + $0x334] ss:$24 sps:$4 sm:$0xff]  }
 0x2f6   :  { %3710 = vmatprep.subr.bf16.mxu1 %v6381_v59  ;;  %v6465_v57 = vld [vmem:[#allocation12 + $0xc] ss:$24 sps:$4 sm:$0xff]   ;;  %v6460_v59 = vld [vmem:[#allocation12 + $0x330] ss:$24 sps:$4 sm:$0xff]  }
 0x2f7   :  { %2636 = vmatmul.mubr.bf16.vlgmr.msra.gmra.mxu0 %v7251_v50 }
 0x2f8   :  { %2690 = vmatpush1.bf16.msra.mxu0 %v6376_v60  ;;  %2721 = vmatprep.mubr.bf16.mxu0 %v7067_v36  ;;  %v6463_v60 = vld [vmem:[#allocation12 + $0x8] ss:$24 sps:$4 sm:$0xff]  }
 0x2f9   :  { %3711 = vmatpush2.bf16.msra.mxu1 %v6379_v61  ;;  %2691 = vmatprep.subr.bf16.mxu0 %v6384_v62  ;;  %v6468_v61 = vld [vmem:[#allocation12 + $0x304] ss:$24 sps:$4 sm:$0xff]  }
 0x2fa   :  { %3712 = vmatprep.subr.bf16.mxu1 %v6387_v63  ;;  %v6471_v62 = vld [vmem:[#allocation12 + $0x2dc] ss:$24 sps:$4 sm:$0xff]   ;;  %v6466_v63 = vld [vmem:[#allocation12 + $0x300] ss:$24 sps:$4 sm:$0xff]  }
 0x2fc   :  { %2692 = vmatpush1.bf16.msra.mxu0 %v6382_v1  ;;  %v6469_v1 = vld [vmem:[#allocation12 + $0x2d8] ss:$24 sps:$4 sm:$0xff]  }
 0x2fd   :  { %3713 = vmatpush2.bf16.msra.mxu1 %v6385_v2  ;;  %2693 = vmatprep.subr.bf16.mxu0 %v6390_v3  ;;  %v6474_v2 = vld [vmem:[#allocation12 + $0x5d4] ss:$24 sps:$4 sm:$0xff]  }
 0x2fe   :  { %3714 = vmatprep.subr.bf16.mxu1 %v6393_v4  ;;  %v6477_v3 = vld [vmem:[#allocation12 + $0x2ac] ss:$24 sps:$4 sm:$0xff]   ;;  %v6472_v4 = vld [vmem:[#allocation12 + $0x5d0] ss:$24 sps:$4 sm:$0xff]  }
 0x300   :  { %2694 = vmatpush1.bf16.msra.mxu0 %v6388_v5  ;;  %v6475_v5 = vld [vmem:[#allocation12 + $0x2a8] ss:$24 sps:$4 sm:$0xff]  }
 0x301   :  { %3715 = vmatpush2.bf16.msra.mxu1 %v6391_v6  ;;  %2695 = vmatprep.subr.bf16.mxu0 %v6396_v25  ;;  %v6480_v6 = vld [vmem:[#allocation12 + $0x5a4] ss:$24 sps:$4 sm:$0xff]  }
 0x302   :  { %3716 = vmatprep.subr.bf16.mxu1 %v6399_v7  ;;  %v6483_v25 = vld [vmem:[#allocation12 + $0x27c] ss:$24 sps:$4 sm:$0xff]   ;;  %v6478_v7 = vld [vmem:[#allocation12 + $0x5a0] ss:$24 sps:$4 sm:$0xff]  }
 0x304   :  { %2696 = vmatpush1.bf16.msra.mxu0 %v6394_v48  ;;  %v6481_v48 = vld [vmem:[#allocation12 + $0x278] ss:$24 sps:$4 sm:$0xff]  }
 0x305   :  { %3717 = vmatpush2.bf16.msra.mxu1 %v6397_v8  ;;  %2697 = vmatprep.subr.bf16.mxu0 %v6402_v9  ;;  %v6486_v8 = vld [vmem:[#allocation12 + $0x574] ss:$24 sps:$4 sm:$0xff]  }
 0x306   :  { %3718 = vmatprep.subr.bf16.mxu1 %v6405_v10  ;;  %v6489_v9 = vld [vmem:[#allocation12 + $0x24c] ss:$24 sps:$4 sm:$0xff]   ;;  %v6484_v10 = vld [vmem:[#allocation12 + $0x570] ss:$24 sps:$4 sm:$0xff]  }
 0x308   :  { %2698 = vmatpush1.bf16.msra.mxu0 %v6400_v11  ;;  %v6487_v11 = vld [vmem:[#allocation12 + $0x248] ss:$24 sps:$4 sm:$0xff]  }
 0x309   :  { %3719 = vmatpush2.bf16.msra.mxu1 %v6403_v12  ;;  %2699 = vmatprep.subr.bf16.mxu0 %v6408_v53  ;;  %v6492_v12 = vld [vmem:[#allocation12 + $0x544] ss:$24 sps:$4 sm:$0xff]  }
 0x30a   :  { %3720 = vmatprep.subr.bf16.mxu1 %v6411_v13  ;;  %v6495_v53 = vld [vmem:[#allocation12 + $0x21c] ss:$24 sps:$4 sm:$0xff]   ;;  %v6490_v13 = vld [vmem:[#allocation12 + $0x540] ss:$24 sps:$4 sm:$0xff]  }
 0x30c   :  { %2700 = vmatpush1.bf16.msra.mxu0 %v6406_v29  ;;  %v6493_v29 = vld [vmem:[#allocation12 + $0x218] ss:$24 sps:$4 sm:$0xff]  }
 0x30d   :  { %3721 = vmatpush2.bf16.msra.mxu1 %v6409_v14  ;;  %2701 = vmatprep.subr.bf16.mxu0 %v6414_v15  ;;  %v6498_v14 = vld [vmem:[#allocation12 + $0x514] ss:$24 sps:$4 sm:$0xff]  }
 0x30e   :  { %3722 = vmatprep.subr.bf16.mxu1 %v6417_v16  ;;  %v6501_v15 = vld [vmem:[#allocation12 + $0x1ec] ss:$24 sps:$4 sm:$0xff]   ;;  %v6496_v16 = vld [vmem:[#allocation12 + $0x510] ss:$24 sps:$4 sm:$0xff]  }
 0x310   :  { %2702 = vmatpush1.bf16.msra.mxu0 %v6412_v17  ;;  %v6499_v17 = vld [vmem:[#allocation12 + $0x1e8] ss:$24 sps:$4 sm:$0xff]  }
 0x311   :  { %3723 = vmatpush2.bf16.msra.mxu1 %v6415_v18  ;;  %2703 = vmatprep.subr.bf16.mxu0 %v6420_v19  ;;  %v6504_v18 = vld [vmem:[#allocation12 + $0x4e4] ss:$24 sps:$4 sm:$0xff]  }
 0x312   :  { %3778 = vmatprep.subr.bf16.mxu1 %v6423_v21  ;;  %v6507_v19 = vld [vmem:[#allocation12 + $0x1bc] ss:$24 sps:$4 sm:$0xff]   ;;  %v6502_v21 = vld [vmem:[#allocation12 + $0x4e0] ss:$24 sps:$4 sm:$0xff]  }
 0x314   :  { %2704 = vmatpush1.bf16.msra.mxu0 %v6418_v22  ;;  %3725 = vmatmul.mubr.bf16.vlgmr.msra.gmra.mxu1 %v7257_v52  ;;  %v6433_v52 = vld [vmem:[#allocation12 + $0xf8] ss:$24 sps:$4 sm:$0xff]  }
 0x315   :  { %3779 = vmatpush1.bf16.msra.mxu1 %v6421_v23  ;;  %3735 = vmatprep.subr.bf16.mxu0 %v6426_v24  ;;  %v6505_v22 = vld [vmem:[#allocation12 + $0x1b8] ss:$24 sps:$4 sm:$0xff]   ;;  %v6510_v23 = vld [vmem:[#allocation12 + $0x4b4] ss:$24 sps:$4 sm:$0xff]  }
 0x316   :  { %3780 = vmatprep.subr.bf16.mxu1 %v6429_v26  ;;  %3810 = vmatprep.mubr.bf16.mxu1 %v7312_v20  ;;  %v6513_v24 = vld [vmem:[#allocation12 + $0x18c] ss:$24 sps:$4 sm:$0xff]   ;;  %v6508_v26 = vld [vmem:[#allocation12 + $0x4b0] ss:$24 sps:$4 sm:$0xff]  }
 0x317   :  { %2722 = vmatmul.mubr.bf16.vlgmr.msra.gmra.mxu0 %v7251_v50  ;;  %v6447_v50 = vld [vmem:[#allocation12 + $0x9c] ss:$24 sps:$4 sm:$0xff]  }
 0x318   :  { %3736 = vmatpush1.bf16.msra.mxu0 %v6424_v27  ;;  %3767 = vmatprep.mubr.bf16.mxu0 %v7321_v33  ;;  %v6511_v27 = vld [vmem:[#allocation12 + $0x188] ss:$24 sps:$4 sm:$0xff]  }
 0x319   :  { %3781 = vmatpush1.bf16.msra.mxu1 %v6427_v28  ;;  %3737 = vmatprep.subr.bf16.mxu0 %v6432_v30  ;;  %v6516_v28 = vld [vmem:[#allocation12 + $0x484] ss:$24 sps:$4 sm:$0xff]  }
 0x31a   :  { %3782 = vmatprep.subr.bf16.mxu1 %v6435_v31  ;;  %v6519_v30 = vld [vmem:[#allocation12 + $0x164] ss:$24 sps:$4 sm:$0xff]   ;;  %v6514_v31 = vld [vmem:[#allocation12 + $0x480] ss:$24 sps:$4 sm:$0xff]  }
 0x31c   :  { %3738 = vmatpush1.bf16.msra.mxu0 %v6430_v32  ;;  %v6517_v32 = vld [vmem:[#allocation12 + $0x160] ss:$24 sps:$4 sm:$0xff]  }
 0x31d   :  { %3783 = vmatpush1.bf16.msra.mxu1 %v6433_v52  ;;  %3739 = vmatprep.subr.bf16.mxu0 %v6438_v49  ;;  %v6522_v52 = vld [vmem:[#allocation12 + $0x45c] ss:$24 sps:$4 sm:$0xff]  }
 0x31e   :  { %3784 = vmatprep.subr.bf16.mxu1 %v6441_v34  ;;  %v6525_v49 = vld [vmem:[#allocation12 + $0x134] ss:$24 sps:$4 sm:$0xff]   ;;  %v7324_v34 = vld [vmem:[#allocation2] ss:$20 sps:$4 sm:$0xff]  }
 0x320   :  { %3740 = vmatpush1.bf16.msra.mxu0 %v6436_v35  ;;  %v6520_v35 = vld [vmem:[#allocation12 + $0x458] ss:$24 sps:$4 sm:$0xff]  }
 0x321   :  { %3785 = vmatpush1.bf16.msra.mxu1 %v6439_v37  ;;  %3741 = vmatprep.subr.bf16.mxu0 %v6444_v38  ;;  %v6523_v37 = vld [vmem:[#allocation12 + $0x130] ss:$24 sps:$4 sm:$0xff]   ;;  %v6528_v38 = vld [vmem:[#allocation12 + $0x42c] ss:$24 sps:$4 sm:$0xff]  }
 0x322   :  { %3786 = vmatprep.subr.bf16.mxu1 %v6447_v50  ;;  %v6531_v50 = vld [vmem:[#allocation12 + $0x104] ss:$24 sps:$4 sm:$0xff]  }
 0x324   :  { %3742 = vmatpush1.bf16.msra.mxu0 %v6442_v39  ;;  %v7328_v39 = vld [vmem:[#allocation2 + $0x8] ss:$20 sps:$4 sm:$0xff]  }
 0x325   :  { %3787 = vmatpush1.bf16.msra.mxu1 %v6445_v40  ;;  %3743 = vmatprep.subr.bf16.mxu0 %v6450_v41  ;;  %v6526_v40 = vld [vmem:[#allocation12 + $0x428] ss:$24 sps:$4 sm:$0xff]  }
 0x326   :  { %3788 = vmatprep.subr.bf16.mxu1 %v6453_v42  ;;  %v6529_v41 = vld [vmem:[#allocation12 + $0x100] ss:$24 sps:$4 sm:$0xff]   ;;  %v6534_v42 = vld [vmem:[#allocation12 + $0x3fc] ss:$24 sps:$4 sm:$0xff]  }
 0x328   :  { %3744 = vmatpush1.bf16.msra.mxu0 %v6448_v43  ;;  %v6537_v43 = vld [vmem:[#allocation12 + $0xd4] ss:$24 sps:$4 sm:$0xff]  }
 0x329   :  { %3789 = vmatpush1.bf16.msra.mxu1 %v6451_v44  ;;  %3745 = vmatprep.subr.bf16.mxu0 %v6456_v46  ;;  %v6532_v44 = vld [vmem:[#allocation12 + $0x3f8] ss:$24 sps:$4 sm:$0xff]  }
 0x32a   :  { %3790 = vmatprep.subr.bf16.mxu1 %v6459_v47  ;;  %v6535_v46 = vld [vmem:[#allocation12 + $0xd0] ss:$24 sps:$4 sm:$0xff]   ;;  %v6543_v47 = vld [vmem:[#allocation12 + $0xa4] ss:$24 sps:$4 sm:$0xff]  }
 0x32c   :  { %3746 = vmatpush1.bf16.msra.mxu0 %v6454_v54  ;;  %v6538_v54 = vld [vmem:[#allocation12 + $0x3c8] ss:$24 sps:$4 sm:$0xff]  }
 0x32d   :  { %3791 = vmatpush1.bf16.msra.mxu1 %v6457_v55  ;;  %3747 = vmatprep.subr.bf16.mxu0 %v6462_v56  ;;  %v6541_v55 = vld [vmem:[#allocation12 + $0xa0] ss:$24 sps:$4 sm:$0xff]   ;;  %v6546_v56 = vld [vmem:[#allocation12 + $0x39c] ss:$24 sps:$4 sm:$0xff]  }
 0x32e   :  { %3792 = vmatprep.subr.bf16.mxu1 %v6465_v57  ;;  %v6549_v57 = vld [vmem:[#allocation12 + $0x74] ss:$24 sps:$4 sm:$0xff]  }
 0x330   :  { %3748 = vmatpush1.bf16.msra.mxu0 %v6460_v59  ;;  %v6544_v59 = vld [vmem:[#allocation12 + $0x398] ss:$24 sps:$4 sm:$0xff]  }
 0x331   :  { %3793 = vmatpush1.bf16.msra.mxu1 %v6463_v60  ;;  %3749 = vmatprep.subr.bf16.mxu0 %v6468_v61  ;;  %v6547_v60 = vld [vmem:[#allocation12 + $0x70] ss:$24 sps:$4 sm:$0xff]   ;;  %v6552_v61 = vld [vmem:[#allocation12 + $0x36c] ss:$24 sps:$4 sm:$0xff]  }
 0x332   :  { %3794 = vmatprep.subr.bf16.mxu1 %v6471_v62  ;;  %v6555_v62 = vld [vmem:[#allocation12 + $0x44] ss:$24 sps:$4 sm:$0xff]  }
 0x334   :  { %3750 = vmatpush1.bf16.msra.mxu0 %v6466_v63  ;;  %v6550_v63 = vld [vmem:[#allocation12 + $0x368] ss:$24 sps:$4 sm:$0xff]  }
 0x335   :  { %3795 = vmatpush2.bf16.msra.mxu1 %v6469_v1  ;;  %3751 = vmatprep.subr.bf16.mxu0 %v6474_v2  ;;  %v6553_v1 = vld [vmem:[#allocation12 + $0x40] ss:$24 sps:$4 sm:$0xff]   ;;  %v6558_v2 = vld [vmem:[#allocation12 + $0x33c] ss:$24 sps:$4 sm:$0xff]  }
 0x336   :  { %3796 = vmatprep.subr.bf16.mxu1 %v6477_v3  ;;  %v6561_v3 = vld [vmem:[#allocation12 + $0x14] ss:$24 sps:$4 sm:$0xff]  }
 0x338   :  { %3752 = vmatpush2.bf16.msra.mxu0 %v6472_v4  ;;  %v6556_v4 = vld [vmem:[#allocation12 + $0x338] ss:$24 sps:$4 sm:$0xff]  }
 0x339   :  { %3797 = vmatpush2.bf16.msra.mxu1 %v6475_v5  ;;  %3753 = vmatprep.subr.bf16.mxu0 %v6480_v6  ;;  %v6559_v5 = vld [vmem:[#allocation12 + $0x10] ss:$24 sps:$4 sm:$0xff]   ;;  %v6564_v6 = vld [vmem:[#allocation12 + $0x30c] ss:$24 sps:$4 sm:$0xff]  }
 0x33a   :  { %3798 = vmatprep.subr.bf16.mxu1 %v6483_v25  ;;  %v6567_v25 = vld [vmem:[#allocation12 + $0x2e4] ss:$24 sps:$4 sm:$0xff]  }
 0x33c   :  { %3754 = vmatpush2.bf16.msra.mxu0 %v6478_v7  ;;  %v6562_v7 = vld [vmem:[#allocation12 + $0x308] ss:$24 sps:$4 sm:$0xff]  }
 0x33d   :  { %3799 = vmatpush2.bf16.msra.mxu1 %v6481_v48  ;;  %3755 = vmatprep.subr.bf16.mxu0 %v6486_v8  ;;  %v6565_v48 = vld [vmem:[#allocation12 + $0x2e0] ss:$24 sps:$4 sm:$0xff]   ;;  %v6570_v8 = vld [vmem:[#allocation12 + $0x5dc] ss:$24 sps:$4 sm:$0xff]  }
 0x33e   :  { %3800 = vmatprep.subr.bf16.mxu1 %v6489_v9  ;;  %v6573_v9 = vld [vmem:[#allocation12 + $0x2b4] ss:$24 sps:$4 sm:$0xff]  }
 0x340   :  { %3756 = vmatpush2.bf16.msra.mxu0 %v6484_v10  ;;  %v6568_v10 = vld [vmem:[#allocation12 + $0x5d8] ss:$24 sps:$4 sm:$0xff]  }
 0x341   :  { %3801 = vmatpush2.bf16.msra.mxu1 %v6487_v11  ;;  %3757 = vmatprep.subr.bf16.mxu0 %v6492_v12  ;;  %v6571_v11 = vld [vmem:[#allocation12 + $0x2b0] ss:$24 sps:$4 sm:$0xff]   ;;  %v6576_v12 = vld [vmem:[#allocation12 + $0x5ac] ss:$24 sps:$4 sm:$0xff]  }
 0x342   :  { %3802 = vmatprep.subr.bf16.mxu1 %v6495_v53  ;;  %v6579_v53 = vld [vmem:[#allocation12 + $0x284] ss:$24 sps:$4 sm:$0xff]  }
 0x344   :  { %3758 = vmatpush2.bf16.msra.mxu0 %v6490_v13  ;;  %v6574_v13 = vld [vmem:[#allocation12 + $0x5a8] ss:$24 sps:$4 sm:$0xff]  }
 0x345   :  { %3803 = vmatpush2.bf16.msra.mxu1 %v6493_v29  ;;  %3759 = vmatprep.subr.bf16.mxu0 %v6498_v14  ;;  %v6577_v29 = vld [vmem:[#allocation12 + $0x280] ss:$24 sps:$4 sm:$0xff]   ;;  %v6582_v14 = vld [vmem:[#allocation12 + $0x57c] ss:$24 sps:$4 sm:$0xff]  }
 0x346   :  { %3804 = vmatprep.subr.bf16.mxu1 %v6501_v15  ;;  %v6585_v15 = vld [vmem:[#allocation12 + $0x254] ss:$24 sps:$4 sm:$0xff]  }
 0x348   :  { %3760 = vmatpush2.bf16.msra.mxu0 %v6496_v16  ;;  %v6580_v16 = vld [vmem:[#allocation12 + $0x578] ss:$24 sps:$4 sm:$0xff]  }
 0x349   :  { %3805 = vmatpush2.bf16.msra.mxu1 %v6499_v17  ;;  %3761 = vmatprep.subr.bf16.mxu0 %v6504_v18  ;;  %v6583_v17 = vld [vmem:[#allocation12 + $0x250] ss:$24 sps:$4 sm:$0xff]   ;;  %v6588_v18 = vld [vmem:[#allocation12 + $0x54c] ss:$24 sps:$4 sm:$0xff]  }
 0x34a   :  { %3806 = vmatprep.subr.bf16.mxu1 %v6507_v19  ;;  %v6591_v19 = vld [vmem:[#allocation12 + $0x224] ss:$24 sps:$4 sm:$0xff]  }
 0x34c   :  { %3762 = vmatpush2.bf16.msra.mxu0 %v6502_v21  ;;  %v6586_v21 = vld [vmem:[#allocation12 + $0x548] ss:$24 sps:$4 sm:$0xff]  }
 0x34d   :  { %3807 = vmatpush2.bf16.msra.mxu1 %v6505_v22  ;;  %3763 = vmatprep.subr.bf16.mxu0 %v6510_v23  ;;  %v6589_v22 = vld [vmem:[#allocation12 + $0x220] ss:$24 sps:$4 sm:$0xff]   ;;  %v6594_v23 = vld [vmem:[#allocation12 + $0x51c] ss:$24 sps:$4 sm:$0xff]  }
 0x34e   :  { %3808 = vmatprep.subr.bf16.mxu1 %v6513_v24  ;;  %v6597_v24 = vld [vmem:[#allocation12 + $0x1f4] ss:$24 sps:$4 sm:$0xff]  }
 0x350   :  { %3764 = vmatpush2.bf16.msra.mxu0 %v6508_v26  ;;  %v6592_v26 = vld [vmem:[#allocation12 + $0x518] ss:$24 sps:$4 sm:$0xff]  }
 0x351   :  { %3809 = vmatpush2.bf16.msra.mxu1 %v6511_v27  ;;  %3765 = vmatprep.subr.bf16.mxu0 %v6516_v28  ;;  %v6595_v27 = vld [vmem:[#allocation12 + $0x1f0] ss:$24 sps:$4 sm:$0xff]   ;;  %v6600_v28 = vld [vmem:[#allocation12 + $0x4ec] ss:$24 sps:$4 sm:$0xff]  }
 0x352   :  { %3864 = vmatprep.subr.bf16.mxu1 %v6519_v30  ;;  %v6603_v30 = vld [vmem:[#allocation12 + $0x1c4] ss:$24 sps:$4 sm:$0xff]  }
 0x354   :  { %3766 = vmatpush2.bf16.msra.mxu0 %v6514_v31  ;;  %3811 = vmatmul.mubr.bf16.vlgmr.msra.gmra.mxu1 %v7324_v34  ;;  %v6598_v31 = vld [vmem:[#allocation12 + $0x4e8] ss:$24 sps:$4 sm:$0xff]  }
 0x355   :  { %3865 = vmatpush1.bf16.msra.mxu1 %v6517_v32  ;;  %3821 = vmatprep.subr.bf16.mxu0 %v6522_v52  ;;  %v6601_v32 = vld [vmem:[#allocation12 + $0x1c0] ss:$24 sps:$4 sm:$0xff]   ;;  %v6606_v52 = vld [vmem:[#allocation12 + $0x4bc] ss:$24 sps:$4 sm:$0xff]  }
 0x356   :  { %3866 = vmatprep.subr.bf16.mxu1 %v6525_v49  ;;  %3896 = vmatprep.mubr.bf16.mxu1 %v7312_v20  ;;  %v6540_v20 = vld [vmem:[#allocation12 + $0x3cc] ss:$24 sps:$4 sm:$0xff]  }
 0x357   :  { %3768 = vmatmul.mubr.bf16.vlgmr.msra.gmra.mxu0 %v7328_v39  ;;  %v6609_v49 = vld [vmem:[#allocation12 + $0x194] ss:$24 sps:$4 sm:$0xff]  }
 0x358   :  { %3822 = vmatpush1.bf16.msra.mxu0 %v6520_v35  ;;  %3853 = vmatprep.mubr.bf16.mxu0 %v7321_v33  ;;  %v6604_v35 = vld [vmem:[#allocation12 + $0x4b8] ss:$24 sps:$4 sm:$0xff]  }
 0x359   :  { %3867 = vmatpush1.bf16.msra.mxu1 %v6523_v37  ;;  %3823 = vmatprep.subr.bf16.mxu0 %v6528_v38  ;;  %v6607_v38 = vld [vmem:[#allocation12 + $0x190] ss:$24 sps:$4 sm:$0xff]  }
 0x35a   :  { %3868 = vmatprep.subr.bf16.mxu1 %v6531_v50  ;;  %v6612_v50 = vld [vmem:[#allocation12 + $0x48c] ss:$24 sps:$4 sm:$0xff]  }
 0x35c   :  { %3824 = vmatpush1.bf16.msra.mxu0 %v6526_v40  ;;  %v6624_v40 = vld [vmem:[#allocation15 + $0x154] ss:$24 sps:$4 sm:$0xff]  }
 0x35d   :  { %3869 = vmatpush1.bf16.msra.mxu1 %v6529_v41  ;;  %3825 = vmatprep.subr.bf16.mxu0 %v6534_v42  ;;  %v1763_v41 = vld [vmem:[%s7599_s9] sm:$0x3] }
 0x35e   :  { %3870 = vmatprep.subr.bf16.mxu1 %v6537_v43  ;;  %v6610_v42 = vld [vmem:[#allocation12 + $0x488] ss:$24 sps:$4 sm:$0xff]  }
 0x360   :  { %3826 = vmatpush1.bf16.msra.mxu0 %v6532_v44  ;;  %v6615_v44 = vld [vmem:[#allocation12 + $0x464] ss:$24 sps:$4 sm:$0xff]  }
 0x361   :  { %3871 = vmatpush1.bf16.msra.mxu1 %v6535_v46  ;;  %3827 = vmatprep.subr.bf16.mxu0 %v6540_v20  ;;  %v6622_v46 = vld [vmem:[#allocation15 + $0x150] ss:$24 sps:$4 sm:$0xff]   ;;  %v1768_v20 = vrot.slane %v1763_v41, %v7293_v58 }
 0x362   :  { %3872 = vmatprep.subr.bf16.mxu1 %v6543_v47  ;;  %v6630_v47 = vld [vmem:[#allocation15 + $0x124] ss:$24 sps:$4 sm:$0xff]  }
 0x364   :  { %3828 = vmatpush1.bf16.msra.mxu0 %v6538_v54  ;;  %v1772_v54 = vrot.slane %v1763_v41, %v7290_v0  ;;  %v6649_v41 = vld [vmem:[#allocation12 + $0x310] ss:$24 sps:$4 sm:$0xff]  }
 0x365   :  { %3873 = vmatpush1.bf16.msra.mxu1 %v6541_v55  ;;  %3829 = vmatprep.subr.bf16.mxu0 %v6546_v56  ;;  %v6613_v55 = vld [vmem:[#allocation12 + $0x460] ss:$24 sps:$4 sm:$0xff]  }
 0x366   :  { %3874 = vmatprep.subr.bf16.mxu1 %v6549_v57  ;;  %v6618_v57 = vld [vmem:[#allocation12 + $0x434] ss:$24 sps:$4 sm:$0xff]  }
 0x368   :  { %3830 = vmatpush1.bf16.msra.mxu0 %v6544_v59  ;;  %v6628_v59 = vld [vmem:[#allocation15 + $0x120] ss:$24 sps:$4 sm:$0xff]  }
 0x369   :  { %3875 = vmatpush1.bf16.msra.mxu1 %v6547_v60  ;;  %3831 = vmatprep.subr.bf16.mxu0 %v6552_v61  ;;  %v6636_v61 = vld [vmem:[#allocation15 + $0xf4] ss:$24 sps:$4 sm:$0xff]  }
 0x36a   :  { %3876 = vmatprep.subr.bf16.mxu1 %v6555_v62 }
 0x36c   :  { %3832 = vmatpush1.bf16.msra.mxu0 %v6550_v63 }
 0x36d   :  { %3877 = vmatpush1.bf16.msra.mxu1 %v6553_v1  ;;  %3833 = vmatprep.subr.bf16.mxu0 %v6558_v2  ;;  %v6616_v2 = vld [vmem:[#allocation12 + $0x430] ss:$24 sps:$4 sm:$0xff]  }
 0x36e   :  { %3878 = vmatprep.subr.bf16.mxu1 %v6561_v3 }
 0x370   :  { %3834 = vmatpush1.bf16.msra.mxu0 %v6556_v4  ;;  %v6621_v4 = vld [vmem:[#allocation12 + $0x404] ss:$24 sps:$4 sm:$0xff]  }
 0x371   :  { %3879 = vmatpush1.bf16.msra.mxu1 %v6559_v5  ;;  %3835 = vmatprep.subr.bf16.mxu0 %v6564_v6  ;;  %v6634_v5 = vld [vmem:[#allocation15 + $0xf0] ss:$24 sps:$4 sm:$0xff]  }
 0x372   :  { %3880 = vmatprep.subr.bf16.mxu1 %v6567_v25 }
 0x374   :  { %3836 = vmatpush1.bf16.msra.mxu0 %v6562_v7  ;;  %v2049_v37 = vpop.f32.mrf.mxu1  ;;  %v6642_v7 = vld [vmem:[#allocation15 + $0xc4] ss:$24 sps:$4 sm:$0xff]  }
 0x375   :  { %3881 = vmatpush2.bf16.msra.mxu1 %v6565_v48  ;;  %3837 = vmatprep.subr.bf16.mxu0 %v6570_v8  ;;  %v2050_v60 = vadd.f32 %v2049_v37, %v1768_v20  ;;  %v6664_v37 = vld [vmem:[#allocation15] ss:$24 sps:$4 sm:$0xff]  }
 0x376   :  { %3882 = vmatprep.subr.bf16.mxu1 %v6573_v9  ;;  %v2051_v43 = vpop.f32.mrf.mxu1 }
 0x377   :  { %v2052_v63 = vadd.f32 %v2051_v43, %v1772_v54 }
 0x378   :  { %3838 = vmatpush2.bf16.msra.mxu0 %v6568_v10  ;;  %v2053_v56 = vpop.f32.mrf.mxu1  ;;  %v6619_v10 = vld [vmem:[#allocation12 + $0x400] ss:$24 sps:$4 sm:$0xff]  }
 0x379   :  { %3883 = vmatpush2.bf16.msra.mxu1 %v6571_v11  ;;  %3839 = vmatprep.subr.bf16.mxu0 %v6576_v12  ;;  %v2054_v6 = vadd.f32 %v2053_v56, %v1768_v20  ;;  %v6627_v12 = vld [vmem:[#allocation12 + $0x3d4] ss:$24 sps:$4 sm:$0xff]  }
 0x37a   :  { %3884 = vmatprep.subr.bf16.mxu1 %v6579_v53  ;;  %v6640_v53 = vld [vmem:[#allocation15 + $0xc0] ss:$24 sps:$4 sm:$0xff]   ;;  %v6663_v56 = vld [vmem:[#allocation12 + $0x5b4] ss:$24 sps:$4 sm:$0xff]  }
 0x37c   :  { %3840 = vmatpush2.bf16.msra.mxu0 %v6574_v13 }
 0x37d   :  { %3885 = vmatpush2.bf16.msra.mxu1 %v6577_v29  ;;  %3841 = vmatprep.subr.bf16.mxu0 %v6582_v14  ;;  %v6648_v14 = vld [vmem:[#allocation15 + $0x94] ss:$24 sps:$4 sm:$0xff]  }
 0x37e   :  { %3886 = vmatprep.subr.bf16.mxu1 %v6585_v15 }
 0x380   :  { %3842 = vmatpush2.bf16.msra.mxu0 %v6580_v16 }
 0x381   :  { %3887 = vmatpush2.bf16.msra.mxu1 %v6583_v17  ;;  %3843 = vmatprep.subr.bf16.mxu0 %v6588_v18  ;;  %v6625_v17 = vld [vmem:[#allocation12 + $0x3d0] ss:$24 sps:$4 sm:$0xff]   ;;  %v6633_v18 = vld [vmem:[#allocation12 + $0x3a4] ss:$24 sps:$4 sm:$0xff]  }
 0x382   :  { %3888 = vmatprep.subr.bf16.mxu1 %v6591_v19  ;;  %v6646_v19 = vld [vmem:[#allocation15 + $0x90] ss:$24 sps:$4 sm:$0xff]  }
 0x384   :  { %3844 = vmatpush2.bf16.msra.mxu0 %v6586_v21 }
 0x385   :  { %3889 = vmatpush2.bf16.msra.mxu1 %v6589_v22  ;;  %3845 = vmatprep.subr.bf16.mxu0 %v6594_v23  ;;  %v6654_v22 = vld [vmem:[#allocation15 + $0x64] ss:$24 sps:$4 sm:$0xff]  }
 0x386   :  { %3890 = vmatprep.subr.bf16.mxu1 %v6597_v24  ;;  %v6631_v24 = vld [vmem:[#allocation12 + $0x3a0] ss:$24 sps:$4 sm:$0xff]  }
 0x388   :  { %3846 = vmatpush2.bf16.msra.mxu0 %v6592_v26  ;;  %v6639_v26 = vld [vmem:[#allocation12 + $0x374] ss:$24 sps:$4 sm:$0xff]  }
 0x389   :  { %3891 = vmatpush2.bf16.msra.mxu1 %v6595_v27  ;;  %3847 = vmatprep.subr.bf16.mxu0 %v6600_v28  ;;  %v6652_v27 = vld [vmem:[#allocation15 + $0x60] ss:$24 sps:$4 sm:$0xff]   ;;  %v6660_v28 = vld [vmem:[#allocation15 + $0x34] ss:$24 sps:$4 sm:$0xff]  }
 0x38a   :  { %3892 = vmatprep.subr.bf16.mxu1 %v6603_v30  ;;  %v6637_v30 = vld [vmem:[#allocation12 + $0x370] ss:$24 sps:$4 sm:$0xff]  }
 0x38c   :  { %3848 = vmatpush2.bf16.msra.mxu0 %v6598_v31  ;;  %v6645_v31 = vld [vmem:[#allocation12 + $0x344] ss:$24 sps:$4 sm:$0xff]  }
 0x38d   :  { %3893 = vmatpush2.bf16.msra.mxu1 %v6601_v32  ;;  %3849 = vmatprep.subr.bf16.mxu0 %v6606_v52  ;;  %v6658_v32 = vld [vmem:[#allocation15 + $0x30] ss:$24 sps:$4 sm:$0xff]   ;;  %v6666_v52 = vld [vmem:[#allocation15 + $0x4] ss:$24 sps:$4 sm:$0xff]  }
 0x38e   :  { %3894 = vmatprep.subr.bf16.mxu1 %v6609_v49  ;;  %v6643_v49 = vld [vmem:[#allocation12 + $0x340] ss:$24 sps:$4 sm:$0xff]  }
 0x390   :  { %3850 = vmatpush2.bf16.msra.mxu0 %v6604_v35  ;;  %v6651_v35 = vld [vmem:[#allocation12 + $0x314] ss:$24 sps:$4 sm:$0xff]  }
 0x391   :  { %3895 = vmatpush2.bf16.msra.mxu1 %v6607_v38  ;;  %3851 = vmatprep.subr.bf16.mxu0 %v6612_v50  ;;  %v6672_v38 = vld [vmem:[#allocation15 + $0x164] ss:$24 sps:$4 sm:$0xff]  }
 0x392   :  { %4297 = vmatprep.subr.bf16.mxu1 %v6624_v40 }
 0x394   :  { %3852 = vmatpush2.bf16.msra.mxu0 %v6610_v42  ;;  %3897 = vmatmul.mubr.bf16.vlgmr.msra.gmra.mxu1 %v7324_v34  ;;  %v2055_v34 = vpop.f32.mrf.mxu1  ;;  %v6657_v42 = vld [vmem:[#allocation12 + $0x5e4] ss:$24 sps:$4 sm:$0xff]  }
 0x395   :  { %3907 = vmatprep.subr.bf16.mxu0 %v6615_v44  ;;  %4298 = vmatpush1.bf16.msra.mxu1 %v6622_v46  ;;  %v2056_v8 = vadd.f32 %v2055_v34, %v1772_v54  ;;  %v228_v54 = vld [vmem:[#allocation4 + $0x20] sm:$0xff] }
 0x396   :  { %4299 = vmatprep.subr.bf16.mxu1 %v6630_v47  ;;  %4329 = vmatprep.mubr.bf16.mxu1 %v7067_v36  ;;  %v6655_v47 = vld [vmem:[#allocation12 + $0x5e0] ss:$24 sps:$4 sm:$0xff]  }
 0x397   :  { %3854 = vmatmul.mubr.bf16.vlgmr.msra.gmra.mxu0 %v7328_v39  ;;  %v2092_v62 = vpop.f32.mrf.mxu0 }
 0x398   :  { %v7340_v1 = vadd.f32 %v2092_v62, %v2050_v60  ;;  %3908 = vmatpush1.bf16.msra.mxu0 %v6613_v55  ;;  %3939 = vmatprep.mubr.bf16.mxu0 %v7321_v33  ;;  %v6661_v62 = vld [vmem:[#allocation12 + $0x5b0] ss:$24 sps:$4 sm:$0xff]  }
 0x399   :  { %v2094_v3 = vpop.f32.mrf.mxu0  ;;  %3909 = vmatprep.subr.bf16.mxu0 %v6618_v57  ;;  %4300 = vmatpush1.bf16.msra.mxu1 %v6628_v59  ;;  %v224_v59 = vld [vmem:[#allocation4] sm:$0xff] }
 0x39a   :  { %2101 = vst [vmem:[%s7606_s16] sm:$0xff] %v7340_v1  ;;  %v2095_v25 = vadd.f32 %v2094_v3, %v2052_v63  ;;  %4301 = vmatprep.subr.bf16.mxu1 %v6636_v61  ;;  %v225_v63 = vld [vmem:[#allocation4 + $0x8] sm:$0xff] }
 0x39b   :  { %v2096_v48 = vpop.f32.mrf.mxu0  ;;  %v6669_v3 = vld [vmem:[#allocation12 + $0x584] ss:$24 sps:$4 sm:$0xff]  }
 0x39c   :  { %2102 = vst [vmem:[%s7606_s16 + $0x8] sm:$0xff] %v2095_v25  ;;  %v2105_v33 = vmul.f32 0.5, %v2095_v25  ;;  %v7350_v9 = vadd.f32 %v2096_v48, %v2054_v6  ;;  %3910 = vmatpush1.bf16.msra.mxu0 %v6616_v2  ;;  %v229_v2 = vld [vmem:[#allocation4 + $0x28] sm:$0xff]  ;;  %v227_v48 = vld [vmem:[#allocation4 + $0x18] sm:$0xff] }
 0x39d   :  { %v2098_v11 = vpop.f32.mrf.mxu0  ;;  %3911 = vmatprep.subr.bf16.mxu0 %v6621_v4  ;;  %4302 = vmatpush1.bf16.msra.mxu1 %v6634_v5 }
 0x39e   :  { %v2109_v13 = vmin.f32 %v2105_v33, 0.0  ;;  %2103 = vst [vmem:[%s7606_s16 + $0x10] sm:$0xff] %v7350_v9  ;;  %v2099_v29 = vadd.f32 %v2098_v11, %v2056_v8  ;;  %4303 = vmatprep.subr.bf16.mxu1 %v6642_v7  ;;  %vm2107_vm7 = vcmp.gt.f32.partialorder %v2105_v33, 0.0  ;;  %v6667_v7 = vld [vmem:[#allocation12 + $0x580] ss:$24 sps:$4 sm:$0xff]  }
 0x3a0   :  { %v2111_v15 = vmul.f32 1.442695, %v2109_v13  ;;  %2104 = vst [vmem:[%s7606_s16 + $0x18] sm:$0xff] %v2099_v29  ;;  %v2106_v16 = vmul.f32 0.5, %v2099_v29  ;;  %3912 = vmatpush1.bf16.msra.mxu0 %v6619_v10  ;;  %v6675_v10 = vld [vmem:[#allocation12 + $0x554] ss:$24 sps:$4 sm:$0xff]  }
 0x3a1   :  { %3913 = vmatprep.subr.bf16.mxu0 %v6627_v12  ;;  %4304 = vmatpush1.bf16.msra.mxu1 %v6640_v53  ;;  %v6670_v12 = vld [vmem:[#allocation15 + $0x160] ss:$24 sps:$4 sm:$0xff]   ;;  %v6678_v29 = vld [vmem:[#allocation15 + $0x134] ss:$24 sps:$4 sm:$0xff]  }
 0x3a2   :  { %6781 = vpow2.f32 %v2111_v15  ;;  %v2110_v21 = vmin.f32 %v2106_v16, 0.0  ;;  %4305 = vmatprep.subr.bf16.mxu1 %v6648_v14  ;;  %vm2108_vm8 = vcmp.gt.f32.partialorder %v2106_v16, 0.0  ;;  %v226_v53 = vld [vmem:[#allocation4 + $0x10] sm:$0xff]  ;;  %v6673_v15 = vld [vmem:[#allocation12 + $0x550] ss:$24 sps:$4 sm:$0xff]  }
 0x3a4   :  { %v2113_v23 = vmul.f32 1.442695, %v2110_v21  ;;  %3914 = vmatpush1.bf16.msra.mxu0 %v6625_v17 }
 0x3a5   :  { %3915 = vmatprep.subr.bf16.mxu0 %v6633_v18  ;;  %4306 = vmatpush1.bf16.msra.mxu1 %v6646_v19  ;;  %v6676_v18 = vld [vmem:[#allocation15 + $0x130] ss:$24 sps:$4 sm:$0xff]   ;;  %v6684_v19 = vld [vmem:[#allocation15 + $0x104] ss:$24 sps:$4 sm:$0xff]  }
 0x3a6   :  { %6783 = vpow2.f32 %v2113_v23  ;;  %4307 = vmatprep.subr.bf16.mxu1 %v6654_v22  ;;  %v6679_v22 = vld [vmem:[#allocation12 + $0x520] ss:$24 sps:$4 sm:$0xff]  }
 0x3a8   :  { %3916 = vmatpush1.bf16.msra.mxu0 %v6631_v24  ;;  %v6687_v24 = vld [vmem:[#allocation12 + $0x4f4] ss:$24 sps:$4 sm:$0xff]  }
 0x3a9   :  { %3917 = vmatprep.subr.bf16.mxu0 %v6639_v26  ;;  %4308 = vmatpush1.bf16.msra.mxu1 %v6652_v27  ;;  %v6682_v26 = vld [vmem:[#allocation15 + $0x100] ss:$24 sps:$4 sm:$0xff]  }
 0x3aa   :  { %4309 = vmatprep.subr.bf16.mxu1 %v6660_v28  ;;  %v6690_v28 = vld [vmem:[#allocation15 + $0xd4] ss:$24 sps:$4 sm:$0xff]  }
 0x3ac   :  { %3918 = vmatpush1.bf16.msra.mxu0 %v6637_v30  ;;  %v6685_v30 = vld [vmem:[#allocation12 + $0x4f0] ss:$24 sps:$4 sm:$0xff]  }
 0x3ad   :  { %3919 = vmatprep.subr.bf16.mxu0 %v6645_v31  ;;  %4310 = vmatpush1.bf16.msra.mxu1 %v6658_v32  ;;  %v6693_v31 = vld [vmem:[#allocation12 + $0x4c4] ss:$24 sps:$4 sm:$0xff]  }
 0x3ae   :  { %4311 = vmatprep.subr.bf16.mxu1 %v6666_v52  ;;  %v6696_v32 = vld [vmem:[#allocation15 + $0xa4] ss:$24 sps:$4 sm:$0xff]   ;;  %v6699_v52 = vld [vmem:[#allocation12 + $0x494] ss:$24 sps:$4 sm:$0xff]  }
 0x3af   :  { %v6782_v50 = vpop.eup %6781 }
 0x3b0   :  { %v5408_v40 = vadd.f32 -1.0, %v6782_v50  ;;  %3920 = vmatpush1.bf16.msra.mxu0 %v6643_v49  ;;  %v6694_v49 = vld [vmem:[#allocation15 + $0xa0] ss:$24 sps:$4 sm:$0xff]   ;;  %v6705_v50 = vld [vmem:[#allocation15 + $0x15c] ss:$24 sps:$4 sm:$0xff]  }
 0x3b1   :  { %3921 = vmatprep.subr.bf16.mxu0 %v6651_v35  ;;  %4312 = vmatpush1.bf16.msra.mxu1 %v6664_v37  ;;  %v6702_v37 = vld [vmem:[#allocation15 + $0x74] ss:$24 sps:$4 sm:$0xff]  }
 0x3b2   :  { %v2117_v43 = vsel %vm2107_vm7, %v2105_v33, %v5408_v40  ;;  %4423 = vmatprep.subr.bf16.mxu1 %v6672_v38  ;;  %v6697_v38 = vld [vmem:[#allocation12 + $0x490] ss:$24 sps:$4 sm:$0xff]  }
 0x3b3   :  { %v6784_v44 = vpop.eup %6783  ;;  %v2119_v46 = vadd.f32 1.0, %v2117_v43  ;;  %v6700_v40 = vld [vmem:[#allocation15 + $0x70] ss:$24 sps:$4 sm:$0xff]   ;;  %v6711_v43 = vld [vmem:[#allocation15 + $0x12c] ss:$24 sps:$4 sm:$0xff]  }
 0x3b4   :  { %v5409_v20 = vadd.f32 -1.0, %v6784_v44  ;;  %3922 = vmatpush1.bf16.msra.mxu0 %v6649_v41  ;;  %v6708_v41 = vld [vmem:[#allocation15 + $0x44] ss:$24 sps:$4 sm:$0xff]   ;;  %v6706_v44 = vld [vmem:[#allocation15 + $0x40] ss:$24 sps:$4 sm:$0xff]  }
 0x3b5   :  { %v2121_v55 = vadd.f32 1e-05, %v2119_v46  ;;  %3923 = vmatprep.subr.bf16.mxu0 %v6657_v42  ;;  %v6703_v42 = vld [vmem:[#allocation15 + $0x158] ss:$24 sps:$4 sm:$0xff]   ;;  %v6714_v46 = vld [vmem:[#allocation15 + $0x14] ss:$24 sps:$4 sm:$0xff]  }
 0x3b6   :  { %v2118_v57 = vsel %vm2108_vm8, %v2106_v16, %v5409_v20  ;;  %v6681_v16 = vld [vmem:[#allocation12 + $0x524] ss:$24 sps:$4 sm:$0xff]   ;;  %v6709_v20 = vld [vmem:[#allocation15 + $0x128] ss:$24 sps:$4 sm:$0xff]  }
 0x3b7   :  { %v2120_v60 = vadd.f32 1.0, %v2118_v57  ;;  %v3998_v61 = vmul.f32 %v2121_v55, %v228_v54  ;;  %v3994_v4 = vmul.f32 %v2121_v55, %v224_v59  ;;  %v3996_v17 = vmul.f32 %v2121_v55, %v226_v53  ;;  %v6712_v54 = vld [vmem:[#allocation15 + $0x10] ss:$24 sps:$4 sm:$0xff]  }
 0x3b8   :  { %3924 = vmatpush2.bf16.msra.mxu0 %v6655_v47  ;;  %v6717_v47 = vld [vmem:[#allocation15 + $0xfc] ss:$24 sps:$4 sm:$0xff]   ;;  %v6715_v55 = vld [vmem:[#allocation15 + $0xf8] ss:$24 sps:$4 sm:$0xff]   ;;  %v6718_v57 = vld [vmem:[#allocation15 + $0xc8] ss:$24 sps:$4 sm:$0xff]  }
 0x3b9   :  { %v2122_v34 = vadd.f32 1e-05, %v2120_v60  ;;  %3925 = vmatprep.subr.bf16.mxu0 %v6663_v56  ;;  %v4004_v5 = vadd.f32 %v3998_v61, %v7340_v1  ;;  %v4000_v8 = vadd.f32 %v3994_v4, %v7340_v1  ;;  %v4002_v23 = vadd.f32 %v3996_v17, %v7340_v1  ;;  %v6691_v1 = vld [vmem:[#allocation12 + $0x4c0] ss:$24 sps:$4 sm:$0xff]   ;;  %v6720_v56 = vld [vmem:[#allocation15 + $0xcc] ss:$24 sps:$4 sm:$0xff]  }
 0x3ba   :  { %v6721_v59 = vld [vmem:[#allocation15 + $0x98] ss:$24 sps:$4 sm:$0xff]   ;;  %v6726_v60 = vld [vmem:[#allocation15 + $0x6c] ss:$24 sps:$4 sm:$0xff]   ;;  %v6724_v61 = vld [vmem:[#allocation15 + $0x68] ss:$24 sps:$4 sm:$0xff]  }
 0x3bb   :  { %v3995_v6 = vmul.f32 %v2122_v34, %v225_v63  ;;  %v3999_v25 = vmul.f32 %v2122_v34, %v229_v2  ;;  %5180 = vst [vmem:[%s7608_s18] sm:$0xff] %v4004_v5  ;;  %v3997_v14 = vmul.f32 %v2122_v34, %v227_v48  ;;  %v6727_v63 = vld [vmem:[#allocation15 + $0x38] ss:$24 sps:$4 sm:$0xff]   ;;  %v6732_v2 = vld [vmem:[#allocation15 + $0xc] ss:$24 sps:$4 sm:$0xff]   ;;  %v6730_v34 = vld [vmem:[#allocation15 + $0x8] ss:$24 sps:$4 sm:$0xff]  }
 0x3bc   :  { %3926 = vmatpush2.bf16.msra.mxu0 %v6661_v62  ;;  %v6729_v62 = vld [vmem:[#allocation15 + $0x3c] ss:$24 sps:$4 sm:$0xff]   ;;  %v6739_v48 = vld [vmem:[#allocation18 + $0x60] sm:$0xff]  }
 0x3bd   :  { %3927 = vmatprep.subr.bf16.mxu0 %v6669_v3  ;;  %v4001_v33 = vadd.f32 %v3995_v6, %v7350_v9  ;;  %v4005_v11 = vadd.f32 %v3999_v25, %v7350_v9  ;;  %v4003_v21 = vadd.f32 %v3997_v14, %v7350_v9  ;;  %v6688_v9 = vld [vmem:[#allocation15 + $0xd0] ss:$24 sps:$4 sm:$0xff]   ;;  %v6733_v3 = vld [vmem:[#allocation18 + $0x78] sm:$0xff]   ;;  %v6736_v6 = vld [vmem:[#allocation18 + $0x30] sm:$0xff]  }
 0x3be   :  { %v6734_v4 = vld [vmem:[#allocation18 + $0x38] sm:$0xff]   ;;  %v6737_v25 = vld [vmem:[#allocation18 + $0x68] sm:$0xff]   ;;  %v6764_v17 = vld [vmem:[#allocation18 + $0xf0] sm:$0xff]  }
 0x3bf   :  { %v7366_v13 = vpack.c.bf16 %v4001_v33, %v4000_v8  ;;  %5181 = vst [vmem:[%s7608_s18 + $0x8] sm:$0xff] %v4005_v11  ;;  %v7375_v27 = vpack.c.bf16 %v4003_v21, %v4002_v23  ;;  %v7379_v35 = vpack.c.bf16 %v4005_v11, %v4004_v5  ;;  %v6735_v5 = vld [vmem:[#allocation18 + $0x70] sm:$0xff]   ;;  %v6740_v8 = vld [vmem:[#allocation18 + $0x20] sm:$0xff]   ;;  %v6741_v33 = vld [vmem:[#allocation18 + $0x58] sm:$0xff]  }
 0x3c0   :  { %3928 = vmatpush2.bf16.msra.mxu0 %v6667_v7  ;;  %v6738_v7 = vld [vmem:[#allocation18 + $0x28] sm:$0xff]   ;;  %v6743_v11 = vld [vmem:[#allocation18 + $0x50] sm:$0xff]   ;;  %v6749_v14 = vld [vmem:[#allocation18 + $0x178] sm:$0xff]  }
 0x3c1   :  { %4330 = vmatmul.mubr.bf16.vlgmr.msra.gmra.mxu1 %v7366_v13  ;;  %3929 = vmatprep.subr.bf16.mxu0 %v6675_v10  ;;  %v6742_v10 = vld [vmem:[#allocation18 + $0x18] sm:$0xff]   ;;  %v6745_v53 = vld [vmem:[#allocation18 + $0x48] sm:$0xff]   ;;  %v6772_v23 = vld [vmem:[#allocation18 + $0xa0] sm:$0xff]  }
 0x3c2   :  { %4424 = vmatpush1.bf16.msra.mxu1 %v6670_v12  ;;  %4339 = vmatprep.mubr.bf16.mxu1 %v7067_v36  ;;  %v6744_v12 = vld [vmem:[#allocation18 + $0x10] sm:$0xff]   ;;  %v6770_v21 = vld [vmem:[#allocation18 + $0xa8] sm:$0xff]  }
 0x3c3   :  { %4425 = vmatprep.subr.bf16.mxu1 %v6678_v29  ;;  %v6747_v29 = vld [vmem:[#allocation18 + $0x40] sm:$0xff]  }
 0x3c4   :  { %3930 = vmatpush2.bf16.msra.mxu0 %v6673_v15  ;;  %v6760_v15 = vld [vmem:[#allocation18 + $0xf8] sm:$0xff]  }
 0x3c5   :  { %3931 = vmatprep.subr.bf16.mxu0 %v6681_v16  ;;  %v6762_v16 = vld [vmem:[#allocation18 + $0xb8] sm:$0xff]  }
 0x3c6   :  { %4426 = vmatpush1.bf16.msra.mxu1 %v6676_v18  ;;  %v6766_v18 = vld [vmem:[#allocation18 + $0xb0] sm:$0xff]  }
 0x3c7   :  { %4427 = vmatprep.subr.bf16.mxu1 %v6684_v19  ;;  %v6768_v19 = vld [vmem:[#allocation18 + $0xe8] sm:$0xff]  }
 0x3c8   :  { %3932 = vmatpush2.bf16.msra.mxu0 %v6679_v22  ;;  %v6771_v22 = vld [vmem:[#allocation18 + $0xe0] sm:$0xff]  }
 0x3c9   :  { %4340 = vmatmul.mubr.bf16.gmra.mxu1 %v7375_v27  ;;  %3933 = vmatprep.subr.bf16.mxu0 %v6687_v24  ;;  %v6773_v24 = vld [vmem:[#allocation18 + $0xd8] sm:$0xff]  }
 0x3ca   :  { %4428 = vmatpush1.bf16.msra.mxu1 %v6682_v26  ;;  %4349 = vmatprep.mubr.bf16.mxu1 %v7067_v36  ;;  %v6774_v26 = vld [vmem:[#allocation18 + $0x98] sm:$0xff]  }
 0x3cb   :  { %4429 = vmatprep.subr.bf16.mxu1 %v6690_v28  ;;  %v6776_v28 = vld [vmem:[#allocation18 + $0x90] sm:$0xff]  }
 0x3cc   :  { %3934 = vmatpush2.bf16.msra.mxu0 %v6685_v30  ;;  %v6777_v30 = vld [vmem:[#allocation18 + $0xc8] sm:$0xff]  }
 0x3cd   :  { %3935 = vmatprep.subr.bf16.mxu0 %v6693_v31  ;;  %v6778_v31 = vld [vmem:[#allocation18 + $0x88] sm:$0xff]  }
 0x3ce   :  { %4430 = vmatpush1.bf16.msra.mxu1 %v6688_v9  ;;  %v6779_v9 = vld [vmem:[#allocation18 + $0xc0] sm:$0xff]  }
 0x3cf   :  { %4431 = vmatprep.subr.bf16.mxu1 %v6696_v32  ;;  %v6780_v32 = vld [vmem:[#allocation18 + $0x80] sm:$0xff]  }
 0x3d0   :  { %3936 = vmatpush2.bf16.msra.mxu0 %v6691_v1  ;;  %v7395_v1 = vpop.f32.mrf.mxu1 }
 0x3d1   :  { %4350 = vmatmul.mubr.bf16.gmra.mxu1 %v7379_v35  ;;  %3937 = vmatprep.subr.bf16.mxu0 %v6699_v52 }
 0x3d2   :  { %4432 = vmatpush1.bf16.msra.mxu1 %v6694_v49  ;;  %4455 = vmatprep.mubr.bf16.mxu1 %v7067_v36  ;;  %v7397_v52 = vpop.f32.mrf.mxu1 }
 0x3d3   :  { %4433 = vmatprep.subr.bf16.mxu1 %v6702_v37  ;;  %v2637_v37 = vpop.f32.mrf.mxu0 }
 0x3d4   :  { %3938 = vmatpush2.bf16.msra.mxu0 %v6697_v38  ;;  %v7399_v49 = vpop.f32.mrf.mxu1 }
 0x3d5   :  { %4360 = vmatprep.subr.bf16.mxu0 %v6705_v50  ;;  %v2639_v50 = vpop.f32.mrf.mxu0 }
 0x3d6   :  { %4434 = vmatpush1.bf16.msra.mxu1 %v6700_v40 }
 0x3d7   :  { %3940 = vmatmul.mubr.bf16.vlgmr.msra.gmra.mxu0 %v7328_v39  ;;  %4435 = vmatprep.subr.bf16.mxu1 %v6708_v41  ;;  %v6723_v39 = vld [vmem:[#allocation15 + $0x9c] ss:$24 sps:$4 sm:$0xff]   ;;  %v2641_v41 = vpop.f32.mrf.mxu0 }
 0x3d8   :  { %4361 = vmatpush1.bf16.msra.mxu0 %v6703_v42  ;;  %4392 = vmatprep.mubr.bf16.mxu0 %v7067_v36 }
 0x3d9   :  { %4362 = vmatprep.subr.bf16.mxu0 %v6711_v43  ;;  %v2643_v43 = vpop.f32.mrf.mxu0 }
 0x3da   :  { %4436 = vmatpush1.bf16.msra.mxu1 %v6706_v44 }
 0x3db   :  { %4437 = vmatprep.subr.bf16.mxu1 %v6714_v46  ;;  %v7403_v46 = vpop.f32.mrf.mxu0 }
 0x3dc   :  { %4363 = vmatpush1.bf16.msra.mxu0 %v6709_v20 }
 0x3dd   :  { %4364 = vmatprep.subr.bf16.mxu0 %v6717_v47  ;;  %v7407_v47 = vpop.f32.mrf.mxu0 }
 0x3de   :  { %4438 = vmatpush1.bf16.msra.mxu1 %v6712_v54 }
 0x3df   :  { %5852 = vmatprep.subr.bf16.mxu1 %v6760_v15 }
 0x3e0   :  { %4365 = vmatpush1.bf16.msra.mxu0 %v6715_v55  ;;  %v7411_v55 = vpop.f32.mrf.mxu0 }
 0x3e1   :  { %4456 = vmatmul.mubr.bf16.vlgmr.msra.gmra.mxu1 %v7366_v13  ;;  %4366 = vmatprep.subr.bf16.mxu0 %v6720_v56 }
 0x3e2   :  { %4465 = vmatprep.mubr.bf16.mxu1 %v7067_v36  ;;  %5853 = vmatpush3.bf16.msra.mxu1 %v6762_v16 }
 0x3e3   :  { %5854 = vmatprep.subr.bf16.mxu1 %v6764_v17 }
 0x3e4   :  { %4367 = vmatpush1.bf16.msra.mxu0 %v6718_v57  ;;  %v7415_v57 = vpop.f32.mrf.mxu0 }
 0x3e5   :  { %4368 = vmatprep.subr.bf16.mxu0 %v6723_v39 }
 0x3e6   :  { %5855 = vmatpush3.bf16.msra.mxu1 %v6766_v18 }
 0x3e7   :  { %5856 = vmatprep.subr.bf16.mxu1 %v6768_v19 }
 0x3e8   :  { %4369 = vmatpush1.bf16.msra.mxu0 %v6721_v59 }
 0x3e9   :  { %4466 = vmatmul.mubr.bf16.gmra.mxu1 %v7375_v27  ;;  %4370 = vmatprep.subr.bf16.mxu0 %v6726_v60 }
 0x3ea   :  { %4475 = vmatprep.mubr.bf16.mxu1 %v7067_v36  ;;  %5857 = vmatpush3.bf16.msra.mxu1 %v6770_v21 }
 0x3eb   :  { %5858 = vmatprep.subr.bf16.mxu1 %v6771_v22 }
 0x3ec   :  { %4371 = vmatpush1.bf16.msra.mxu0 %v6724_v61 }
 0x3ed   :  { %4372 = vmatprep.subr.bf16.mxu0 %v6729_v62 }
 0x3ee   :  { %5859 = vmatpush3.bf16.msra.mxu1 %v6772_v23 }
 0x3ef   :  { %5860 = vmatprep.subr.bf16.mxu1 %v6773_v24 }
 0x3f0   :  { %4373 = vmatpush1.bf16.msra.mxu0 %v6727_v63 }
 0x3f1   :  { %4476 = vmatmul.mubr.bf16.gmra.mxu1 %v7379_v35  ;;  %4374 = vmatprep.subr.bf16.mxu0 %v6732_v2 }
 0x3f2   :  { %5861 = vmatpush3.bf16.msra.mxu1 %v6774_v26 }
 0x3f4   :  { %4375 = vmatpush1.bf16.msra.mxu0 %v6730_v34 }
 0x3f5   :  { %5818 = vmatprep.subr.bf16.mxu0 %v6733_v3  ;;  %v7425_v3 = vld [vmem:[#allocation16] sm:$0x3f] }
 0x3f7   :  { %4393 = vmatmul.mubr.bf16.vlgmr.msra.gmra.mxu0 %v7366_v13  ;;  %v6746_v13 = vld [vmem:[#allocation18 + $0x8] sm:$0xff]  }
 0x3f8   :  { %4402 = vmatprep.mubr.bf16.mxu0 %v7067_v36  ;;  %5819 = vmatpush3.bf16.msra.mxu0 %v6734_v4 }
 0x3f9   :  { %5820 = vmatprep.subr.bf16.mxu0 %v6735_v5 }
 0x3fc   :  { %5821 = vmatpush3.bf16.msra.mxu0 %v6736_v6 }
 0x3fd   :  { %5822 = vmatprep.subr.bf16.mxu0 %v6737_v25  ;;  %v3959_v25 = vrot.slane %v7425_v3, %v7290_v0 }
 0x3ff   :  { %4403 = vmatmul.mubr.bf16.gmra.mxu0 %v7375_v27  ;;  %v6775_v27 = vld [vmem:[#allocation18 + $0xd0] sm:$0xff]  }
 0x400   :  { %4412 = vmatprep.mubr.bf16.mxu0 %v7067_v36  ;;  %5823 = vmatpush3.bf16.msra.mxu0 %v6738_v7  ;;  %v6748_v36 = vld [vmem:[#allocation18] sm:$0xff]  }
 0x401   :  { %5824 = vmatprep.subr.bf16.mxu0 %v6739_v48  ;;  %5862 = vmatprep.subr.bf16.mxu1 %v6775_v27  ;;  %v3955_v48 = vrot.slane %v7425_v3, %v7293_v58 }
 0x402   :  { %5863 = vmatpush3.bf16.msra.mxu1 %v6776_v28 }
 0x403   :  { %5864 = vmatprep.subr.bf16.mxu1 %v6777_v30 }
 0x404   :  { %5825 = vmatpush3.bf16.msra.mxu0 %v6740_v8 }
 0x405   :  { %5826 = vmatprep.subr.bf16.mxu0 %v6741_v33 }
 0x406   :  { %5865 = vmatpush3.bf16.msra.mxu1 %v6778_v31 }
 0x407   :  { %4413 = vmatmul.mubr.bf16.gmra.mxu0 %v7379_v35  ;;  %5866 = vmatprep.subr.bf16.mxu1 %v6779_v9  ;;  %v7401_v35 = vpop.f32.mrf.mxu1 }
 0x408   :  { %5827 = vmatpush3.bf16.msra.mxu0 %v6742_v10 }
 0x409   :  { %5828 = vmatprep.subr.bf16.mxu0 %v6743_v11  ;;  %v3726_v38 = vpop.f32.mrf.mxu1 }
 0x40a   :  { %5867 = vmatpush3.bf16.msra.mxu1 %v6780_v32  ;;  %v3727_v4 = vadd.f32 %v3726_v38, %v2637_v37 }
 0x40b   :  { %5980 = vmatprep.subr.bf16.mxu1 %v6749_v14  ;;  %v3728_v40 = vpop.f32.mrf.mxu1 }
 0x40c   :  { %5829 = vmatpush3.bf16.msra.mxu0 %v6744_v12  ;;  %v3729_v34 = vadd.f32 %v3728_v40, %v2639_v50 }
 0x40d   :  { %5830 = vmatprep.subr.bf16.mxu0 %v6745_v53  ;;  %v3730_v42 = vpop.f32.mrf.mxu1 }
 0x40e   :  { %v3731_v5 = vadd.f32 %v3730_v42, %v2641_v41  ;;  %v7440_v42 = vld [vmem:[#allocation18 + $0x138] sm:$0xff]  }
 0x40f   :  { %v3732_v44 = vpop.f32.mrf.mxu1 }
 0x410   :  { %5831 = vmatpush3.bf16.msra.mxu0 %v6746_v13  ;;  %v3733_v10 = vadd.f32 %v3732_v44, %v2643_v43 }
 0x411   :  { %5832 = vmatprep.subr.bf16.mxu0 %v6747_v29 }
 0x414   :  { %5833 = vmatpush3.bf16.msra.mxu0 %v6748_v36  ;;  %v7405_v20 = vpop.f32.mrf.mxu1 }
 0x415   :  { %5886 = vmatprep.subr.bf16.mxu0 %v6749_v14 }
 0x416   :  { %v7409_v54 = vpop.f32.mrf.mxu1 }
 0x417   :  { %v3769_v59 = vpop.f32.mrf.mxu0 }
 0x418   :  { %v7413_v56 = vpop.f32.mrf.mxu1  ;;  %v3770_v7 = vadd.f32 %v3769_v59, %v3727_v4  ;;  %v7442_v59 = vld [vmem:[#allocation18 + $0x170] sm:$0xff]  }
 0x419   :  { %v3771_v61 = vpop.f32.mrf.mxu0 }
 0x41a   :  { %v7417_v39 = vpop.f32.mrf.mxu1  ;;  %v3772_v6 = vadd.f32 %v3771_v61, %v3729_v34  ;;  %v3982_v29 = vadd.f32 %v3955_v48, %v3770_v7  ;;  %v7448_v7 = vld [vmem:[#allocation18 + $0x130] sm:$0xff]  }
 0x41b   :  { %v3773_v63 = vpop.f32.mrf.mxu0 }
 0x41c   :  { %v3774_v11 = vadd.f32 %v3773_v63, %v3731_v5  ;;  %v3983_v53 = vadd.f32 %v3959_v25, %v3772_v6 }
 0x41d   :  { %v3775_v8 = vpop.f32.mrf.mxu0 }
 0x41e   :  { %v3776_v13 = vadd.f32 %v3775_v8, %v3733_v10  ;;  %v3988_v14 = vadd.f32 %v3955_v48, %v3774_v11  ;;  %v7451_v8 = vld [vmem:[#allocation18 + $0x168] sm:$0xff]  }
 0x420   :  { %v7433_v18 = vadd.f32 %v3959_v25, %v3776_v13 }
 0x454   :  { %v7419_v60 = vpop.f32.mrf.mxu1 }
 0x456   :  { %v7421_v62 = vpop.f32.mrf.mxu1 }
 0x457   :  { %v7436_v23 = vpop.f32.mrf.mxu0 }
 0x458   :  { %v7423_v2 = vpop.f32.mrf.mxu1 }
 0x459   :  { %v7438_v37 = vpop.f32.mrf.mxu0 }
 0x45a   :  { %v7431_v33 = vpop.f32.mrf.mxu1 }
 0x45b   :  { %v7445_v5 = vpop.f32.mrf.mxu0 }
 0x481   :  { %v4331_v12 = vpop.f32.mrf.mxu1 }
 0x482   :  { %v4332_v16 = vadd.f32 %v4331_v12, %v3982_v29 }
 0x483   :  { %v4333_v36 = vpop.f32.mrf.mxu1 }
 0x484   :  { %v4334_v15 = vadd.f32 %v4333_v36, %v3983_v53  ;;  %v4522_v24 = vmul.f32 0.2, %v4332_v16  ;;  %vm4486_vm11 = vcmp.gt.f32.partialorder %v4332_v16, 0.0 }
 0x485   :  { %v4335_v17 = vpop.f32.mrf.mxu1 }
 0x486   :  { %v4336_v0 = vadd.f32 %v4335_v17, %v3988_v14  ;;  %v4523_v21 = vmul.f32 0.2, %v4334_v15  ;;  %vm4487_vm10 = vcmp.gt.f32.partialorder %v4334_v15, 0.0  ;;  %v4558_v38 = vsel %vm4486_vm11, %v4332_v16, %v4522_v24  ;;  %v7460_v24 = vld [vmem:[#allocation18 + $0x160] sm:$0xff]  }
 0x487   :  { %v4337_v19 = vpop.f32.mrf.mxu1 }
 0x488   :  { %vm4492_vm9 = vcmp.gt.f32.partialorder %v4336_v0, 0.0  ;;  %v4528_v58 = vmul.f32 0.2, %v4336_v0  ;;  %v4338_v22 = vadd.f32 %v4337_v19, %v7433_v18  ;;  %v4559_v9 = vsel %vm4487_vm10, %v4334_v15, %v4523_v21  ;;  %v7454_v15 = vpop.f32.mrf.mxu0  ;;  %v7457_v21 = vld [vmem:[#allocation18 + $0x128] sm:$0xff]  }
 0x489   :  { %v4341_v26 = vpop.f32.mrf.mxu1 }
 0x48a   :  { %vm4493_vm12 = vcmp.gt.f32.partialorder %v4338_v22, 0.0  ;;  %v4529_v27 = vmul.f32 0.2, %v4338_v22  ;;  %v4564_v28 = vsel %vm4492_vm9, %v4336_v0, %v4528_v58  ;;  %v4342_v50 = vadd.f32 %v4341_v26, %v3982_v29 }
 0x48b   :  { %v4343_v30 = vpop.f32.mrf.mxu1  ;;  %v4594_v43 = vpack.c.bf16 %v4564_v28, %v4558_v38  ;;  %v7468_v38 = vld [vmem:[#allocation18 + $0x158] sm:$0xff]  }
 0x48c   :  { %v4344_v31 = vadd.f32 %v4343_v30, %v3983_v53  ;;  %v4565_v32 = vsel %vm4493_vm12, %v4338_v22, %v4529_v27  ;;  %v4534_v6 = vmul.f32 0.2, %v4342_v50  ;;  %vm4498_vm15 = vcmp.gt.f32.partialorder %v4342_v50, 0.0 }
 0x48d   :  { %v4345_v40 = vpop.f32.mrf.mxu1  ;;  %v4595_v41 = vpack.c.bf16 %v4565_v32, %v4559_v9  ;;  %v3974_v32 = vsub.s32 5, %v7287_v51 }
 0x48e   :  { %v4346_v44 = vadd.f32 %v4345_v40, %v3988_v14  ;;  %v4535_v63 = vmul.f32 0.2, %v4344_v31  ;;  %vm4499_vm14 = vcmp.gt.f32.partialorder %v4344_v31, 0.0  ;;  %v4570_v19 = vsel %vm4498_vm15, %v4342_v50, %v4534_v6 }
 0x48f   :  { %v4347_v61 = vpop.f32.mrf.mxu1  ;;  %5035 = vmatprep.mubr.bf16.mxu0 %v4595_v41  ;;  %v3970_v50 = vsub.s32 4, %v7287_v51  ;;  %v3901_v41 = vadd.f32 %v7421_v62, %v7407_v47  ;;  %v3903_v6 = vadd.f32 %v7423_v2, %v7411_v55  ;;  %v7483_v62 = vld [vmem:[#allocation18 + $0x150] sm:$0xff]  }
 0x490   :  { %vm4504_vm13 = vcmp.gt.f32.partialorder %v4346_v44, 0.0  ;;  %v4540_v34 = vmul.f32 0.2, %v4346_v44  ;;  %v4348_v4 = vadd.f32 %v4347_v61, %v7433_v18  ;;  %5036 = vmatmul.mubr.bf16.vlgmr.msra.gmra.mxu0 %v4594_v43  ;;  %v4571_v13 = vsel %vm4499_vm14, %v4344_v31, %v4535_v63  ;;  %v7489_v55 = vld [vmem:[#allocation18 + $0x110] sm:$0xff]  }
 0x491   :  { %5887 = vmatpush3.bf16.msra.mxu0 %v7440_v42  ;;  %v4351_v25 = vpop.f32.mrf.mxu1  ;;  %v3899_v61 = vadd.f32 %v7419_v60, %v7403_v46  ;;  %v3971_v46 = vrot.slane %v7425_v3, %v3970_v50 }
 0x492   :  { %vm4505_vm0 = vcmp.gt.f32.partialorder %v4348_v4, 0.0  ;;  %v4541_v48 = vmul.f32 0.2, %v4348_v4  ;;  %5888 = vmatprep.subr.bf16.mxu0 %v7442_v59  ;;  %v4576_v11 = vsel %vm4504_vm13, %v4346_v44, %v4540_v34  ;;  %v4352_v16 = vadd.f32 %v4351_v25, %v3982_v29 }
 0x493   :  { %v4353_v10 = vpop.f32.mrf.mxu1  ;;  %v4600_v22 = vpack.c.bf16 %v4576_v11, %v4570_v19  ;;  %v3905_v11 = vadd.f32 %v7431_v33, %v7415_v57 }
 0x494   :  { %v4354_v12 = vadd.f32 %v4353_v10, %v3983_v53  ;;  %v4577_v36 = vsel %vm4505_vm0, %v4348_v4, %v4541_v48  ;;  %v4546_v30 = vmul.f32 0.2, %v4352_v16  ;;  %vm4510_vm3 = vcmp.gt.f32.partialorder %v4352_v16, 0.0  ;;  %v7477_v4 = vld [vmem:[#allocation18 + $0x118] sm:$0xff]  }
 0x495   :  { %5889 = vmatpush3.bf16.msra.mxu0 %v7448_v7  ;;  %v4355_v17 = vpop.f32.mrf.mxu1  ;;  %v4601_v0 = vpack.c.bf16 %v4577_v36, %v4571_v13  ;;  %v3975_v48 = vrot.slane %v7425_v3, %v3974_v32  ;;  %v7513_v32 = vld [vmem:[#allocation18 + $0x100] sm:$0xff]  }
 0x496   :  { %v4356_v58 = vadd.f32 %v4355_v17, %v3988_v14  ;;  %5890 = vmatprep.subr.bf16.mxu0 %v7451_v8  ;;  %v4547_v27 = vmul.f32 0.2, %v4354_v12  ;;  %vm4511_vm2 = vcmp.gt.f32.partialorder %v4354_v12, 0.0  ;;  %v7464_v14 = vld [vmem:[#allocation18 + $0x120] sm:$0xff]   ;;  %v4582_v34 = vsel %vm4510_vm3, %v4352_v16, %v4546_v30  ;;  %v7494_v16 = vld [vmem:[#allocation18 + $0x148] sm:$0xff]  }
 0x497   :  { %v3941_v26 = vpop.f32.mrf.mxu0  ;;  %v4357_v53 = vpop.f32.mrf.mxu1  ;;  %5043 = vmatprep.mubr.bf16.mxu0 %v4601_v0 }
 0x498   :  { %vm4516_vm1 = vcmp.gt.f32.partialorder %v4356_v58, 0.0  ;;  %v4552_v28 = vmul.f32 0.2, %v4356_v58  ;;  %v4358_v29 = vadd.f32 %v4357_v53, %v7433_v18  ;;  %5044 = vmatmul.mubr.bf16.gmra.mxu0 %v4600_v22  ;;  %v4583_v43 = vsel %vm4511_vm2, %v4354_v12, %v4547_v27  ;;  %v7503_v22 = vld [vmem:[#allocation18 + $0x108] sm:$0xff]   ;;  %v7509_v27 = vld [vmem:[#allocation18 + $0x140] sm:$0xff]  }
 0x499   :  { %v3943_v31 = vpop.f32.mrf.mxu0  ;;  %5891 = vmatpush3.bf16.msra.mxu0 %v7457_v21  ;;  %v3942_v10 = vadd.f32 %v3941_v26, %v3899_v61 }
 0x49a   :  { %vm4517_vm4 = vcmp.gt.f32.partialorder %v4358_v29, 0.0  ;;  %v4553_v9 = vmul.f32 0.2, %v4358_v29  ;;  %5892 = vmatprep.subr.bf16.mxu0 %v7460_v24  ;;  %v4588_v40 = vsel %vm4516_vm1, %v4356_v58, %v4552_v28  ;;  %v3944_v25 = vadd.f32 %v3943_v31, %v3901_v41 }
 0x49b   :  { %v3945_v18 = vpop.f32.mrf.mxu0  ;;  %v4606_v47 = vpack.c.bf16 %v4588_v40, %v4582_v34  ;;  %v7496_v17 = vadd.f32 %v3971_v46, %v3942_v10  ;;  %v3966_v34 = vsub.s32 3, %v7287_v51 }
 0x49c   :  { %v4589_v44 = vsel %vm4517_vm4, %v4358_v29, %v4553_v9  ;;  %v3946_v12 = vadd.f32 %v3945_v18, %v3903_v6  ;;  %v7491_v2 = vadd.f32 %v3975_v48, %v3944_v25  ;;  %v3963_v25 = vrot.slane %v7425_v3, %v1683_v45 }
 0x49d   :  { %5893 = vmatpush3.bf16.msra.mxu0 %v7464_v14  ;;  %v4607_v63 = vpack.c.bf16 %v4589_v44, %v4583_v43  ;;  %v3947_v60 = vpop.f32.mrf.mxu0 }
 0x49e   :  { %5894 = vmatprep.subr.bf16.mxu0 %v7468_v38  ;;  %v3948_v36 = vadd.f32 %v3947_v60, %v3905_v11  ;;  %v7498_v19 = vadd.f32 %v3971_v46, %v3946_v12  ;;  %v3967_v46 = vrot.slane %v7425_v3, %v3966_v34 }
 0x49f   :  { %5051 = vmatprep.mubr.bf16.mxu0 %v4607_v63  ;;  %v3813_v63 = vadd.f32 %v7405_v20, %v7395_v1  ;;  %v3819_v1 = vadd.f32 %v7417_v39, %v7401_v35 }
 0x4a0   :  { %5052 = vmatmul.mubr.bf16.gmra.mxu0 %v4606_v47  ;;  %v7505_v26 = vadd.f32 %v3975_v48, %v3948_v36  ;;  %v3815_v48 = vadd.f32 %v7409_v54, %v7397_v52  ;;  %v3817_v47 = vadd.f32 %v7413_v56, %v7399_v49 }
 0x4a1   :  { %v4457_v13 = vpop.f32.mrf.mxu1  ;;  %5895 = vmatpush3.bf16.msra.mxu0 %v7477_v4  ;;  %v3856_v6 = vadd.f32 %v7436_v23, %v3813_v63  ;;  %v3862_v51 = vadd.f32 %v7454_v15, %v3819_v1 }
 0x4a2   :  { %5896 = vmatprep.subr.bf16.mxu0 %v7483_v62  ;;  %v4458_v33 = vadd.f32 %v4457_v13, %v7496_v17  ;;  %v3858_v10 = vadd.f32 %v7438_v37, %v3815_v48  ;;  %v3860_v23 = vadd.f32 %v7445_v5, %v3817_v47 }
 0x4a3   :  { %v4459_v0 = vpop.f32.mrf.mxu1  ;;  %v3984_v20 = vadd.f32 %v3963_v25, %v3856_v6  ;;  %v7536_v13 = vadd.f32 %v3967_v46, %v3862_v51 }
 0x4a4   :  { %v4460_v57 = vadd.f32 %v4459_v0, %v7491_v2  ;;  %v4526_v9 = vmul.f32 0.2, %v4458_v33  ;;  %vm4490_vm7 = vcmp.gt.f32.partialorder %v4458_v33, 0.0  ;;  %v3985_v11 = vadd.f32 %v3967_v46, %v3858_v10 }
 0x4a5   :  { %v4461_v58 = vpop.f32.mrf.mxu1  ;;  %5897 = vmatpush3.bf16.msra.mxu0 %v7489_v55  ;;  %v3990_v52 = vadd.f32 %v3963_v25, %v3860_v23 }
 0x4a6   :  { %v4462_v53 = vadd.f32 %v4461_v58, %v7498_v19  ;;  %5898 = vmatprep.subr.bf16.mxu0 %v7494_v16  ;;  %v4527_v29 = vmul.f32 0.2, %v4460_v57  ;;  %vm4491_vm6 = vcmp.gt.f32.partialorder %v4460_v57, 0.0  ;;  %v4562_v43 = vsel %vm4490_vm7, %v4458_v33, %v4526_v9 }
 0x4a7   :  { %v4463_v28 = vpop.f32.mrf.mxu1 }
 0x4a8   :  { %vm4496_vm5 = vcmp.gt.f32.partialorder %v4462_v53, 0.0  ;;  %v4532_v30 = vmul.f32 0.2, %v4462_v53  ;;  %v4464_v31 = vadd.f32 %v4463_v28, %v7505_v26  ;;  %v4563_v40 = vsel %vm4491_vm6, %v4460_v57, %v4527_v29 }
 0x4a9   :  { %5899 = vmatpush3.bf16.msra.mxu0 %v7503_v22  ;;  %v7534_v54 = vpop.f32.mrf.mxu1 }
 0x4aa   :  { %vm4497_vm8 = vcmp.gt.f32.partialorder %v4464_v31, 0.0  ;;  %v4533_v50 = vmul.f32 0.2, %v4464_v31  ;;  %5900 = vmatprep.subr.bf16.mxu0 %v7509_v27  ;;  %v4568_v18 = vsel %vm4496_vm5, %v4462_v53, %v4532_v30 }
 0x4ab   :  { %v4598_v61 = vpack.c.bf16 %v4568_v18, %v4562_v43  ;;  %v4469_v39 = vpop.f32.mrf.mxu1 }
 0x4ac   :  { %v4569_v41 = vsel %vm4497_vm8, %v4464_v31, %v4533_v50 }
 0x4ad   :  { %5901 = vmatpush3.bf16.msra.mxu0 %v7513_v32  ;;  %v4599_v44 = vpack.c.bf16 %v4569_v41, %v4563_v40  ;;  %v7539_v30 = vpop.f32.mrf.mxu1 }
 0x4af   :  { %5149 = vmatprep.mubr.bf16.mxu0 %v4599_v44 }
 0x4b0   :  { %5150 = vmatmul.mubr.bf16.vlgmr.msra.gmra.mxu0 %v4598_v61  ;;  %v4473_v61 = vpop.f32.mrf.mxu1 }
 0x4b1   :  { %v4474_v1 = vadd.f32 %v4473_v61, %v7505_v26 }
 0x4b3   :  { %vm4509_vm3 = vcmp.gt.f32.partialorder %v4474_v1, 0.0 }
 0x4b7   :  { %v4394_v60 = vpop.f32.mrf.mxu0 }
 0x4b8   :  { %v4395_v45 = vadd.f32 %v4394_v60, %v3984_v20 }
 0x4b9   :  { %v4396_v12 = vpop.f32.mrf.mxu0 }
 0x4ba   :  { %v4524_v49 = vmul.f32 0.2, %v4395_v45  ;;  %v4397_v56 = vadd.f32 %v4396_v12, %v3985_v11  ;;  %vm4488_vm9 = vcmp.gt.f32.partialorder %v4395_v45, 0.0 }
 0x4bb   :  { %v4398_v37 = vpop.f32.mrf.mxu0 }
 0x4bc   :  { %v4399_v3 = vadd.f32 %v4398_v37, %v3990_v52  ;;  %v4525_v36 = vmul.f32 0.2, %v4397_v56  ;;  %v4560_v0 = vsel %vm4488_vm9, %v4395_v45, %v4524_v49  ;;  %vm4489_vm11 = vcmp.gt.f32.partialorder %v4397_v56, 0.0 }
 0x4bd   :  { %v4400_v35 = vpop.f32.mrf.mxu0  ;;  %v4470_v49 = vadd.f32 %v4469_v39, %v7491_v2 }
 0x4be   :  { %vm4494_vm10 = vcmp.gt.f32.partialorder %v4399_v3, 0.0  ;;  %v4530_v5 = vmul.f32 0.2, %v4399_v3  ;;  %v4401_v15 = vadd.f32 %v4400_v35, %v7536_v13  ;;  %v4561_v9 = vsel %vm4489_vm11, %v4397_v56, %v4525_v36  ;;  %v7546_v56 = vpop.f32.mrf.mxu1 }
 0x4bf   :  { %v4404_v57 = vpop.f32.mrf.mxu0  ;;  %v4539_v39 = vmul.f32 0.2, %v4470_v49  ;;  %vm4503_vm6 = vcmp.gt.f32.partialorder %v4470_v49, 0.0 }
 0x4c0   :  { %v4566_v33 = vsel %vm4494_vm10, %v4399_v3, %v4530_v5  ;;  %vm4495_vm12 = vcmp.gt.f32.partialorder %v4401_v15, 0.0  ;;  %v4531_v58 = vmul.f32 0.2, %v4401_v15  ;;  %v4405_v53 = vadd.f32 %v4404_v57, %v3984_v20 }
 0x4c1   :  { %v4596_v28 = vpack.c.bf16 %v4566_v33, %v4560_v0  ;;  %v4406_v29 = vpop.f32.mrf.mxu0 }
 0x4c2   :  { %v4407_v31 = vadd.f32 %v4406_v29, %v3985_v11  ;;  %v4567_v50 = vsel %vm4495_vm12, %v4401_v15, %v4531_v58  ;;  %v4536_v18 = vmul.f32 0.2, %v4405_v53  ;;  %vm4500_vm13 = vcmp.gt.f32.partialorder %v4405_v53, 0.0  ;;  %v4479_v15 = vpop.f32.mrf.mxu1 }
 0x4c3   :  { %v4408_v40 = vpop.f32.mrf.mxu0  ;;  %v4597_v41 = vpack.c.bf16 %v4567_v50, %v4561_v9 }
 0x4c4   :  { %v4409_v43 = vadd.f32 %v4408_v40, %v3990_v52  ;;  %v4537_v63 = vmul.f32 0.2, %v4407_v31  ;;  %vm4501_vm15 = vcmp.gt.f32.partialorder %v4407_v31, 0.0  ;;  %v4572_v48 = vsel %vm4500_vm13, %v4405_v53, %v4536_v18 }
 0x4c5   :  { %v4410_v44 = vpop.f32.mrf.mxu0  ;;  %5092 = vmatprep.mubr.bf16.mxu1 %v4597_v41 }
 0x4c6   :  { %vm4506_vm14 = vcmp.gt.f32.partialorder %v4409_v43, 0.0  ;;  %v4542_v34 = vmul.f32 0.2, %v4409_v43  ;;  %v4411_v6 = vadd.f32 %v4410_v44, %v7536_v13  ;;  %5093 = vmatmul.mubr.bf16.vlgmr.msra.gmra.mxu1 %v4596_v28  ;;  %v4573_v45 = vsel %vm4501_vm15, %v4407_v31, %v4537_v63 }
 0x4c7   :  { %5988 = vmatpush3.bf16.msra.mxu1 %v7440_v42  ;;  %v4414_v25 = vpop.f32.mrf.mxu0  ;;  %v4575_v28 = vsel %vm4503_vm6, %v4470_v49, %v4539_v39 }
 0x4c8   :  { %vm4507_vm0 = vcmp.gt.f32.partialorder %v4411_v6, 0.0  ;;  %v4543_v47 = vmul.f32 0.2, %v4411_v6  ;;  %v4415_v10 = vadd.f32 %v4414_v25, %v3984_v20  ;;  %5981 = vmatprep.subr.bf16.mxu1 %v7442_v59  ;;  %v4578_v46 = vsel %vm4506_vm14, %v4409_v43, %v4542_v34 }
 0x4c9   :  { %v4416_v23 = vpop.f32.mrf.mxu0  ;;  %v4602_v60 = vpack.c.bf16 %v4578_v46, %v4572_v48  ;;  %v4545_v59 = vmul.f32 0.2, %v4474_v1 }
 0x4ca   :  { %v4417_v51 = vadd.f32 %v4416_v23, %v3985_v11  ;;  %v4579_v12 = vsel %vm4507_vm0, %v4411_v6, %v4543_v47  ;;  %v4548_v3 = vmul.f32 0.2, %v4415_v10  ;;  %vm4512_vm1 = vcmp.gt.f32.partialorder %v4415_v10, 0.0 }
 0x4cb   :  { %5989 = vmatpush3.bf16.msra.mxu1 %v7448_v7  ;;  %v4418_v42 = vpop.f32.mrf.mxu0  ;;  %v4603_v37 = vpack.c.bf16 %v4579_v12, %v4573_v45  ;;  %v4581_v58 = vsel %vm4509_vm3, %v4474_v1, %v4545_v59 }
 0x4cc   :  { %v4419_v20 = vadd.f32 %v4418_v42, %v3990_v52  ;;  %5982 = vmatprep.subr.bf16.mxu1 %v7451_v8  ;;  %v4549_v36 = vmul.f32 0.2, %v4417_v51  ;;  %vm4513_vm4 = vcmp.gt.f32.partialorder %v4417_v51, 0.0  ;;  %v4584_v8 = vsel %vm4512_vm1, %v4415_v10, %v4548_v3 }
 0x4cd   :  { %v4420_v35 = vpop.f32.mrf.mxu0  ;;  %5100 = vmatprep.mubr.bf16.mxu1 %v4603_v37 }
 0x4ce   :  { %vm4518_vm2 = vcmp.gt.f32.partialorder %v4419_v20, 0.0  ;;  %v4554_v11 = vmul.f32 0.2, %v4419_v20  ;;  %v4421_v5 = vadd.f32 %v4420_v35, %v7536_v13  ;;  %5101 = vmatmul.mubr.bf16.gmra.mxu1 %v4602_v60  ;;  %v4585_v57 = vsel %vm4513_vm4, %v4417_v51, %v4549_v36  ;;  %v4481_v13 = vpop.f32.mrf.mxu1  ;;  %v5698_v51 = vld [vmem:[#allocation19] ss:$0 sm:$0xff] }
 0x4cf   :  { %5990 = vmatpush3.bf16.msra.mxu1 %v7457_v21  ;;  %v4605_v21 = vpack.c.bf16 %v4581_v58, %v4575_v28 }
 0x4d0   :  { %vm4519_vm5 = vcmp.gt.f32.partialorder %v4421_v5, 0.0  ;;  %v4555_v7 = vmul.f32 0.2, %v4421_v5  ;;  %5983 = vmatprep.subr.bf16.mxu1 %v7460_v24  ;;  %v4590_v52 = vsel %vm4518_vm2, %v4419_v20, %v4554_v11  ;;  %v4483_v29 = vpop.f32.mrf.mxu1  ;;  %v4472_v24 = vadd.f32 %v7539_v30, %v7498_v19 }
 0x4d1   :  { %v4608_v0 = vpack.c.bf16 %v4590_v52, %v4584_v8  ;;  %v4484_v31 = vadd.f32 %v4483_v29, %v7505_v26 }
 0x4d2   :  { %v4591_v33 = vsel %vm4519_vm5, %v4421_v5, %v4555_v7  ;;  %v4544_v9 = vmul.f32 0.2, %v4472_v24  ;;  %vm4508_vm7 = vcmp.gt.f32.partialorder %v4472_v24, 0.0 }
 0x4d3   :  { %5991 = vmatpush3.bf16.msra.mxu1 %v7464_v14  ;;  %v4609_v53 = vpack.c.bf16 %v4591_v33, %v4585_v57  ;;  %v4468_v14 = vadd.f32 %v7534_v54, %v7496_v17  ;;  %vm4521_vm8 = vcmp.gt.f32.partialorder %v4484_v31, 0.0  ;;  %v4482_v54 = vadd.f32 %v4481_v13, %v7498_v19 }
 0x4d4   :  { %5984 = vmatprep.subr.bf16.mxu1 %v7468_v38  ;;  %v4480_v38 = vadd.f32 %v4479_v15, %v7491_v2  ;;  %v4580_v26 = vsel %vm4508_vm7, %v4472_v24, %v4544_v9  ;;  %v4478_v2 = vadd.f32 %v7546_v56, %v7496_v17 }
 0x4d5   :  { %5108 = vmatprep.mubr.bf16.mxu1 %v4609_v53  ;;  %v4538_v50 = vmul.f32 0.2, %v4468_v14  ;;  %vm4502_vm9 = vcmp.gt.f32.partialorder %v4468_v14, 0.0  ;;  %v4556_v40 = vmul.f32 0.2, %v4482_v54  ;;  %vm4520_vm11 = vcmp.gt.f32.partialorder %v4482_v54, 0.0 }
 0x4d6   :  { %5109 = vmatmul.mubr.bf16.gmra.mxu1 %v4608_v0  ;;  %vm4515_vm10 = vcmp.gt.f32.partialorder %v4480_v38, 0.0  ;;  %vm4514_vm12 = vcmp.gt.f32.partialorder %v4478_v2, 0.0 }
 0x4d7   :  { %5992 = vmatpush3.bf16.msra.mxu1 %v7477_v4  ;;  %5157 = vmatprep.mubr.bf16.mxu1 %v4605_v21  ;;  %v4557_v4 = vmul.f32 0.2, %v4484_v31  ;;  %v4574_v30 = vsel %vm4502_vm9, %v4468_v14, %v4538_v50 }
 0x4d8   :  { %5985 = vmatprep.subr.bf16.mxu1 %v7483_v62  ;;  %v4551_v62 = vmul.f32 0.2, %v4480_v38 }
 0x4da   :  { %v4587_v18 = vsel %vm4515_vm10, %v4480_v38, %v4551_v62 }
 0x4db   :  { %5993 = vmatpush3.bf16.msra.mxu1 %v7489_v55  ;;  %v4593_v55 = vsel %vm4521_vm8, %v4484_v31, %v4557_v4 }
 0x4dc   :  { %5986 = vmatprep.subr.bf16.mxu1 %v7494_v16  ;;  %v4604_v16 = vpack.c.bf16 %v4580_v26, %v4574_v30  ;;  %v4611_v41 = vpack.c.bf16 %v4593_v55, %v4587_v18 }
 0x4df   :  { %5994 = vmatpush3.bf16.msra.mxu1 %v7503_v22  ;;  %v4550_v22 = vmul.f32 0.2, %v4478_v2 }
 0x4e0   :  { %5987 = vmatprep.subr.bf16.mxu1 %v7509_v27  ;;  %v4592_v27 = vsel %vm4520_vm11, %v4482_v54, %v4556_v40 }
 0x4e1   :  { %v4586_v43 = vsel %vm4514_vm12, %v4478_v2, %v4550_v22 }
 0x4e2   :  { %v4610_v44 = vpack.c.bf16 %v4592_v27, %v4586_v43 }
 0x4e3   :  { %5995 = vmatpush3.bf16.msra.mxu1 %v7513_v32 }
 0x4e6   :  { %5158 = vmatmul.mubr.bf16.vlgmr.msra.gmra.mxu1 %v4604_v16 }
 0x4e7   :  { %5165 = vmatprep.mubr.bf16.mxu1 %v4611_v41 }
 0x4ee   :  { %5166 = vmatmul.mubr.bf16.gmra.mxu1 %v4610_v44 }
 0x550   :  { %v5834_v19 = vpop.f32.mrf.mxu0 }
 0x552   :  { %v5835_v61 = vpop.f32.mrf.mxu0 }
 0x553   :  { %v5836_v60 = vadd.f32 %v5835_v61, %v5834_v19 }
 0x554   :  { %v5837_v63 = vpop.f32.mrf.mxu0 }
 0x555   :  { %v5038_v56 = vadd.f32 %v5836_v60, %v5698_v51 }
 0x556   :  { %v5838_v34 = vpop.f32.mrf.mxu0 }
 0x557   :  { %v5839_v42 = vadd.f32 %v5838_v34, %v5837_v63 }
 0x558   :  { %v5840_v17 = vpop.f32.mrf.mxu0 }
 0x559   :  { %v5041_v11 = vadd.f32 %v5839_v42, %v5698_v51 }
 0x55a   :  { %v5841_v6 = vpop.f32.mrf.mxu0 }
 0x55b   :  { %v5842_v28 = vadd.f32 %v5841_v6, %v5840_v17 }
 0x55c   :  { %v5843_v32 = vpop.f32.mrf.mxu0 }
 0x55d   :  { %v5046_v31 = vadd.f32 %v5842_v28, %v5698_v51 }
 0x55e   :  { %v5844_v25 = vpop.f32.mrf.mxu0 }
 0x55f   :  { %v5845_v14 = vadd.f32 %v5844_v25, %v5843_v32 }
 0x560   :  { %v5846_v48 = vpop.f32.mrf.mxu0 }
 0x561   :  { %v5049_v26 = vadd.f32 %v5845_v14, %v5698_v51 }
 0x562   :  { %v5847_v47 = vpop.f32.mrf.mxu0 }
 0x563   :  { %v5848_v54 = vadd.f32 %v5847_v47, %v5846_v48 }
 0x564   :  { %v5849_v10 = vpop.f32.mrf.mxu0 }
 0x565   :  { %v5054_v41 = vadd.f32 %v5848_v54, %v5698_v51 }
 0x566   :  { %v5850_v46 = vpop.f32.mrf.mxu0 }
 0x567   :  { %v5851_v22 = vadd.f32 %v5850_v46, %v5849_v10 }
 0x569   :  { %v5057_v34 = vadd.f32 %v5851_v22, %v5698_v51 }
 0x570   :  { %v5902_v1 = vpop.f32.mrf.mxu0 }
 0x572   :  { %v5903_v23 = vpop.f32.mrf.mxu0 }
 0x573   :  { %v5904_v20 = vadd.f32 %v5903_v23, %v5902_v1 }
 0x574   :  { %v5905_v12 = vpop.f32.mrf.mxu0 }
 0x576   :  { %v5906_v35 = vpop.f32.mrf.mxu0 }
 0x577   :  { %v5907_v7 = vadd.f32 %v5906_v35, %v5905_v12 }
 0x586   :  { %v5868_v45 = vpop.f32.mrf.mxu1 }
 0x588   :  { %v5869_v49 = vpop.f32.mrf.mxu1 }
 0x589   :  { %v5870_v37 = vadd.f32 %v5869_v49, %v5868_v45 }
 0x58a   :  { %v5871_v3 = vpop.f32.mrf.mxu1 }
 0x58b   :  { %v5095_v59 = vadd.f32 %v5870_v37, %v5038_v56 }
 0x58c   :  { %v5872_v36 = vpop.f32.mrf.mxu1 }
 0x58d   :  { %v5152_v5 = vadd.f32 %v5904_v20, %v5095_v59  ;;  %v5873_v39 = vadd.f32 %v5872_v36, %v5871_v3 }
 0x58e   :  { %v5874_v15 = vpop.f32.mrf.mxu1 }
 0x58f   :  { %5174 = vst [vmem:[%s7607_s17] sm:$0xff] %v5152_v5  ;;  %v5098_v8 = vadd.f32 %v5873_v39, %v5041_v11 }
 0x590   :  { %v5875_v52 = vpop.f32.mrf.mxu1 }
 0x591   :  { %v5155_v0 = vadd.f32 %v5907_v7, %v5098_v8  ;;  %v5876_v29 = vadd.f32 %v5875_v52, %v5874_v15 }
 0x592   :  { %v5877_v57 = vpop.f32.mrf.mxu1 }
 0x593   :  { %5175 = vst [vmem:[%s7607_s17 + $0x8] sm:$0xff] %v5155_v0  ;;  %v5103_v9 = vadd.f32 %v5876_v29, %v5046_v31 }
 0x594   :  { %v5878_v33 = vpop.f32.mrf.mxu1 }
 0x595   :  { %v5879_v4 = vadd.f32 %v5878_v33, %v5877_v57 }
 0x596   :  { %v5880_v58 = vpop.f32.mrf.mxu1 }
 0x597   :  { %v5106_v2 = vadd.f32 %v5879_v4, %v5049_v26 }
 0x598   :  { %v5881_v13 = vpop.f32.mrf.mxu1 }
 0x599   :  { %v5882_v16 = vadd.f32 %v5881_v13, %v5880_v58 }
 0x59a   :  { %v5883_v53 = vpop.f32.mrf.mxu1 }
 0x59b   :  { %v5111_v44 = vadd.f32 %v5882_v16, %v5054_v41 }
 0x59c   :  { %v5884_v21 = vpop.f32.mrf.mxu1 }
 0x59d   :  { %v5885_v19 = vadd.f32 %v5884_v21, %v5883_v53 }
 0x59f   :  { %v5114_v32 = vadd.f32 %v5885_v19, %v5057_v34 }
 0x5a6   :  { %v5908_v24 = vpop.f32.mrf.mxu1 }
 0x5a8   :  { %v5909_v38 = vpop.f32.mrf.mxu1 }
 0x5a9   :  { %v5910_v50 = vadd.f32 %v5909_v38, %v5908_v24 }
 0x5aa   :  { %v5911_v62 = vpop.f32.mrf.mxu1 }
 0x5ab   :  { %v5160_v55 = vadd.f32 %v5910_v50, %v5103_v9 }
 0x5ac   :  { %v5912_v30 = vpop.f32.mrf.mxu1 }
 0x5ad   :  { %5176 = vst [vmem:[%s7607_s17 + $0x10] sm:$0xff] %v5160_v55  ;;  %v5913_v18 = vadd.f32 %v5912_v30, %v5911_v62 }
 0x5ae   :  { %v5914_v40 = vpop.f32.mrf.mxu1 }
 0x5af   :  { %v5163_v27 = vadd.f32 %v5913_v18, %v5106_v2 }
 0x5b0   :  { %v5915_v43 = vpop.f32.mrf.mxu1 }
 0x5b1   :  { %5177 = vst [vmem:[%s7607_s17 + $0x18] sm:$0xff] %v5163_v27  ;;  %v5916_v61 = vadd.f32 %v5915_v43, %v5914_v40 }
 0x5b2   :  { %v5917_v63 = vpop.f32.mrf.mxu1 }
 0x5b3   :  { %v5168_v17 = vadd.f32 %v5916_v61, %v5111_v44 }
 0x5b4   :  { %v5918_v6 = vpop.f32.mrf.mxu1 }
 0x5b5   :  { %5178 = vst [vmem:[%s7607_s17 + $0x20] sm:$0xff] %v5168_v17  ;;  %v5919_v25 = vadd.f32 %v5918_v6, %v5917_v63 }
 0x5b7   :  { %v5171_v48 = vadd.f32 %v5919_v25, %v5114_v32 }
 0x5b9   :  { %5179 = vst [vmem:[%s7607_s17 + $0x28] sm:$0xff] %v5171_v48 }
 0x5ba   :  { %5194 = vsyncpa [#allocation3], 1 }
 0x5bb   :  { %5195 = vsyncpa [#allocation5], 1 }
 0x5bc   :  { %5196 = vsyncpa [#allocation8], 1 }
 0x5bd   :  { %5197 = vsyncpa [#allocation11], 1 }
 0x5be   :  { %5198 = vsyncpa [#allocation14], 1 }
 0x5bf   :  { %5199 = vsyncpa [#allocation17], 1 }
 0x5c0   :  { %5200 = vsyncpa [#allocation20], 1 }

</bundles_post_ra>
